<compile_context>
chip_gen: v5e
topology: v5e:2x2
jax: 0.10.0
libtpu: 0.0.40
codegen_flags: <defaults>
</compile_context>

<pallas_src>
from functools import partial

import jax
import jax.numpy as jnp
from jax import lax
from jax.experimental import pallas as pl
from jax.experimental.pallas import tpu as pltpu

LANE = 128
BN_EPS = 1e-5


def _round_up(x, m):
    return (x + m - 1) // m * m


# --------------------------------------------------------------------------
# Kernel 1: fused 3x3 conv (pad=1) + BatchNorm + ReLU + 2x2 max-pool.
# One grid step = one image; the conv is a single MXU matmul with the 9 taps
# folded into K via an im2col patch built in VMEM.
# --------------------------------------------------------------------------

def conv_bn_relu_pool_kernel(x_ref, w_ref, scale_ref, shift_ref, o_ref,
                             patch_ref, y_ref, wp_ref, *, H, W, Cin):
    """
    x_ref:     (1, H+2, W+2, Cin)  bf16  zero-padded image (resident per grid step)
    w_ref:     (9*Cin, Cout)       bf16  tap-folded conv weight, rows ordered (dh, dw, ci)
    scale/shift: (1, Cout)         f32   folded BatchNorm (+ conv bias)
    o_ref:     (1, Ho, Wo, Cout)   bf16  pooled, compact-channel output
    patch_ref: (H*W, 9*Cin)        bf16  VMEM im2col patch
    y_ref:     (H*W, Cout)         f32   staging for the width pool (stride-2 sublane reads)
    wp_ref:    (Ho, 2, Wo, Cout)   f32   staging for the height pool (aligned view)
    """
    Ho, Wo = H // 2, W // 2
    cout = o_ref.shape[-1]

    # im2col: fold the 9 taps into K so the whole conv is ONE matmul (M=H*W, K=9*Cin).
    xv = x_ref[0]                                            # (H+2, W+2, Cin) bf16
    for dh in range(3):
        for dw in range(3):
            tap = dh * 3 + dw
            slab = xv[dh:dh + H, dw:dw + W, :]               # (H, W, Cin)
            patch_ref[:, tap * Cin:(tap + 1) * Cin] = slab.reshape(H * W, Cin)

    # Single MXU matmul + fused BN + ReLU (f32 math).
    acc = jnp.dot(patch_ref[...], w_ref[...], preferred_element_type=jnp.float32)
    y = jnp.maximum(acc * scale_ref[...] + shift_ref[...], 0.0)       # (H*W, Cout)

    # 2x2 max pool done once per image.
    # Width pool: conv row index = h*W + w, so stride-2 sublane reads give (h, wo) order.
    y_ref[...] = y
    yw = jnp.maximum(y_ref[pl.ds(0, H * Wo, stride=2), :],
                     y_ref[pl.ds(1, H * Wo, stride=2), :])            # (H*Wo, Cout)
    # Height pool: row index = h*Wo + wo = (2*ho + k)*Wo + wo -> aligned (Ho, 2, Wo, C) view.
    wp_ref[...] = yw.reshape(Ho, 2, Wo, cout)
    pooled = jnp.maximum(wp_ref[:, 0], wp_ref[:, 1])                  # (Ho, Wo, Cout)

    o_ref[0] = pooled.astype(o_ref.dtype)                             # one batched store


def conv_bn_relu_pool(xp, w, scale, shift, *, vmem_limit_bytes=32 * 1024 * 1024):
    N, Hp2, Wp2, cin = xp.shape
    H, W = Hp2 - 2, Wp2 - 2
    assert H % 2 == 0 and W % 2 == 0, "even spatial dims required for 2x2 pooling"
    cout = w.shape[-1]
    Ho, Wo = H // 2, W // 2

    kernel = partial(conv_bn_relu_pool_kernel, H=H, W=W, Cin=cin)
    return pl.pallas_call(
        kernel,
        out_shape=jax.ShapeDtypeStruct((N, Ho, Wo, cout), jnp.bfloat16),
        grid_spec=pltpu.PrefetchScalarGridSpec(
            num_scalar_prefetch=0,
            grid=(N,),
            in_specs=[
                pl.BlockSpec((1, Hp2, Wp2, cin), lambda n: (n, 0, 0, 0)),
                pl.BlockSpec((9 * cin, cout), lambda n: (0, 0)),
                pl.BlockSpec((1, cout), lambda n: (0, 0)),
                pl.BlockSpec((1, cout), lambda n: (0, 0)),
            ],
            out_specs=pl.BlockSpec((1, Ho, Wo, cout), lambda n: (n, 0, 0, 0)),
            scratch_shapes=[
                pltpu.VMEM((H * W, 9 * cin), jnp.bfloat16),   # im2col patch
                pltpu.VMEM((H * W, cout), jnp.float32),       # width-pool staging
                pltpu.VMEM((Ho, 2, Wo, cout), jnp.float32),   # height-pool staging
            ],
        ),
        compiler_params=pltpu.CompilerParams(
            dimension_semantics=("parallel",),                # batch across megacore on v7x
            vmem_limit_bytes=vmem_limit_bytes,
        ),
    )(xp, w, scale, shift)


# --------------------------------------------------------------------------
# Kernel 2: classifier Linear(D, hidden) -> ReLU -> Linear(hidden, C_pad).
# D is small (Ho*Wo*Cout = 512), so a single step: no K grid, no accumulator.
# --------------------------------------------------------------------------

def mlp_kernel(x_ref, w1_ref, b1_ref, w2_ref, b2_ref, o_ref):
    h = jnp.maximum(
        jnp.dot(x_ref[...], w1_ref[...], preferred_element_type=jnp.float32) + b1_ref[...],
        0.0)
    o_ref[...] = (jnp.dot(h.astype(w2_ref.dtype), w2_ref[...],
                          preferred_element_type=jnp.float32)
                  + b2_ref[...]).astype(o_ref.dtype)


def mlp(x, w1, b1, w2, b2, *, vmem_limit_bytes=32 * 1024 * 1024):
    N, D = x.shape
    hidden = w1.shape[1]
    cpad = w2.shape[1]
    return pl.pallas_call(
        mlp_kernel,
        out_shape=jax.ShapeDtypeStruct((N, cpad), jnp.float32),
        grid_spec=pltpu.PrefetchScalarGridSpec(
            num_scalar_prefetch=0,
            grid=(1,),
            in_specs=[
                pl.BlockSpec((N, D), lambda i: (0, 0)),
                pl.BlockSpec((D, hidden), lambda i: (0, 0)),
                pl.BlockSpec((1, hidden), lambda i: (0, 0)),
                pl.BlockSpec((hidden, cpad), lambda i: (0, 0)),
                pl.BlockSpec((1, cpad), lambda i: (0, 0)),
            ],
            out_specs=pl.BlockSpec((N, cpad), lambda i: (0, 0)),
        ),
        compiler_params=pltpu.CompilerParams(
            dimension_semantics=("arbitrary",),
            vmem_limit_bytes=vmem_limit_bytes,
        ),
    )(x, w1, b1, w2, b2)


# --------------------------------------------------------------------------
# Forward pass wrapper (PyTorch semantics, NCHW input)
# --------------------------------------------------------------------------

def networks_forward(x_nchw, kp, num_classes):
    N, Cin, H, W = x_nchw.shape

    # Input-format adaptation only: NCHW -> NHWC, conv zero-padding, bf16.
    x = jnp.transpose(x_nchw, (0, 2, 3, 1)).astype(jnp.bfloat16)
    xp = jnp.pad(x, ((0, 0), (1, 1), (1, 1), (0, 0)))

    feat = conv_bn_relu_pool(xp, kp["conv_w"], kp["bn_scale"], kp["bn_shift"])

    # Flatten in compact NHWC order (D = Ho*Wo*Cout).  kp["w1"] rows were permuted ONCE at
    # prep time so this is numerically identical to PyTorch's NCHW x.view(N, -1) @ w1.T.
    flat = feat.reshape(N, -1)

    logits = mlp(flat, kp["w1"], kp["b1"], kp["w2"], kp["b2"])
    return logits[:, :num_classes]


# --------------------------------------------------------------------------
# Parameter init (PyTorch layouts / init rules) + one-time kernel repack
# --------------------------------------------------------------------------

def init_torch_params(key, *, cin, cout, h, w, hidden, num_classes):
    k_conv, k_w1, k_w2 = jax.random.split(key, 3)
    # Conv2d: kaiming_normal_(mode='fan_out', nonlinearity='relu'), bias = 0
    fan_out = cout * 3 * 3
    conv_w = (2.0 / fan_out) ** 0.5 * jax.random.normal(k_conv, (cout, cin, 3, 3), jnp.float32)
    conv_b = jnp.zeros((cout,), jnp.float32)
    # BatchNorm2d (eval, fresh running stats): gamma=1, beta=0, mean=0, var=1
    bn_gamma = jnp.ones((cout,), jnp.float32)
    bn_beta = jnp.zeros((cout,), jnp.float32)
    bn_mean = jnp.zeros((cout,), jnp.float32)
    bn_var = jnp.ones((cout,), jnp.float32)
    # Linear: normal(0, 0.01), bias = 0 (PyTorch (out, in) layout)
    linear = cout * (h // 2) * (w // 2)
    w1 = 0.01 * jax.random.normal(k_w1, (hidden, linear), jnp.float32)
    b1 = jnp.zeros((hidden,), jnp.float32)
    w2 = 0.01 * jax.random.normal(k_w2, (num_classes, hidden), jnp.float32)
    b2 = jnp.zeros((num_classes,), jnp.float32)
    return dict(conv_w=conv_w, conv_b=conv_b, bn_gamma=bn_gamma, bn_beta=bn_beta,
                bn_mean=bn_mean, bn_var=bn_var, w1=w1, b1=b1, w2=w2, b2=b2)


def prepare_kernel_params(raw, *, h, w):
    """One-time repack into kernel layouts: tap-folded conv weight, BN folding, bf16 weights,
    the w1 row permutation (NCHW-flatten -> compact NHWC-flatten, NO zero rows), and a
    lane-dense (128-col) padded classifier head."""
    cout, cin, _, _ = raw["conv_w"].shape
    hidden = raw["w1"].shape[0]
    num_classes = raw["w2"].shape[0]
    ho, wo = h // 2, w // 2
    cls_pad = _round_up(num_classes, LANE)

    # Conv weight (Cout, Cin, 3, 3) -> (9*Cin, Cout), row index = (dh*3 + dw)*Cin + ci
    wk = jnp.transpose(raw["conv_w"], (2, 3, 1, 0)).reshape(9 * cin, cout)

    # Fold BN (+ conv bias): y = scale * conv + shift
    scale = raw["bn_gamma"] / jnp.sqrt(raw["bn_var"] + BN_EPS)
    shift = scale * (raw["conv_b"] - raw["bn_mean"]) + raw["bn_beta"]
    scale = scale.reshape(1, cout)
    shift = shift.reshape(1, cout)

    # w1: (hidden, Cout*Ho*Wo) with the input axis in NCHW-flatten order
    #     -> (Ho*Wo*Cout, hidden) in compact NHWC-flatten order (no padded zero rows).
    w1_io = raw["w1"].T.reshape(cout, ho, wo, hidden)        # (C, Ho, Wo, hidden)
    w1_io = jnp.transpose(w1_io, (1, 2, 0, 3))               # (Ho, Wo, C, hidden)
    w1p = w1_io.reshape(ho * wo * cout, hidden)

    # Classifier output padded to a lane-dense 128 columns (sliced back in the wrapper).
    w2p = jnp.pad(raw["w2"].T, ((0, 0), (0, cls_pad - num_classes)))
    b2p = jnp.pad(raw["b2"], (0, cls_pad - num_classes)).reshape(1, cls_pad)

    return dict(conv_w=wk.astype(jnp.bfloat16),
                bn_scale=scale, bn_shift=shift,
                w1=w1p.astype(jnp.bfloat16), b1=raw["b1"].reshape(1, hidden),
                w2=w2p.astype(jnp.bfloat16), b2=b2p)


# --------------------------------------------------------------------------
# Pure-JAX, PyTorch-faithful reference (NCHW conv, NCHW flatten, unpermuted weights)
# using the same bf16-operand / f32-accumulate policy as the kernels.
# --------------------------------------------------------------------------

def reference_forward(x_nchw, raw):
    n = x_nchw.shape[0]
    conv = lax.conv_general_dilated(
        x_nchw.astype(jnp.bfloat16), raw["conv_w"].astype(jnp.bfloat16),
        window_strides=(1, 1), padding=((1, 1), (1, 1)),
        dimension_numbers=("NCHW", "OIHW", "NCHW"),
        preferred_element_type=jnp.float32)
    scale = raw["bn_gamma"] / jnp.sqrt(raw["bn_var"] + BN_EPS)
    shift = scale * (raw["conv_b"] - raw["bn_mean"]) + raw["bn_beta"]
    y = jnp.maximum(conv * scale[None, :, None, None] + shift[None, :, None, None], 0.0)
    pooled = lax.reduce_window(y, -jnp.inf, lax.max, (1, 1, 2, 2), (1, 1, 2, 2), "VALID")
    flat = pooled.reshape(n, -1).astype(jnp.bfloat16)        # PyTorch x.view(N, -1): NCHW order
    h = jnp.maximum(
        jnp.dot(flat, raw["w1"].T.astype(jnp.bfloat16), preferred_element_type=jnp.float32)
        + raw["b1"], 0.0)
    out = jnp.dot(h.astype(jnp.bfloat16), raw["w2"].T.astype(jnp.bfloat16),
                  preferred_element_type=jnp.float32) + raw["b2"]
    return out


# --------------------------------------------------------------------------

if __name__ == "__main__":
    key = jax.random.PRNGKey(0)
    k_x, k_p = jax.random.split(key)

    N, Cin, H, W = 2, 4, 16, 16
    Cout, hidden, num_classes = 8, 512, 10

    x = jax.random.normal(k_x, (N, Cin, H, W), jnp.float32)     # PyTorch-style NCHW input
    raw = init_torch_params(k_p, cin=Cin, cout=Cout, h=H, w=W,
                            hidden=hidden, num_classes=num_classes)
    kp = prepare_kernel_params(raw, h=H, w=W)

    forward = jax.jit(networks_forward, static_argnums=2)
    out = jax.block_until_ready(forward(x, kp, num_classes))
    assert out.shape == (N, num_classes)

    ref = reference_forward(x, raw)
    max_err = float(jnp.max(jnp.abs(out - ref)))
    assert jnp.allclose(out, ref, atol=3e-3, rtol=3e-2), \
        f"mismatch vs reference (max abs err {max_err})"

    print("KERNEL_OK")
</pallas_src>

<mosaic_0001>
module attributes {stable_mosaic.version = 11 : i64} {
  func.func @mlp_kernel(%arg0: i32, %arg1: memref<2x512xbf16, #tpu.memory_space<vmem>>, %arg2: memref<512x512xbf16, #tpu.memory_space<vmem>>, %arg3: memref<1x512xf32, #tpu.memory_space<vmem>>, %arg4: memref<512x128xbf16, #tpu.memory_space<vmem>>, %arg5: memref<1x128xf32, #tpu.memory_space<vmem>>, %arg6: memref<2x128xf32, #tpu.memory_space<vmem>>) attributes {dimension_semantics = [#tpu.dimension_semantics<arbitrary>], iteration_bounds = array<i64: 1>, scalar_prefetch = 0 : i64, scratch_operands = 0 : i64, tpu.core_type = #tpu.core_type<tc>, window_params = [{pipeline_mode = #tpu.pipeline_mode<synchronous>, transform_indices = @transform_0, window_bounds = array<i64: 2, 512>}, {pipeline_mode = #tpu.pipeline_mode<synchronous>, transform_indices = @transform_1, window_bounds = array<i64: 512, 512>}, {pipeline_mode = #tpu.pipeline_mode<synchronous>, transform_indices = @transform_2, window_bounds = array<i64: 1, 512>}, {pipeline_mode = #tpu.pipeline_mode<synchronous>, transform_indices = @transform_3, window_bounds = array<i64: 512, 128>}, {pipeline_mode = #tpu.pipeline_mode<synchronous>, transform_indices = @transform_4, window_bounds = array<i64: 1, 128>}, {pipeline_mode = #tpu.pipeline_mode<synchronous>, transform_indices = @transform_5, window_bounds = array<i64: 2, 128>}]} {
    %c0 = arith.constant 0 : index
    %c0_0 = arith.constant 0 : index
    %0 = vector.load %arg1[%c0, %c0_0] : memref<2x512xbf16, #tpu.memory_space<vmem>>, vector<2x512xbf16>
    %c0_1 = arith.constant 0 : index
    %c0_2 = arith.constant 0 : index
    %1 = vector.load %arg2[%c0_1, %c0_2] : memref<512x512xbf16, #tpu.memory_space<vmem>>, vector<512x512xbf16>
    %cst = arith.constant dense<0.000000e+00> : vector<2x512xf32>
    %2 = tpu.matmul %0, %1, %cst {dimension_numbers = #tpu.dot_dimension_numbers<[1], [0], [0], [1], [0, 0, 1, 1], [], []>} : vector<2x512xbf16>, vector<512x512xbf16>, vector<2x512xf32> -> vector<2x512xf32>
    %c0_3 = arith.constant 0 : index
    %c0_4 = arith.constant 0 : index
    %3 = vector.load %arg3[%c0_3, %c0_4] : memref<1x512xf32, #tpu.memory_space<vmem>>, vector<1x512xf32>
    %4 = vector.broadcast %3 : vector<1x512xf32> to vector<2x512xf32>
    %5 = arith.addf %2, %4 : vector<2x512xf32>
    %cst_5 = arith.constant 0.000000e+00 : f32
    %6 = vector.broadcast %cst_5 : f32 to vector<2x512xf32>
    %7 = arith.maximumf %5, %6 : vector<2x512xf32>
    %8 = arith.truncf %7 : vector<2x512xf32> to vector<2x512xbf16>
    %c0_6 = arith.constant 0 : index
    %c0_7 = arith.constant 0 : index
    %9 = vector.load %arg4[%c0_6, %c0_7] : memref<512x128xbf16, #tpu.memory_space<vmem>>, vector<512x128xbf16>
    %cst_8 = arith.constant dense<0.000000e+00> : vector<2x128xf32>
    %10 = tpu.matmul %8, %9, %cst_8 {dimension_numbers = #tpu.dot_dimension_numbers<[1], [0], [0], [1], [0, 0, 1, 1], [], []>} : vector<2x512xbf16>, vector<512x128xbf16>, vector<2x128xf32> -> vector<2x128xf32>
    %c0_9 = arith.constant 0 : index
    %c0_10 = arith.constant 0 : index
    %11 = vector.load %arg5[%c0_9, %c0_10] : memref<1x128xf32, #tpu.memory_space<vmem>>, vector<1x128xf32>
    %12 = vector.broadcast %11 : vector<1x128xf32> to vector<2x128xf32>
    %13 = arith.addf %10, %12 : vector<2x128xf32>
    %c0_11 = arith.constant 0 : index
    %c0_12 = arith.constant 0 : index
    %14 = vector.load %arg6[%c0_11, %c0_12] : memref<2x128xf32, #tpu.memory_space<vmem>>, vector<2x128xf32>
    tpu.vector_store %arg6[%c0_11, %c0_12], %13 {strides = array<i32>} : memref<2x128xf32, #tpu.memory_space<vmem>>, vector<2x128xf32>,
    return
  }
  func.func @transform_0(%arg0: i32) -> (i32, i32) {
    %c0_i32 = arith.constant 0 : i32
    %c0_i32_0 = arith.constant 0 : i32
    %c0_i32_1 = arith.constant 0 : i32
    return %c0_i32, %c0_i32_0 : i32, i32
  }
  func.func @transform_1(%arg0: i32) -> (i32, i32) {
    %c0_i32 = arith.constant 0 : i32
    %c0_i32_0 = arith.constant 0 : i32
    %c0_i32_1 = arith.constant 0 : i32
    return %c0_i32, %c0_i32_0 : i32, i32
  }
  func.func @transform_2(%arg0: i32) -> (i32, i32) {
    %c0_i32 = arith.constant 0 : i32
    %c0_i32_0 = arith.constant 0 : i32
    %c0_i32_1 = arith.constant 0 : i32
    return %c0_i32, %c0_i32_0 : i32, i32
  }
  func.func @transform_3(%arg0: i32) -> (i32, i32) {
    %c0_i32 = arith.constant 0 : i32
    %c0_i32_0 = arith.constant 0 : i32
    %c0_i32_1 = arith.constant 0 : i32
    return %c0_i32, %c0_i32_0 : i32, i32
  }
  func.func @transform_4(%arg0: i32) -> (i32, i32) {
    %c0_i32 = arith.constant 0 : i32
    %c0_i32_0 = arith.constant 0 : i32
    %c0_i32_1 = arith.constant 0 : i32
    return %c0_i32, %c0_i32_0 : i32, i32
  }
  func.func @transform_5(%arg0: i32) -> (i32, i32) {
    %c0_i32 = arith.constant 0 : i32
    %c0_i32_0 = arith.constant 0 : i32
    %c0_i32_1 = arith.constant 0 : i32
    return %c0_i32, %c0_i32_0 : i32, i32
  }
}

module attributes {stable_mosaic.version = 11 : i64} {
  func.func @conv_bn_relu_pool_kernel(%arg0: i32, %arg1: memref<1x18x18x4xbf16, #tpu.memory_space<vmem>>, %arg2: memref<36x8xbf16, #tpu.memory_space<vmem>>, %arg3: memref<1x8xf32, #tpu.memory_space<vmem>>, %arg4: memref<1x8xf32, #tpu.memory_space<vmem>>, %arg5: memref<1x8x8x8xbf16, #tpu.memory_space<vmem>>, %arg6: memref<256x36xbf16, #tpu.memory_space<vmem>>, %arg7: memref<256x8xf32, #tpu.memory_space<vmem>>, %arg8: memref<8x2x8x8xf32, #tpu.memory_space<vmem>>) attributes {dimension_semantics = [#tpu.dimension_semantics<parallel>], iteration_bounds = array<i64: 2>, scalar_prefetch = 0 : i64, scratch_operands = 3 : i64, tpu.core_type = #tpu.core_type<tc>, window_params = [{transform_indices = @transform_0, window_bounds = array<i64: 1, 18, 18, 4>}, {pipeline_mode = #tpu.pipeline_mode<synchronous>, transform_indices = @transform_1, window_bounds = array<i64: 36, 8>}, {pipeline_mode = #tpu.pipeline_mode<synchronous>, transform_indices = @transform_2, window_bounds = array<i64: 1, 8>}, {pipeline_mode = #tpu.pipeline_mode<synchronous>, transform_indices = @transform_3, window_bounds = array<i64: 1, 8>}, {transform_indices = @transform_4, window_bounds = array<i64: 1, 8, 8, 8>}]} {
    %c0 = arith.constant 0 : index
    %c0_0 = arith.constant 0 : index
    %c0_1 = arith.constant 0 : index
    %c0_2 = arith.constant 0 : index
    %0 = vector.load %arg1[%c0, %c0_0, %c0_1, %c0_2] : memref<1x18x18x4xbf16, #tpu.memory_space<vmem>>, vector<1x18x18x4xbf16>
    %1 = vector.shape_cast %0 : vector<1x18x18x4xbf16> to vector<18x18x4xbf16>
    %2 = vector.extract_strided_slice %1 {offsets = [0, 0, 0], sizes = [16, 16, 4], strides = [1, 1, 1]} : vector<18x18x4xbf16> to vector<16x16x4xbf16>
    %3 = vector.shape_cast %2 : vector<16x16x4xbf16> to vector<256x4xbf16>
    %c0_3 = arith.constant 0 : index
    %c0_4 = arith.constant 0 : index
    %4 = vector.load %arg6[%c0_3, %c0_4] : memref<256x36xbf16, #tpu.memory_space<vmem>>, vector<256x4xbf16>
    tpu.vector_store %arg6[%c0_3, %c0_4], %3 {strides = array<i32>} : memref<256x36xbf16, #tpu.memory_space<vmem>>, vector<256x4xbf16>,
    %5 = vector.extract_strided_slice %1 {offsets = [0, 1, 0], sizes = [16, 16, 4], strides = [1, 1, 1]} : vector<18x18x4xbf16> to vector<16x16x4xbf16>
    %6 = vector.shape_cast %5 : vector<16x16x4xbf16> to vector<256x4xbf16>
    %c0_5 = arith.constant 0 : index
    %c4 = arith.constant 4 : index
    %7 = vector.load %arg6[%c0_5, %c4] : memref<256x36xbf16, #tpu.memory_space<vmem>>, vector<256x4xbf16>
    tpu.vector_store %arg6[%c0_5, %c4], %6 {strides = array<i32>} : memref<256x36xbf16, #tpu.memory_space<vmem>>, vector<256x4xbf16>,
    %8 = vector.extract_strided_slice %1 {offsets = [0, 2, 0], sizes = [16, 16, 4], strides = [1, 1, 1]} : vector<18x18x4xbf16> to vector<16x16x4xbf16>
    %9 = vector.shape_cast %8 : vector<16x16x4xbf16> to vector<256x4xbf16>
    %c0_6 = arith.constant 0 : index
    %c8 = arith.constant 8 : index
    %10 = vector.load %arg6[%c0_6, %c8] : memref<256x36xbf16, #tpu.memory_space<vmem>>, vector<256x4xbf16>
    tpu.vector_store %arg6[%c0_6, %c8], %9 {strides = array<i32>} : memref<256x36xbf16, #tpu.memory_space<vmem>>, vector<256x4xbf16>,
    %11 = vector.extract_strided_slice %1 {offsets = [1, 0, 0], sizes = [16, 16, 4], strides = [1, 1, 1]} : vector<18x18x4xbf16> to vector<16x16x4xbf16>
    %12 = vector.shape_cast %11 : vector<16x16x4xbf16> to vector<256x4xbf16>
    %c0_7 = arith.constant 0 : index
    %c12 = arith.constant 12 : index
    %13 = vector.load %arg6[%c0_7, %c12] : memref<256x36xbf16, #tpu.memory_space<vmem>>, vector<256x4xbf16>
    tpu.vector_store %arg6[%c0_7, %c12], %12 {strides = array<i32>} : memref<256x36xbf16, #tpu.memory_space<vmem>>, vector<256x4xbf16>,
    %14 = vector.extract_strided_slice %1 {offsets = [1, 1, 0], sizes = [16, 16, 4], strides = [1, 1, 1]} : vector<18x18x4xbf16> to vector<16x16x4xbf16>
    %15 = vector.shape_cast %14 : vector<16x16x4xbf16> to vector<256x4xbf16>
    %c0_8 = arith.constant 0 : index
    %c16 = arith.constant 16 : index
    %16 = vector.load %arg6[%c0_8, %c16] : memref<256x36xbf16, #tpu.memory_space<vmem>>, vector<256x4xbf16>
    tpu.vector_store %arg6[%c0_8, %c16], %15 {strides = array<i32>} : memref<256x36xbf16, #tpu.memory_space<vmem>>, vector<256x4xbf16>,
    %17 = vector.extract_strided_slice %1 {offsets = [1, 2, 0], sizes = [16, 16, 4], strides = [1, 1, 1]} : vector<18x18x4xbf16> to vector<16x16x4xbf16>
    %18 = vector.shape_cast %17 : vector<16x16x4xbf16> to vector<256x4xbf16>
    %c0_9 = arith.constant 0 : index
    %c20 = arith.constant 20 : index
    %19 = vector.load %arg6[%c0_9, %c20] : memref<256x36xbf16, #tpu.memory_space<vmem>>, vector<256x4xbf16>
    tpu.vector_store %arg6[%c0_9, %c20], %18 {strides = array<i32>} : memref<256x36xbf16, #tpu.memory_space<vmem>>, vector<256x4xbf16>,
    %20 = vector.extract_strided_slice %1 {offsets = [2, 0, 0], sizes = [16, 16, 4], strides = [1, 1, 1]} : vector<18x18x4xbf16> to vector<16x16x4xbf16>
    %21 = vector.shape_cast %20 : vector<16x16x4xbf16> to vector<256x4xbf16>
    %c0_10 = arith.constant 0 : index
    %c24 = arith.constant 24 : index
    %22 = vector.load %arg6[%c0_10, %c24] : memref<256x36xbf16, #tpu.memory_space<vmem>>, vector<256x4xbf16>
    tpu.vector_store %arg6[%c0_10, %c24], %21 {strides = array<i32>} : memref<256x36xbf16, #tpu.memory_space<vmem>>, vector<256x4xbf16>,
    %23 = vector.extract_strided_slice %1 {offsets = [2, 1, 0], sizes = [16, 16, 4], strides = [1, 1, 1]} : vector<18x18x4xbf16> to vector<16x16x4xbf16>
    %24 = vector.shape_cast %23 : vector<16x16x4xbf16> to vector<256x4xbf16>
    %c0_11 = arith.constant 0 : index
    %c28 = arith.constant 28 : index
    %25 = vector.load %arg6[%c0_11, %c28] : memref<256x36xbf16, #tpu.memory_space<vmem>>, vector<256x4xbf16>
    tpu.vector_store %arg6[%c0_11, %c28], %24 {strides = array<i32>} : memref<256x36xbf16, #tpu.memory_space<vmem>>, vector<256x4xbf16>,
    %26 = vector.extract_strided_slice %1 {offsets = [2, 2, 0], sizes = [16, 16, 4], strides = [1, 1, 1]} : vector<18x18x4xbf16> to vector<16x16x4xbf16>
    %27 = vector.shape_cast %26 : vector<16x16x4xbf16> to vector<256x4xbf16>
    %c0_12 = arith.constant 0 : index
    %c32 = arith.constant 32 : index
    %28 = vector.load %arg6[%c0_12, %c32] : memref<256x36xbf16, #tpu.memory_space<vmem>>, vector<256x4xbf16>
    tpu.vector_store %arg6[%c0_12, %c32], %27 {strides = array<i32>} : memref<256x36xbf16, #tpu.memory_space<vmem>>, vector<256x4xbf16>,
    %c0_13 = arith.constant 0 : index
    %c0_14 = arith.constant 0 : index
    %29 = vector.load %arg6[%c0_13, %c0_14] : memref<256x36xbf16, #tpu.memory_space<vmem>>, vector<256x36xbf16>
    %c0_15 = arith.constant 0 : index
    %c0_16 = arith.constant 0 : index
    %30 = vector.load %arg2[%c0_15, %c0_16] : memref<36x8xbf16, #tpu.memory_space<vmem>>, vector<36x8xbf16>
    %cst = arith.constant dense<0.000000e+00> : vector<256x8xf32>
    %31 = tpu.matmul %29, %30, %cst {dimension_numbers = #tpu.dot_dimension_numbers<[1], [0], [0], [1], [0, 0, 1, 1], [], []>} : vector<256x36xbf16>, vector<36x8xbf16>, vector<256x8xf32> -> vector<256x8xf32>
    %c0_17 = arith.constant 0 : index
    %c0_18 = arith.constant 0 : index
    %32 = vector.load %arg3[%c0_17, %c0_18] : memref<1x8xf32, #tpu.memory_space<vmem>>, vector<1x8xf32>
    %33 = vector.broadcast %32 : vector<1x8xf32> to vector<256x8xf32>
    %34 = arith.mulf %31, %33 : vector<256x8xf32>
    %c0_19 = arith.constant 0 : index
    %c0_20 = arith.constant 0 : index
    %35 = vector.load %arg4[%c0_19, %c0_20] : memref<1x8xf32, #tpu.memory_space<vmem>>, vector<1x8xf32>
    %36 = vector.broadcast %35 : vector<1x8xf32> to vector<256x8xf32>
    %37 = arith.addf %34, %36 : vector<256x8xf32>
    %cst_21 = arith.constant 0.000000e+00 : f32
    %38 = vector.broadcast %cst_21 : f32 to vector<256x8xf32>
    %39 = arith.maximumf %37, %38 : vector<256x8xf32>
    %c0_22 = arith.constant 0 : index
    %c0_23 = arith.constant 0 : index
    %40 = vector.load %arg7[%c0_22, %c0_23] : memref<256x8xf32, #tpu.memory_space<vmem>>, vector<256x8xf32>
    tpu.vector_store %arg7[%c0_22, %c0_23], %39 {strides = array<i32>} : memref<256x8xf32, #tpu.memory_space<vmem>>, vector<256x8xf32>,
    %c0_24 = arith.constant 0 : index
    %c0_25 = arith.constant 0 : index
    %41 = tpu.strided_load %arg7[%c0_24, %c0_25] {strides = array<i32: 2, 1>} : memref<256x8xf32, #tpu.memory_space<vmem>>, vector<128x8xf32>
    %c1 = arith.constant 1 : index
    %c0_26 = arith.constant 0 : index
    %42 = tpu.strided_load %arg7[%c1, %c0_26] {strides = array<i32: 2, 1>} : memref<256x8xf32, #tpu.memory_space<vmem>>, vector<128x8xf32>
    %43 = arith.maximumf %41, %42 : vector<128x8xf32>
    %44 = vector.shape_cast %43 : vector<128x8xf32> to vector<8x2x8x8xf32>
    %c0_27 = arith.constant 0 : index
    %c0_28 = arith.constant 0 : index
    %c0_29 = arith.constant 0 : index
    %c0_30 = arith.constant 0 : index
    %45 = vector.load %arg8[%c0_27, %c0_28, %c0_29, %c0_30] : memref<8x2x8x8xf32, #tpu.memory_space<vmem>>, vector<8x2x8x8xf32>
    tpu.vector_store %arg8[%c0_27, %c0_28, %c0_29, %c0_30], %44 {strides = array<i32>} : memref<8x2x8x8xf32, #tpu.memory_space<vmem>>, vector<8x2x8x8xf32>,
    %c0_31 = arith.constant 0 : index
    %c0_32 = arith.constant 0 : index
    %c0_33 = arith.constant 0 : index
    %c0_34 = arith.constant 0 : index
    %46 = vector.load %arg8[%c0_31, %c0_32, %c0_33, %c0_34] : memref<8x2x8x8xf32, #tpu.memory_space<vmem>>, vector<8x1x8x8xf32>
    %47 = vector.shape_cast %46 : vector<8x1x8x8xf32> to vector<8x8x8xf32>
    %c0_35 = arith.constant 0 : index
    %c1_36 = arith.constant 1 : index
    %c0_37 = arith.constant 0 : index
    %c0_38 = arith.constant 0 : index
    %48 = vector.load %arg8[%c0_35, %c1_36, %c0_37, %c0_38] : memref<8x2x8x8xf32, #tpu.memory_space<vmem>>, vector<8x1x8x8xf32>
    %49 = vector.shape_cast %48 : vector<8x1x8x8xf32> to vector<8x8x8xf32>
    %50 = arith.maximumf %47, %49 : vector<8x8x8xf32>
    %51 = arith.truncf %50 : vector<8x8x8xf32> to vector<8x8x8xbf16>
    %c0_39 = arith.constant 0 : index
    %c0_40 = arith.constant 0 : index
    %c0_41 = arith.constant 0 : index
    %c0_42 = arith.constant 0 : index
    %52 = vector.load %arg5[%c0_39, %c0_40, %c0_41, %c0_42] : memref<1x8x8x8xbf16, #tpu.memory_space<vmem>>, vector<1x8x8x8xbf16>
    %53 = vector.shape_cast %52 : vector<1x8x8x8xbf16> to vector<8x8x8xbf16>
    %54 = vector.shape_cast %51 : vector<8x8x8xbf16> to vector<1x8x8x8xbf16>
    tpu.vector_store %arg5[%c0_39, %c0_40, %c0_41, %c0_42], %54 {strides = array<i32>} : memref<1x8x8x8xbf16, #tpu.memory_space<vmem>>, vector<1x8x8x8xbf16>,
    return
  }
  func.func @transform_0(%arg0: i32) -> (i32, i32, i32, i32) {
    %c0_i32 = arith.constant 0 : i32
    %c0_i32_0 = arith.constant 0 : i32
    %c0_i32_1 = arith.constant 0 : i32
    %c0_i32_2 = arith.constant 0 : i32
    return %arg0, %c0_i32, %c0_i32_0, %c0_i32_1 : i32, i32, i32, i32
  }
  func.func @transform_1(%arg0: i32) -> (i32, i32) {
    %c0_i32 = arith.constant 0 : i32
    %c0_i32_0 = arith.constant 0 : i32
    %c0_i32_1 = arith.constant 0 : i32
    return %c0_i32, %c0_i32_0 : i32, i32
  }
  func.func @transform_2(%arg0: i32) -> (i32, i32) {
    %c0_i32 = arith.constant 0 : i32
    %c0_i32_0 = arith.constant 0 : i32
    %c0_i32_1 = arith.constant 0 : i32
    return %c0_i32, %c0_i32_0 : i32, i32
  }
  func.func @transform_3(%arg0: i32) -> (i32, i32) {
    %c0_i32 = arith.constant 0 : i32
    %c0_i32_0 = arith.constant 0 : i32
    %c0_i32_1 = arith.constant 0 : i32
    return %c0_i32, %c0_i32_0 : i32, i32
  }
  func.func @transform_4(%arg0: i32) -> (i32, i32, i32, i32) {
    %c0_i32 = arith.constant 0 : i32
    %c0_i32_0 = arith.constant 0 : i32
    %c0_i32_1 = arith.constant 0 : i32
    %c0_i32_2 = arith.constant 0 : i32
    return %arg0, %c0_i32, %c0_i32_0, %c0_i32_1 : i32, i32, i32, i32
  }
}

</mosaic_0001>

<bundles_post_ra>
// kernel: networks_forward.3
= control target key start
LH: loop header
LB: loop body
LE: loop exit
PB: predicated region body
PF: predicated region fallthrough
CT: control target
= control target key end

     0   :  { %s3120_s0 = inlined_call_operand.vmem [shape: bf16[2,512], index: 0, kind: input, shape index: {}]   ;;  %s3121_s1 = inlined_call_operand.vmem [shape: bf16[512,512], index: 1, kind: input, shape index: {}]   ;;  %s3122_s2 = inlined_call_operand.vmem [shape: f32[1,512], index: 2, kind: input, shape index: {}]   ;;  %s3123_s3 = inlined_call_operand.vmem [shape: bf16[512,128], index: 3, kind: input, shape index: {}]   ;;  %s3124_s4 = inlined_call_operand.vmem [shape: f32[1,128], index: 4, kind: input, shape index: {}]   ;;  %s3125_s5 = inlined_call_operand.hbm [shape: f32[2,128], index: 5, kind: output, shape index: {}]  }
   0x1   :  { %v1469_v0 = vld [vmem:[%s3121_s1 + $0xe0] sm:$0xf]  ;;  %v2025_v1 = vld [vmem:[%s3121_s1 + $0xec] sm:$0xf0] }
   0x2   :  { %v1597_v2 = vld [vmem:[%s3121_s1 + $0x1e0] sm:$0xf]  ;;  %v1470_v3 = vor.u32 %v2025_v1, %v1469_v0  ;;  %v2057_v4 = vld [vmem:[%s3121_s1 + $0x1ec] sm:$0xf0] }
   0x3   :  { %v1725_v5 = vld [vmem:[%s3121_s1 + $0x2e0] sm:$0xf]  ;;  %v2089_v6 = vld [vmem:[%s3121_s1 + $0x2ec] sm:$0xf0]  ;;  %v1598_v7 = vor.u32 %v2057_v4, %v1597_v2 }
   0x4   :  { %v1726_v8 = vor.u32 %v2089_v6, %v1725_v5  ;;  %v1853_v9 = vld [vmem:[%s3121_s1 + $0x3e0] sm:$0xf]  ;;  %v2121_v10 = vld [vmem:[%s3121_s1 + $0x3ec] sm:$0xf0]  ;;  %810 = vmatpush.bf16.msra.mxu0 %v1470_v3 }
   0x5   :  { %v1453_v11 = vld [vmem:[%s3121_s1 + $0xc0] sm:$0xf]  ;;  %v1854_v12 = vor.u32 %v2121_v10, %v1853_v9  ;;  %v2021_v13 = vld [vmem:[%s3121_s1 + $0xcc] sm:$0xf0]  ;;  %823 = vmatpush.bf16.msra.mxu1 %v1598_v7 }
   0x6   :  { %v1581_v14 = vld [vmem:[%s3121_s1 + $0x1c0] sm:$0xf]  ;;  %v2053_v15 = vld [vmem:[%s3121_s1 + $0x1cc] sm:$0xf0]  ;;  %836 = vmatpush.bf16.msra.mxu2 %v1726_v8  ;;  %v1454_v16 = vor.u32 %v2021_v13, %v1453_v11 }
   0x7   :  { %v1582_v17 = vor.u32 %v2053_v15, %v1581_v14  ;;  %v1709_v18 = vld [vmem:[%s3121_s1 + $0x2c0] sm:$0xf]  ;;  %v2085_v19 = vld [vmem:[%s3121_s1 + $0x2cc] sm:$0xf0]  ;;  %849 = vmatpush.bf16.msra.mxu3 %v1854_v12 }
   0x8   :  { %v1837_v20 = vld [vmem:[%s3121_s1 + $0x3c0] sm:$0xf]  ;;  %v1710_v21 = vor.u32 %v2085_v19, %v1709_v18  ;;  %v2117_v22 = vld [vmem:[%s3121_s1 + $0x3cc] sm:$0xf0]  ;;  %811 = vmatpush.bf16.msra.mxu0 %v1454_v16 }
   0x9   :  { %v1437_v23 = vld [vmem:[%s3121_s1 + $0xa0] sm:$0xf]  ;;  %v2017_v24 = vld [vmem:[%s3121_s1 + $0xac] sm:$0xf0]  ;;  %v1838_v25 = vor.u32 %v2117_v22, %v1837_v20  ;;  %824 = vmatpush.bf16.msra.mxu1 %v1582_v17 }
   0xa   :  { %v1565_v26 = vld [vmem:[%s3121_s1 + $0x1a0] sm:$0xf]  ;;  %v2049_v27 = vld [vmem:[%s3121_s1 + $0x1ac] sm:$0xf0]  ;;  %v1438_v29 = vor.u32 %v2017_v24, %v1437_v23  ;;  %837 = vmatpush.bf16.msra.mxu2 %v1710_v21 }
   0xb   :  { %v1693_v28 = vld [vmem:[%s3121_s1 + $0x2a0] sm:$0xf]  ;;  %v2081_v30 = vld [vmem:[%s3121_s1 + $0x2ac] sm:$0xf0]  ;;  %v1566_v33 = vor.u32 %v2049_v27, %v1565_v26  ;;  %850 = vmatpush.bf16.msra.mxu3 %v1838_v25 }
   0xc   :  { %v1821_v31 = vld [vmem:[%s3121_s1 + $0x3a0] sm:$0xf]  ;;  %v2113_v32 = vld [vmem:[%s3121_s1 + $0x3ac] sm:$0xf0]  ;;  %v1694_v34 = vor.u32 %v2081_v30, %v1693_v28  ;;  %812 = vmatpush.bf16.msra.mxu0 %v1438_v29  ;;  %v2023_v28 = vld [vmem:[%s3121_s1 + $0xe4] sm:$0xf] }
   0xd   :  { %v1421_v35 = vld [vmem:[%s3121_s1 + $0x80] sm:$0xf]  ;;  %v2013_v36 = vld [vmem:[%s3121_s1 + $0x8c] sm:$0xf0]  ;;  %v1822_v38 = vor.u32 %v2113_v32, %v1821_v31  ;;  %825 = vmatpush.bf16.msra.mxu1 %v1566_v33  ;;  %v1471_v29 = vld [vmem:[%s3121_s1 + $0xf0] sm:$0xf0] }
   0xe   :  { %v1549_v37 = vld [vmem:[%s3121_s1 + $0x180] sm:$0xf]  ;;  %v2045_v39 = vld [vmem:[%s3121_s1 + $0x18c] sm:$0xf0]  ;;  %v1422_v44 = vor.u32 %v2013_v36, %v1421_v35  ;;  %838 = vmatpush.bf16.msra.mxu2 %v1694_v34  ;;  %v2055_v30 = vld [vmem:[%s3121_s1 + $0x1e4] sm:$0xf] }
   0xf   :  { %v1677_v40 = vld [vmem:[%s3121_s1 + $0x280] sm:$0xf]  ;;  %v2077_v41 = vld [vmem:[%s3121_s1 + $0x28c] sm:$0xf0]  ;;  %v1550_v45 = vor.u32 %v2045_v39, %v1549_v37  ;;  %851 = vmatpush.bf16.msra.mxu3 %v1822_v38  ;;  %v1599_v32 = vld [vmem:[%s3121_s1 + $0x1f0] sm:$0xf0] }
  0x10   :  { %v1805_v42 = vld [vmem:[%s3121_s1 + $0x380] sm:$0xf]  ;;  %v2109_v43 = vld [vmem:[%s3121_s1 + $0x38c] sm:$0xf0]  ;;  %v1678_v46 = vor.u32 %v2077_v41, %v1677_v40  ;;  %813 = vmatpush.bf16.msra.mxu0 %v1422_v44  ;;  %v2087_v33 = vld [vmem:[%s3121_s1 + $0x2e4] sm:$0xf]  ;;  %v1474_v40 = vor.u32 %v2023_v28, %v1471_v29  ;;  %v1602_v41 = vor.u32 %v2055_v30, %v1599_v32 }
  0x11   :  { %v1405_v47 = vld [vmem:[%s3121_s1 + $0x60] sm:$0xf]  ;;  %v2009_v48 = vld [vmem:[%s3121_s1 + $0x6c] sm:$0xf0]  ;;  %v1806_v50 = vor.u32 %v2109_v43, %v1805_v42  ;;  %826 = vmatpush.bf16.msra.mxu1 %v1550_v45  ;;  %v1727_v34 = vld [vmem:[%s3121_s1 + $0x2f0] sm:$0xf0] }
  0x12   :  { %v1533_v49 = vld [vmem:[%s3121_s1 + $0x160] sm:$0xf]  ;;  %v2041_v51 = vld [vmem:[%s3121_s1 + $0x16c] sm:$0xf0]  ;;  %v1406_v56 = vor.u32 %v2009_v48, %v1405_v47  ;;  %839 = vmatpush.bf16.msra.mxu2 %v1678_v46  ;;  %v2119_v37 = vld [vmem:[%s3121_s1 + $0x3e4] sm:$0xf]  ;;  %v1730_v42 = vor.u32 %v2087_v33, %v1727_v34 }
  0x13   :  { %v1661_v52 = vld [vmem:[%s3121_s1 + $0x260] sm:$0xf]  ;;  %v2073_v53 = vld [vmem:[%s3121_s1 + $0x26c] sm:$0xf0]  ;;  %v1534_v57 = vor.u32 %v2041_v51, %v1533_v49  ;;  %852 = vmatpush.bf16.msra.mxu3 %v1806_v50  ;;  %v1855_v38 = vld [vmem:[%s3121_s1 + $0x3f0] sm:$0xf0] }
  0x14   :  { %v1789_v54 = vld [vmem:[%s3121_s1 + $0x360] sm:$0xf]  ;;  %v2105_v55 = vld [vmem:[%s3121_s1 + $0x36c] sm:$0xf0]  ;;  %v1662_v58 = vor.u32 %v2073_v53, %v1661_v52  ;;  %814 = vmatpush.bf16.msra.mxu0 %v1406_v56  ;;  %v2019_v43 = vld [vmem:[%s3121_s1 + $0xc4] sm:$0xf]  ;;  %v1858_v46 = vor.u32 %v2119_v37, %v1855_v38 }
  0x15   :  { %v1389_v59 = vld [vmem:[%s3121_s1 + $0x40] sm:$0xf]  ;;  %v2005_v60 = vld [vmem:[%s3121_s1 + $0x4c] sm:$0xf0]  ;;  %v1790_v62 = vor.u32 %v2105_v55, %v1789_v54  ;;  %827 = vmatpush.bf16.msra.mxu1 %v1534_v57  ;;  %v1455_v44 = vld [vmem:[%s3121_s1 + $0xd0] sm:$0xf0] }
  0x16   :  { %v1517_v61 = vld [vmem:[%s3121_s1 + $0x140] sm:$0xf]  ;;  %v2037_v63 = vld [vmem:[%s3121_s1 + $0x14c] sm:$0xf0]  ;;  %v1390_v4 = vor.u32 %v2005_v60, %v1389_v59  ;;  %840 = vmatpush.bf16.msra.mxu2 %v1662_v58  ;;  %v2051_v45 = vld [vmem:[%s3121_s1 + $0x1c4] sm:$0xf]  ;;  %v1458_v53 = vor.u32 %v2019_v43, %v1455_v44 }
  0x17   :  { %v1645_v0 = vld [vmem:[%s3121_s1 + $0x240] sm:$0xf]  ;;  %v2069_v1 = vld [vmem:[%s3121_s1 + $0x24c] sm:$0xf0]  ;;  %v1518_v5 = vor.u32 %v2037_v63, %v1517_v61  ;;  %853 = vmatpush.bf16.msra.mxu3 %v1790_v62  ;;  %v1583_v47 = vld [vmem:[%s3121_s1 + $0x1d0] sm:$0xf0] }
  0x18   :  { %v1773_v2 = vld [vmem:[%s3121_s1 + $0x340] sm:$0xf]  ;;  %v2101_v3 = vld [vmem:[%s3121_s1 + $0x34c] sm:$0xf0]  ;;  %v1646_v6 = vor.u32 %v2069_v1, %v1645_v0  ;;  %815 = vmatpush.bf16.msra.mxu0 %v1390_v4  ;;  %v2083_v48 = vld [vmem:[%s3121_s1 + $0x2c4] sm:$0xf]  ;;  %v1586_v54 = vor.u32 %v2051_v45, %v1583_v47 }
  0x19   :  { %v1373_v7 = vld [vmem:[%s3121_s1 + $0x20] sm:$0xf]  ;;  %v2001_v8 = vld [vmem:[%s3121_s1 + $0x2c] sm:$0xf0]  ;;  %v1774_v10 = vor.u32 %v2101_v3, %v1773_v2  ;;  %828 = vmatpush.bf16.msra.mxu1 %v1518_v5  ;;  %v1711_v49 = vld [vmem:[%s3121_s1 + $0x2d0] sm:$0xf0] }
  0x1a   :  { %v1501_v9 = vld [vmem:[%s3121_s1 + $0x120] sm:$0xf]  ;;  %v2033_v11 = vld [vmem:[%s3121_s1 + $0x12c] sm:$0xf0]  ;;  %v1374_v16 = vor.u32 %v2001_v8, %v1373_v7  ;;  %841 = vmatpush.bf16.msra.mxu2 %v1646_v6  ;;  %v2115_v50 = vld [vmem:[%s3121_s1 + $0x3c4] sm:$0xf]  ;;  %v1714_v55 = vor.u32 %v2083_v48, %v1711_v49 }
  0x1b   :  { %v1629_v12 = vld [vmem:[%s3121_s1 + $0x220] sm:$0xf]  ;;  %v2065_v13 = vld [vmem:[%s3121_s1 + $0x22c] sm:$0xf0]  ;;  %v1502_v19 = vor.u32 %v2033_v11, %v1501_v9  ;;  %854 = vmatpush.bf16.msra.mxu3 %v1774_v10  ;;  %v1839_v51 = vld [vmem:[%s3121_s1 + $0x3d0] sm:$0xf0] }
  0x1c   :  { %v1757_v14 = vld [vmem:[%s3121_s1 + $0x320] sm:$0xf]  ;;  %v2097_v15 = vld [vmem:[%s3121_s1 + $0x32c] sm:$0xf0]  ;;  %v1630_v20 = vor.u32 %v2065_v13, %v1629_v12  ;;  %816 = vmatpush.bf16.msra.mxu0 %v1374_v16  ;;  %v2015_v56 = vld [vmem:[%s3121_s1 + $0xa4] sm:$0xf]  ;;  %v1842_v59 = vor.u32 %v2115_v50, %v1839_v51 }
  0x1d   :  { %v1357_v17 = vld [vmem:[%s3121_s1] sm:$0xf]  ;;  %v1997_v18 = vld [vmem:[%s3121_s1 + $0xc] sm:$0xf0]  ;;  %v1758_v24 = vor.u32 %v2097_v15, %v1757_v14  ;;  %829 = vmatpush.bf16.msra.mxu1 %v1502_v19  ;;  %v1439_v57 = vld [vmem:[%s3121_s1 + $0xb0] sm:$0xf0] }
  0x1e   :  { %v1485_v21 = vld [vmem:[%s3121_s1 + $0x100] sm:$0xf]  ;;  %v2029_v22 = vld [vmem:[%s3121_s1 + $0x10c] sm:$0xf0]  ;;  %v1358_v31 = vor.u32 %v1997_v18, %v1357_v17  ;;  %842 = vmatpush.bf16.msra.mxu2 %v1630_v20  ;;  %v2047_v58 = vld [vmem:[%s3121_s1 + $0x1a4] sm:$0xf]  ;;  %v1442_v1 = vor.u32 %v2015_v56, %v1439_v57 }
  0x1f   :  { %v1613_v23 = vld [vmem:[%s3121_s1 + $0x200] sm:$0xf]  ;;  %v2061_v25 = vld [vmem:[%s3121_s1 + $0x20c] sm:$0xf0]  ;;  %v1486_v35 = vor.u32 %v2029_v22, %v1485_v21  ;;  %855 = vmatpush.bf16.msra.mxu3 %v1758_v24  ;;  %v1567_v60 = vld [vmem:[%s3121_s1 + $0x1b0] sm:$0xf0] }
  0x20   :  { %v1741_v26 = vld [vmem:[%s3121_s1 + $0x300] sm:$0xf]  ;;  %v2093_v27 = vld [vmem:[%s3121_s1 + $0x30c] sm:$0xf0]  ;;  %v1614_v36 = vor.u32 %v2061_v25, %v1613_v23  ;;  %817 = vmatpush.bf16.msra.mxu0 %v1358_v31  ;;  %v2079_v61 = vld [vmem:[%s3121_s1 + $0x2a4] sm:$0xf]  ;;  %v1570_v3 = vor.u32 %v2047_v58, %v1567_v60 }
  0x21   :  { %v1742_v39 = vor.u32 %v2093_v27, %v1741_v26  ;;  %830 = vmatpush.bf16.msra.mxu1 %v1486_v35  ;;  %v21_v52 = vld [vmem:[%s3120_s0] sm:$0xf]  ;;  %v1695_v62 = vld [vmem:[%s3121_s1 + $0x2b0] sm:$0xf0]  ;;  %v2111_v63 = vld [vmem:[%s3121_s1 + $0x3a4] sm:$0xf] }
  0x22   :  { %843 = vmatpush.bf16.msra.mxu2 %v1614_v36  ;;  %161 = vst [vmem:[#allocation1] ss:$9 sm:$0xff] %v21_v52  ;;  %v1823_v0 = vld [vmem:[%s3121_s1 + $0x3b0] sm:$0xf0]  ;;  %v2011_v2 = vld [vmem:[%s3121_s1 + $0x84] sm:$0xf]  ;;  %v1698_v4 = vor.u32 %v2079_v61, %v1695_v62 }
  0x23   :  { %856 = vmatpush.bf16.msra.mxu3 %v1742_v39  ;;  %v1423_v5 = vld [vmem:[%s3121_s1 + $0x90] sm:$0xf0]  ;;  %v2043_v6 = vld [vmem:[%s3121_s1 + $0x184] sm:$0xf]  ;;  %v1826_v8 = vor.u32 %v2111_v63, %v1823_v0 }
  0x24   :  { %862 = vmatpush.bf16.msrb.mxu0 %v1474_v40  ;;  %v1551_v7 = vld [vmem:[%s3121_s1 + $0x190] sm:$0xf0]  ;;  %v2075_v9 = vld [vmem:[%s3121_s1 + $0x284] sm:$0xf]  ;;  %v1426_v15 = vor.u32 %v2011_v2, %v1423_v5  ;;  %v2026_v2 = vld [vmem:[%s3121_s1 + $0xf4] sm:$0xf0] }
  0x25   :  { %875 = vmatpush.bf16.msrb.mxu1 %v1602_v41  ;;  %v1679_v10 = vld [vmem:[%s3121_s1 + $0x290] sm:$0xf0]  ;;  %v2107_v11 = vld [vmem:[%s3121_s1 + $0x384] sm:$0xf]  ;;  %v1554_v18 = vor.u32 %v2043_v6, %v1551_v7  ;;  %v2058_v5 = vld [vmem:[%s3121_s1 + $0x1f4] sm:$0xf0] }
  0x26   :  { %888 = vmatpush.bf16.msrb.mxu2 %v1730_v42  ;;  %v1807_v12 = vld [vmem:[%s3121_s1 + $0x390] sm:$0xf0]  ;;  %v1682_v19 = vor.u32 %v2075_v9, %v1679_v10  ;;  %v2007_v20 = vld [vmem:[%s3121_s1 + $0x64] sm:$0xf]  ;;  %v1733_v6 = vld [vmem:[%s3121_s1 + $0x2e8] sm:$0xf] }
  0x27   :  { %901 = vmatpush.bf16.msrb.mxu3 %v1858_v46  ;;  %v1407_v21 = vld [vmem:[%s3121_s1 + $0x70] sm:$0xf0]  ;;  %v2039_v22 = vld [vmem:[%s3121_s1 + $0x164] sm:$0xf]  ;;  %v1810_v23 = vor.u32 %v2107_v11, %v1807_v12  ;;  %v2090_v7 = vld [vmem:[%s3121_s1 + $0x2f4] sm:$0xf0] }
  0x28   :  { %863 = vmatpush.bf16.msrb.mxu0 %v1458_v53  ;;  %v1535_v24 = vld [vmem:[%s3121_s1 + $0x170] sm:$0xf0]  ;;  %v2071_v25 = vld [vmem:[%s3121_s1 + $0x264] sm:$0xf]  ;;  %v1410_v29 = vor.u32 %v2007_v20, %v1407_v21  ;;  %v1861_v10 = vld [vmem:[%s3121_s1 + $0x3e8] sm:$0xf] }
  0x29   :  { %876 = vmatpush.bf16.msrb.mxu1 %v1586_v54  ;;  %v2505_v13 = vld [vmem:[#allocation1 + $0x12] sm:$0xff]  ;;  %v2507_v14 = vld [vmem:[#allocation1] sm:$0xff]  ;;  %v2512_v17 = vld [vmem:[#allocation1 + $0x9] sm:$0xff]  ;;  %v1538_v30 = vor.u32 %v2039_v22, %v1535_v24 }
  0x2a   :  { %889 = vmatpush.bf16.msrb.mxu2 %v1714_v55  ;;  %v2510_v16 = vld [vmem:[#allocation1 + $0x1b] sm:$0xff]  ;;  %v1663_v26 = vld [vmem:[%s3121_s1 + $0x270] sm:$0xf0]  ;;  %818 = vmatmul.bf16.vlgmr.msra.gmra.mxu0 %v2507_v14  ;;  %v2103_v27 = vld [vmem:[%s3121_s1 + $0x364] sm:$0xf] }
  0x2b   :  { %902 = vmatpush.bf16.msrb.mxu3 %v1842_v59  ;;  %844 = vmatmul.bf16.vlgmr.msra.gmra.mxu2 %v2505_v13  ;;  %v1791_v28 = vld [vmem:[%s3121_s1 + $0x370] sm:$0xf0]  ;;  %v1666_v31 = vor.u32 %v2071_v25, %v1663_v26  ;;  %v2003_v32 = vld [vmem:[%s3121_s1 + $0x44] sm:$0xf]  ;;  %v2122_v11 = vld [vmem:[%s3121_s1 + $0x3f4] sm:$0xf0] }
  0x2c   :  { %864 = vmatpush.bf16.msrb.mxu0 %v1442_v1  ;;  %857 = vmatmul.bf16.vlgmr.msra.gmra.mxu3 %v2510_v16  ;;  %v1391_v33 = vld [vmem:[%s3121_s1 + $0x50] sm:$0xf0]  ;;  %v2035_v34 = vld [vmem:[%s3121_s1 + $0x144] sm:$0xf]  ;;  %v1794_v35 = vor.u32 %v2103_v27, %v1791_v28  ;;  %v1477_v1 = vld [vmem:[%s3121_s1 + $0xe8] sm:$0xf] }
  0x2d   :  { %877 = vmatpush.bf16.msrb.mxu1 %v1570_v3  ;;  %v1519_v36 = vld [vmem:[%s3121_s1 + $0x150] sm:$0xf0]  ;;  %v2067_v37 = vld [vmem:[%s3121_s1 + $0x244] sm:$0xf]  ;;  %v1394_v41 = vor.u32 %v2003_v32, %v1391_v33  ;;  %v1605_v3 = vld [vmem:[%s3121_s1 + $0x1e8] sm:$0xf] }
  0x2e   :  { %890 = vmatpush.bf16.msrb.mxu2 %v1698_v4  ;;  %831 = vmatmul.bf16.vlgmr.msra.gmra.mxu1 %v2512_v17  ;;  %v1647_v38 = vld [vmem:[%s3121_s1 + $0x250] sm:$0xf0]  ;;  %v2099_v39 = vld [vmem:[%s3121_s1 + $0x344] sm:$0xf]  ;;  %v1522_v42 = vor.u32 %v2035_v34, %v1519_v36  ;;  %v1461_v20 = vld [vmem:[%s3121_s1 + $0xc8] sm:$0xf] }
  0x2f   :  { %903 = vmatpush.bf16.msrb.mxu3 %v1826_v8  ;;  %v1775_v40 = vld [vmem:[%s3121_s1 + $0x350] sm:$0xf0]  ;;  %v1650_v43 = vor.u32 %v2067_v37, %v1647_v38  ;;  %v1999_v44 = vld [vmem:[%s3121_s1 + $0x24] sm:$0xf]  ;;  %v2022_v21 = vld [vmem:[%s3121_s1 + $0xd4] sm:$0xf0] }
  0x30   :  { %865 = vmatpush.bf16.msrb.mxu0 %v1426_v15  ;;  %v1375_v45 = vld [vmem:[%s3121_s1 + $0x30] sm:$0xf0]  ;;  %v2031_v46 = vld [vmem:[%s3121_s1 + $0x124] sm:$0xf]  ;;  %v1778_v47 = vor.u32 %v2099_v39, %v1775_v40  ;;  %v1478_v15 = vor.u32 %v2026_v2, %v1477_v1  ;;  %v1589_v22 = vld [vmem:[%s3121_s1 + $0x1c8] sm:$0xf] }
  0x31   :  { %878 = vmatpush.bf16.msrb.mxu1 %v1554_v18  ;;  %v1503_v48 = vld [vmem:[%s3121_s1 + $0x130] sm:$0xf0]  ;;  %v2063_v49 = vld [vmem:[%s3121_s1 + $0x224] sm:$0xf]  ;;  %v1378_v53 = vor.u32 %v1999_v44, %v1375_v45  ;;  %v1606_v18 = vor.u32 %v2058_v5, %v1605_v3  ;;  %v2054_v24 = vld [vmem:[%s3121_s1 + $0x1d4] sm:$0xf0] }
  0x32   :  { %891 = vmatpush.bf16.msrb.mxu2 %v1682_v19  ;;  %v1631_v50 = vld [vmem:[%s3121_s1 + $0x230] sm:$0xf0]  ;;  %v2095_v51 = vld [vmem:[%s3121_s1 + $0x324] sm:$0xf]  ;;  %v1506_v56 = vor.u32 %v2031_v46, %v1503_v48  ;;  %v1734_v19 = vor.u32 %v2090_v7, %v1733_v6  ;;  %v1717_v25 = vld [vmem:[%s3121_s1 + $0x2c8] sm:$0xf] }
  0x33   :  { %904 = vmatpush.bf16.msrb.mxu3 %v1810_v23  ;;  %v1759_v52 = vld [vmem:[%s3121_s1 + $0x330] sm:$0xf0]  ;;  %v1995_v54 = vld [vmem:[%s3121_s1 + $0x4] sm:$0xf]  ;;  %v1634_v57 = vor.u32 %v2063_v49, %v1631_v50  ;;  %v1862_v23 = vor.u32 %v2122_v11, %v1861_v10  ;;  %v2086_v26 = vld [vmem:[%s3121_s1 + $0x2d4] sm:$0xf0] }
  0x34   :  { %866 = vmatpush.bf16.msrb.mxu0 %v1410_v29  ;;  %v1359_v55 = vld [vmem:[%s3121_s1 + $0x10] sm:$0xf0]  ;;  %v2027_v58 = vld [vmem:[%s3121_s1 + $0x104] sm:$0xf]  ;;  %v1762_v61 = vor.u32 %v2095_v51, %v1759_v52  ;;  %v1845_v27 = vld [vmem:[%s3121_s1 + $0x3c8] sm:$0xf]  ;;  %v1462_v29 = vor.u32 %v2022_v21, %v1461_v20 }
  0x35   :  { %879 = vmatpush.bf16.msrb.mxu1 %v1538_v30  ;;  %v1487_v59 = vld [vmem:[%s3121_s1 + $0x110] sm:$0xf0]  ;;  %v2059_v60 = vld [vmem:[%s3121_s1 + $0x204] sm:$0xf]  ;;  %v1362_v4 = vor.u32 %v1995_v54, %v1359_v55  ;;  %v2118_v28 = vld [vmem:[%s3121_s1 + $0x3d4] sm:$0xf0]  ;;  %v1590_v30 = vor.u32 %v2054_v24, %v1589_v22 }
  0x36   :  { %892 = vmatpush.bf16.msrb.mxu2 %v1666_v31  ;;  %v1615_v62 = vld [vmem:[%s3121_s1 + $0x210] sm:$0xf0]  ;;  %v2091_v63 = vld [vmem:[%s3121_s1 + $0x304] sm:$0xf]  ;;  %v1490_v8 = vor.u32 %v2027_v58, %v1487_v59  ;;  %v1718_v31 = vor.u32 %v2086_v26, %v1717_v25  ;;  %v1445_v32 = vld [vmem:[%s3121_s1 + $0xa8] sm:$0xf] }
  0x37   :  { %905 = vmatpush.bf16.msrb.mxu3 %v1794_v35  ;;  %v1743_v0 = vld [vmem:[%s3121_s1 + $0x310] sm:$0xf0]  ;;  %v1618_v9 = vor.u32 %v2059_v60, %v1615_v62  ;;  %v2018_v33 = vld [vmem:[%s3121_s1 + $0xb4] sm:$0xf0]  ;;  %v1573_v34 = vld [vmem:[%s3121_s1 + $0x1a8] sm:$0xf]  ;;  %v1846_v35 = vor.u32 %v2118_v28, %v1845_v27 }
  0x38   :  { %867 = vmatpush.bf16.msrb.mxu0 %v1394_v41  ;;  %v1746_v12 = vor.u32 %v2091_v63, %v1743_v0  ;;  %v2050_v36 = vld [vmem:[%s3121_s1 + $0x1b4] sm:$0xf0]  ;;  %v1701_v37 = vld [vmem:[%s3121_s1 + $0x2a8] sm:$0xf]  ;;  %v1446_v41 = vor.u32 %v2018_v33, %v1445_v32 }
  0x39   :  { %880 = vmatpush.bf16.msrb.mxu1 %v1522_v42  ;;  %v2082_v38 = vld [vmem:[%s3121_s1 + $0x2b4] sm:$0xf0]  ;;  %v1829_v39 = vld [vmem:[%s3121_s1 + $0x3a8] sm:$0xf]  ;;  %v1574_v42 = vor.u32 %v2050_v36, %v1573_v34 }
  0x3a   :  { %893 = vmatpush.bf16.msrb.mxu2 %v1650_v43  ;;  %v2114_v40 = vld [vmem:[%s3121_s1 + $0x3b4] sm:$0xf0]  ;;  %v1702_v43 = vor.u32 %v2082_v38, %v1701_v37  ;;  %v1429_v44 = vld [vmem:[%s3121_s1 + $0x88] sm:$0xf] }
  0x3b   :  { %906 = vmatpush.bf16.msrb.mxu3 %v1778_v47  ;;  %v2014_v45 = vld [vmem:[%s3121_s1 + $0x94] sm:$0xf0]  ;;  %v1557_v46 = vld [vmem:[%s3121_s1 + $0x188] sm:$0xf]  ;;  %v1830_v47 = vor.u32 %v2114_v40, %v1829_v39 }
  0x3c   :  { %868 = vmatpush.bf16.msrb.mxu0 %v1378_v53  ;;  %v2046_v48 = vld [vmem:[%s3121_s1 + $0x194] sm:$0xf0]  ;;  %v1685_v49 = vld [vmem:[%s3121_s1 + $0x288] sm:$0xf]  ;;  %v1430_v53 = vor.u32 %v2014_v45, %v1429_v44 }
  0x3d   :  { %881 = vmatpush.bf16.msrb.mxu1 %v1506_v56  ;;  %v2078_v50 = vld [vmem:[%s3121_s1 + $0x294] sm:$0xf0]  ;;  %v1813_v51 = vld [vmem:[%s3121_s1 + $0x388] sm:$0xf]  ;;  %v1558_v54 = vor.u32 %v2046_v48, %v1557_v46 }
  0x3e   :  { %894 = vmatpush.bf16.msrb.mxu2 %v1634_v57  ;;  %v2110_v52 = vld [vmem:[%s3121_s1 + $0x394] sm:$0xf0]  ;;  %v1686_v55 = vor.u32 %v2078_v50, %v1685_v49  ;;  %v1413_v56 = vld [vmem:[%s3121_s1 + $0x68] sm:$0xf] }
  0x3f   :  { %907 = vmatpush.bf16.msrb.mxu3 %v1762_v61  ;;  %v2010_v57 = vld [vmem:[%s3121_s1 + $0x74] sm:$0xf0]  ;;  %v1541_v58 = vld [vmem:[%s3121_s1 + $0x168] sm:$0xf]  ;;  %v1814_v59 = vor.u32 %v2110_v52, %v1813_v51 }
  0x40   :  { %869 = vmatpush.bf16.msrb.mxu0 %v1362_v4  ;;  %v2042_v60 = vld [vmem:[%s3121_s1 + $0x174] sm:$0xf0]  ;;  %v1669_v61 = vld [vmem:[%s3121_s1 + $0x268] sm:$0xf]  ;;  %v1414_v1 = vor.u32 %v2010_v57, %v1413_v56 }
  0x41   :  { %882 = vmatpush.bf16.msrb.mxu1 %v1490_v8  ;;  %v2074_v62 = vld [vmem:[%s3121_s1 + $0x274] sm:$0xf0]  ;;  %v1797_v63 = vld [vmem:[%s3121_s1 + $0x368] sm:$0xf]  ;;  %v1542_v2 = vor.u32 %v2042_v60, %v1541_v58 }
  0x42   :  { %895 = vmatpush.bf16.msrb.mxu2 %v1618_v9  ;;  %v2106_v0 = vld [vmem:[%s3121_s1 + $0x374] sm:$0xf0]  ;;  %v1670_v3 = vor.u32 %v2074_v62, %v1669_v61  ;;  %v1397_v4 = vld [vmem:[%s3121_s1 + $0x48] sm:$0xf] }
  0x43   :  { %908 = vmatpush.bf16.msrb.mxu3 %v1746_v12  ;;  %870 = vmatmul.bf16.vlgmr.msrb.gmra.mxu0 %v2507_v14  ;;  %v2006_v5 = vld [vmem:[%s3121_s1 + $0x54] sm:$0xf0]  ;;  %v1525_v6 = vld [vmem:[%s3121_s1 + $0x148] sm:$0xf]  ;;  %v1798_v7 = vor.u32 %v2106_v0, %v1797_v63 }
  0x44   :  { %914 = vmatpush.bf16.msra.mxu0 %v1478_v15  ;;  %883 = vmatmul.bf16.vlgmr.msrb.gmra.mxu1 %v2512_v17  ;;  %v2038_v8 = vld [vmem:[%s3121_s1 + $0x154] sm:$0xf0]  ;;  %v1653_v9 = vld [vmem:[%s3121_s1 + $0x248] sm:$0xf]  ;;  %v1398_v15 = vor.u32 %v2006_v5, %v1397_v4 }
  0x45   :  { %927 = vmatpush.bf16.msra.mxu1 %v1606_v18  ;;  %896 = vmatmul.bf16.vlgmr.msrb.gmra.mxu2 %v2505_v13  ;;  %v2070_v10 = vld [vmem:[%s3121_s1 + $0x254] sm:$0xf0]  ;;  %v1781_v11 = vld [vmem:[%s3121_s1 + $0x348] sm:$0xf] }
  0x46   :  { %940 = vmatpush.bf16.msra.mxu2 %v1734_v19  ;;  %909 = vmatmul.bf16.vlgmr.msrb.gmra.mxu3 %v2510_v16  ;;  %v2102_v12 = vld [vmem:[%s3121_s1 + $0x354] sm:$0xf0]  ;;  %v1381_v18 = vld [vmem:[%s3121_s1 + $0x28] sm:$0xf]  ;;  %v1526_v19 = vor.u32 %v2038_v8, %v1525_v6  ;;  %v1654_v20 = vor.u32 %v2070_v10, %v1653_v9 }
  0x47   :  { %953 = vmatpush.bf16.msra.mxu3 %v1862_v23  ;;  %v2002_v21 = vld [vmem:[%s3121_s1 + $0x34] sm:$0xf0]  ;;  %v1509_v22 = vld [vmem:[%s3121_s1 + $0x128] sm:$0xf]  ;;  %v1782_v24 = vor.u32 %v2102_v12, %v1781_v11 }
  0x48   :  { %915 = vmatpush.bf16.msra.mxu0 %v1462_v29  ;;  %v2034_v23 = vld [vmem:[%s3121_s1 + $0x134] sm:$0xf0]  ;;  %v1637_v25 = vld [vmem:[%s3121_s1 + $0x228] sm:$0xf] }
  0x49   :  { %928 = vmatpush.bf16.msra.mxu1 %v1590_v30  ;;  %v2066_v26 = vld [vmem:[%s3121_s1 + $0x234] sm:$0xf0]  ;;  %v1765_v27 = vld [vmem:[%s3121_s1 + $0x328] sm:$0xf] }
  0x4a   :  { %941 = vmatpush.bf16.msra.mxu2 %v1718_v31  ;;  %v2098_v28 = vld [vmem:[%s3121_s1 + $0x334] sm:$0xf0] }
  0x4b   :  { %954 = vmatpush.bf16.msra.mxu3 %v1846_v35 }
  0x4c   :  { %916 = vmatpush.bf16.msra.mxu0 %v1446_v41 }
  0x4d   :  { %929 = vmatpush.bf16.msra.mxu1 %v1574_v42 }
  0x4e   :  { %942 = vmatpush.bf16.msra.mxu2 %v1702_v43 }
  0x4f   :  { %955 = vmatpush.bf16.msra.mxu3 %v1830_v47 }
  0x50   :  { %917 = vmatpush.bf16.msra.mxu0 %v1430_v53 }
  0x51   :  { %930 = vmatpush.bf16.msra.mxu1 %v1558_v54 }
  0x52   :  { %943 = vmatpush.bf16.msra.mxu2 %v1686_v55 }
  0x53   :  { %956 = vmatpush.bf16.msra.mxu3 %v1814_v59 }
  0x54   :  { %918 = vmatpush.bf16.msra.mxu0 %v1414_v1 }
  0x55   :  { %931 = vmatpush.bf16.msra.mxu1 %v1542_v2 }
  0x56   :  { %944 = vmatpush.bf16.msra.mxu2 %v1670_v3 }
  0x57   :  { %957 = vmatpush.bf16.msra.mxu3 %v1798_v7 }
  0x58   :  { %10 = vsyncpa [#allocation3], 0  ;;  %919 = vmatpush.bf16.msra.mxu0 %v1398_v15  ;;  %v1382_v29 = vor.u32 %v2002_v21, %v1381_v18  ;;  %v1365_v30 = vld [vmem:[%s3121_s1 + $0x8] sm:$0xf]  ;;  %v1998_v31 = vld [vmem:[%s3121_s1 + $0x14] sm:$0xf0]  ;;  %v1510_v32 = vor.u32 %v2034_v23, %v1509_v22  ;;  %v1638_v33 = vor.u32 %v2066_v26, %v1637_v25  ;;  %v1766_v37 = vor.u32 %v2098_v28, %v1765_v27 }
  0x59   :  { %932 = vmatpush.bf16.msra.mxu1 %v1526_v19  ;;  %v1493_v34 = vld [vmem:[%s3121_s1 + $0x108] sm:$0xf]  ;;  %v2030_v35 = vld [vmem:[%s3121_s1 + $0x114] sm:$0xf0]  ;;  %v2024_v41 = vld [vmem:[%s3121_s1 + $0xec] sm:$0xf]  ;;  %v1366_v44 = vor.u32 %v1998_v31, %v1365_v30 }
  0x5a   :  { %945 = vmatpush.bf16.msra.mxu2 %v1654_v20  ;;  %v1621_v36 = vld [vmem:[%s3121_s1 + $0x208] sm:$0xf]  ;;  %v2062_v38 = vld [vmem:[%s3121_s1 + $0x214] sm:$0xf0]  ;;  %v1479_v42 = vld [vmem:[%s3121_s1 + $0xf8] sm:$0xf0]  ;;  %v1494_v48 = vor.u32 %v2030_v35, %v1493_v34 }
  0x5b   :  { %958 = vmatpush.bf16.msra.mxu3 %v1782_v24  ;;  %v1749_v39 = vld [vmem:[%s3121_s1 + $0x308] sm:$0xf]  ;;  %v2094_v40 = vld [vmem:[%s3121_s1 + $0x314] sm:$0xf0]  ;;  %v2056_v43 = vld [vmem:[%s3121_s1 + $0x1ec] sm:$0xf]  ;;  %v1622_v49 = vor.u32 %v2062_v38, %v1621_v36  ;;  %v1482_v53 = vor.u32 %v2024_v41, %v1479_v42 }
  0x5c   :  { %920 = vmatpush.bf16.msra.mxu0 %v1382_v29  ;;  %v1607_v45 = vld [vmem:[%s3121_s1 + $0x1f8] sm:$0xf0]  ;;  %v2088_v46 = vld [vmem:[%s3121_s1 + $0x2ec] sm:$0xf]  ;;  %v1750_v52 = vor.u32 %v2094_v40, %v1749_v39  ;;  %s2183_s28 = smov [#allocation2]   ;;  %s1346_s7 = sshll.u32 %s3125_s5, 4  ;;  %s1347_s7 = int_to_ptr.hbm [resolvable:$true] %s1346_s7 }
  0x5d   :  { %v1735_v47 = vld [vmem:[%s3121_s1 + $0x2f8] sm:$0xf0]  ;;  %933 = vmatpush.bf16.msra.mxu1 %v1510_v32  ;;  %v2120_v50 = vld [vmem:[%s3121_s1 + $0x3ec] sm:$0xf]  ;;  %v1610_v54 = vor.u32 %v2056_v43, %v1607_v45  ;;  %s1344_s29 = sshll.u32 %s2183_s28, 4  ;;  %s1345_s29 = int_to_ptr.vmem [resolvable:$true] %s1344_s29 }
  0x5e   :  { %946 = vmatpush.bf16.msra.mxu2 %v1638_v33  ;;  %v1863_v51 = vld [vmem:[%s3121_s1 + $0x3f8] sm:$0xf0]  ;;  %v1738_v55 = vor.u32 %v2088_v46, %v1735_v47  ;;  %v2020_v56 = vld [vmem:[%s3121_s1 + $0xcc] sm:$0xf] }
  0x5f   :  { %959 = vmatpush.bf16.msra.mxu3 %v1766_v37  ;;  %v1463_v57 = vld [vmem:[%s3121_s1 + $0xd8] sm:$0xf0]  ;;  %v2052_v58 = vld [vmem:[%s3121_s1 + $0x1cc] sm:$0xf]  ;;  %v1866_v59 = vor.u32 %v2120_v50, %v1863_v51 }
  0x60   :  { %921 = vmatpush.bf16.msra.mxu0 %v1366_v44  ;;  %v1591_v60 = vld [vmem:[%s3121_s1 + $0x1d8] sm:$0xf0]  ;;  %v2084_v61 = vld [vmem:[%s3121_s1 + $0x2cc] sm:$0xf]  ;;  %v1466_v1 = vor.u32 %v2020_v56, %v1463_v57 }
  0x61   :  { %v1719_v62 = vld [vmem:[%s3121_s1 + $0x2d8] sm:$0xf0]  ;;  %934 = vmatpush.bf16.msra.mxu1 %v1494_v48  ;;  %v2116_v63 = vld [vmem:[%s3121_s1 + $0x3cc] sm:$0xf]  ;;  %v1594_v2 = vor.u32 %v2052_v58, %v1591_v60 }
  0x62   :  { %947 = vmatpush.bf16.msra.mxu2 %v1622_v49  ;;  %v1847_v0 = vld [vmem:[%s3121_s1 + $0x3d8] sm:$0xf0]  ;;  %v1722_v3 = vor.u32 %v2084_v61, %v1719_v62  ;;  %v2016_v4 = vld [vmem:[%s3121_s1 + $0xac] sm:$0xf] }
  0x63   :  { %960 = vmatpush.bf16.msra.mxu3 %v1750_v52  ;;  %v1447_v5 = vld [vmem:[%s3121_s1 + $0xb8] sm:$0xf0]  ;;  %v2048_v6 = vld [vmem:[%s3121_s1 + $0x1ac] sm:$0xf]  ;;  %v1850_v7 = vor.u32 %v2116_v63, %v1847_v0  ;;  %922 = vmatmul.bf16.vlgmr.msra.gmra.mxu0 %v2507_v14 }
  0x64   :  { %966 = vmatpush.bf16.msrb.mxu0 %v1482_v53  ;;  %v1575_v8 = vld [vmem:[%s3121_s1 + $0x1b8] sm:$0xf0]  ;;  %v2080_v9 = vld [vmem:[%s3121_s1 + $0x2ac] sm:$0xf]  ;;  %935 = vmatmul.bf16.vlgmr.msra.gmra.mxu1 %v2512_v17  ;;  %v1450_v15 = vor.u32 %v2016_v4, %v1447_v5 }
  0x65   :  { %979 = vmatpush.bf16.msrb.mxu1 %v1610_v54  ;;  %948 = vmatmul.bf16.vlgmr.msra.gmra.mxu2 %v2505_v13  ;;  %v1703_v10 = vld [vmem:[%s3121_s1 + $0x2b8] sm:$0xf0]  ;;  %v2112_v11 = vld [vmem:[%s3121_s1 + $0x3ac] sm:$0xf]  ;;  %v1578_v18 = vor.u32 %v2048_v6, %v1575_v8 }
  0x66   :  { %992 = vmatpush.bf16.msrb.mxu2 %v1738_v55  ;;  %961 = vmatmul.bf16.vlgmr.msra.gmra.mxu3 %v2510_v16  ;;  %v1831_v12 = vld [vmem:[%s3121_s1 + $0x3b8] sm:$0xf0]  ;;  %v1706_v19 = vor.u32 %v2080_v9, %v1703_v10  ;;  %v2012_v20 = vld [vmem:[%s3121_s1 + $0x8c] sm:$0xf] }
  0x67   :  { %1005 = vmatpush.bf16.msrb.mxu3 %v1866_v59  ;;  %v1431_v21 = vld [vmem:[%s3121_s1 + $0x98] sm:$0xf0]  ;;  %v2044_v22 = vld [vmem:[%s3121_s1 + $0x18c] sm:$0xf]  ;;  %v1834_v23 = vor.u32 %v2112_v11, %v1831_v12 }
  0x68   :  { %967 = vmatpush.bf16.msrb.mxu0 %v1466_v1  ;;  %v1559_v24 = vld [vmem:[%s3121_s1 + $0x198] sm:$0xf0]  ;;  %v2076_v25 = vld [vmem:[%s3121_s1 + $0x28c] sm:$0xf]  ;;  %v1434_v29 = vor.u32 %v2012_v20, %v1431_v21 }
  0x69   :  { %980 = vmatpush.bf16.msrb.mxu1 %v1594_v2  ;;  %v1687_v26 = vld [vmem:[%s3121_s1 + $0x298] sm:$0xf0]  ;;  %v2108_v27 = vld [vmem:[%s3121_s1 + $0x38c] sm:$0xf]  ;;  %v1562_v30 = vor.u32 %v2044_v22, %v1559_v24 }
  0x6a   :  { %993 = vmatpush.bf16.msrb.mxu2 %v1722_v3  ;;  %v1815_v28 = vld [vmem:[%s3121_s1 + $0x398] sm:$0xf0]  ;;  %v1690_v31 = vor.u32 %v2076_v25, %v1687_v26  ;;  %v2008_v32 = vld [vmem:[%s3121_s1 + $0x6c] sm:$0xf]  ;;  %v2127_v25 = vld [vmem:[%s3123_s3 + $0x20] sm:$0xff] }
  0x6b   :  { %1006 = vmatpush.bf16.msrb.mxu3 %v1850_v7  ;;  %v1415_v33 = vld [vmem:[%s3121_s1 + $0x78] sm:$0xf0]  ;;  %v2040_v34 = vld [vmem:[%s3121_s1 + $0x16c] sm:$0xf]  ;;  %v1818_v35 = vor.u32 %v2108_v27, %v1815_v28  ;;  %v2135_v26 = vld [vmem:[%s3123_s3 + $0x60] sm:$0xff] }
  0x6c   :  { %968 = vmatpush.bf16.msrb.mxu0 %v1450_v15  ;;  %v1543_v36 = vld [vmem:[%s3121_s1 + $0x178] sm:$0xf0]  ;;  %v2072_v37 = vld [vmem:[%s3121_s1 + $0x26c] sm:$0xf]  ;;  %v1418_v41 = vor.u32 %v2008_v32, %v1415_v33 }
  0x6d   :  { %981 = vmatpush.bf16.msrb.mxu1 %v1578_v18  ;;  %v1671_v38 = vld [vmem:[%s3121_s1 + $0x278] sm:$0xf0]  ;;  %v2104_v39 = vld [vmem:[%s3121_s1 + $0x36c] sm:$0xf]  ;;  %v1546_v42 = vor.u32 %v2040_v34, %v1543_v36 }
  0x6e   :  { %994 = vmatpush.bf16.msrb.mxu2 %v1706_v19  ;;  %v1799_v40 = vld [vmem:[%s3121_s1 + $0x378] sm:$0xf0]  ;;  %v1674_v43 = vor.u32 %v2072_v37, %v1671_v38  ;;  %v2004_v44 = vld [vmem:[%s3121_s1 + $0x4c] sm:$0xf]  ;;  %v2131_v38 = vld [vmem:[%s3123_s3 + $0x40] sm:$0xff] }
  0x6f   :  { %1007 = vmatpush.bf16.msrb.mxu3 %v1834_v23  ;;  %v1399_v45 = vld [vmem:[%s3121_s1 + $0x58] sm:$0xf0]  ;;  %v2036_v46 = vld [vmem:[%s3121_s1 + $0x14c] sm:$0xf]  ;;  %v1802_v47 = vor.u32 %v2104_v39, %v1799_v40  ;;  %v2129_v23 = vld [vmem:[%s3123_s3 + $0x30] sm:$0xff] }
  0x70   :  { %969 = vmatpush.bf16.msrb.mxu0 %v1434_v29  ;;  %v1527_v48 = vld [vmem:[%s3121_s1 + $0x158] sm:$0xf0]  ;;  %v2068_v49 = vld [vmem:[%s3121_s1 + $0x24c] sm:$0xf]  ;;  %v1402_v53 = vor.u32 %v2004_v44, %v1399_v45  ;;  %v2123_v29 = vld [vmem:[%s3123_s3] sm:$0xff] }
  0x71   :  { %982 = vmatpush.bf16.msrb.mxu1 %v1562_v30  ;;  %v1655_v50 = vld [vmem:[%s3121_s1 + $0x258] sm:$0xf0]  ;;  %v2100_v51 = vld [vmem:[%s3121_s1 + $0x34c] sm:$0xf]  ;;  %v1530_v54 = vor.u32 %v2036_v46, %v1527_v48  ;;  %v3051_v30 = vld [vmem:[%s3122_s2] sm:$0xf] }
  0x72   :  { %995 = vmatpush.bf16.msrb.mxu2 %v1690_v31  ;;  %v1783_v52 = vld [vmem:[%s3121_s1 + $0x358] sm:$0xf0]  ;;  %v1658_v55 = vor.u32 %v2068_v49, %v1655_v50  ;;  %v2000_v56 = vld [vmem:[%s3121_s1 + $0x2c] sm:$0xf]  ;;  %v2133_v31 = vld [vmem:[%s3123_s3 + $0x50] sm:$0xff]  ;;  %v152_v32 = vperm.slane %v3051_v30, 0 }
  0x73   :  { %1008 = vmatpush.bf16.msrb.mxu3 %v1818_v35  ;;  %v1383_v57 = vld [vmem:[%s3121_s1 + $0x38] sm:$0xf0]  ;;  %v2032_v58 = vld [vmem:[%s3121_s1 + $0x12c] sm:$0xf]  ;;  %v1786_v59 = vor.u32 %v2100_v51, %v1783_v52  ;;  %v2143_v51 = vld [vmem:[%s3123_s3 + $0xa0] sm:$0xff] }
  0x74   :  { %970 = vmatpush.bf16.msrb.mxu0 %v1418_v41  ;;  %v1511_v60 = vld [vmem:[%s3121_s1 + $0x138] sm:$0xf0]  ;;  %v2064_v61 = vld [vmem:[%s3121_s1 + $0x22c] sm:$0xf]  ;;  %v1386_v1 = vor.u32 %v2000_v56, %v1383_v57 }
  0x75   :  { %983 = vmatpush.bf16.msrb.mxu1 %v1546_v42  ;;  %v1639_v62 = vld [vmem:[%s3121_s1 + $0x238] sm:$0xf0]  ;;  %v2096_v63 = vld [vmem:[%s3121_s1 + $0x32c] sm:$0xf]  ;;  %v1514_v2 = vor.u32 %v2032_v58, %v1511_v60  ;;  %v2145_v42 = vld [vmem:[%s3123_s3 + $0xb0] sm:$0xff] }
  0x76   :  { %996 = vmatpush.bf16.msrb.mxu2 %v1674_v43  ;;  %v1767_v0 = vld [vmem:[%s3121_s1 + $0x338] sm:$0xf0]  ;;  %v1642_v3 = vor.u32 %v2064_v61, %v1639_v62  ;;  %v1996_v4 = vld [vmem:[%s3121_s1 + $0xc] sm:$0xf]  ;;  %v2141_v58 = vld [vmem:[%s3123_s3 + $0x90] sm:$0xff] }
  0x77   :  { %1009 = vmatpush.bf16.msrb.mxu3 %v1802_v47  ;;  %v1367_v5 = vld [vmem:[%s3121_s1 + $0x18] sm:$0xf0]  ;;  %v2028_v6 = vld [vmem:[%s3121_s1 + $0x10c] sm:$0xf]  ;;  %v1770_v7 = vor.u32 %v2096_v63, %v1767_v0 }
  0x78   :  { %971 = vmatpush.bf16.msrb.mxu0 %v1402_v53  ;;  %v1495_v8 = vld [vmem:[%s3121_s1 + $0x118] sm:$0xf0]  ;;  %v2060_v9 = vld [vmem:[%s3121_s1 + $0x20c] sm:$0xf]  ;;  %v1370_v15 = vor.u32 %v1996_v4, %v1367_v5 }
  0x79   :  { %984 = vmatpush.bf16.msrb.mxu1 %v1530_v54  ;;  %v1623_v10 = vld [vmem:[%s3121_s1 + $0x218] sm:$0xf0]  ;;  %v2092_v11 = vld [vmem:[%s3121_s1 + $0x30c] sm:$0xf]  ;;  %v1498_v18 = vor.u32 %v2028_v6, %v1495_v8  ;;  %v153_v54 = vperm.slane %v3051_v30, 1 }
  0x7a   :  { %997 = vmatpush.bf16.msrb.mxu2 %v1658_v55  ;;  %v1751_v12 = vld [vmem:[%s3121_s1 + $0x318] sm:$0xf0]  ;;  %v1626_v19 = vor.u32 %v2060_v9, %v1623_v10  ;;  %v2128_v24 = vld [vmem:[%s3123_s3 + $0x28] sm:$0xff] }
  0x7b   :  { %1010 = vmatpush.bf16.msrb.mxu3 %v1786_v59  ;;  %v1754_v20 = vor.u32 %v2092_v11, %v1751_v12  ;;  %v2130_v21 = vld [vmem:[%s3123_s3 + $0x38] sm:$0xff]  ;;  %v2124_v27 = vld [vmem:[%s3123_s3 + $0x8] sm:$0xff]  ;;  %v2151_v11 = vld [vmem:[%s3123_s3 + $0xe0] sm:$0xff] }
  0x7c   :  { %972 = vmatpush.bf16.msrb.mxu0 %v1386_v1  ;;  %v2138_v22 = vld [vmem:[%s3123_s3 + $0x78] sm:$0xff]  ;;  %v2132_v33 = vld [vmem:[%s3123_s3 + $0x48] sm:$0xff] }
  0x7d   :  { %985 = vmatpush.bf16.msrb.mxu1 %v1514_v2  ;;  %v2134_v28 = vld [vmem:[%s3123_s3 + $0x58] sm:$0xff]  ;;  %v2144_v47 = vld [vmem:[%s3123_s3 + $0xa8] sm:$0xff] }
  0x7e   :  { %998 = vmatpush.bf16.msrb.mxu2 %v1642_v3  ;;  %v2146_v39 = vld [vmem:[%s3123_s3 + $0xb8] sm:$0xff]  ;;  %v2140_v61 = vld [vmem:[%s3123_s3 + $0x88] sm:$0xff]  ;;  %v2139_v3 = vld [vmem:[%s3123_s3 + $0x80] sm:$0xff] }
  0x7f   :  { %1011 = vmatpush.bf16.msrb.mxu3 %v1770_v7  ;;  %v2142_v53 = vld [vmem:[%s3123_s3 + $0x98] sm:$0xff]  ;;  %v2153_v7 = vld [vmem:[%s3123_s3 + $0xf0] sm:$0xff]  ;;  %v2152_v10 = vld [vmem:[%s3123_s3 + $0xe8] sm:$0xff] }
  0x80   :  { %973 = vmatpush.bf16.msrb.mxu0 %v1370_v15  ;;  %v2154_v5 = vld [vmem:[%s3123_s3 + $0xf8] sm:$0xff]  ;;  %v154_v15 = vperm.slane %v3051_v30, 2 }
  0x81   :  { %986 = vmatpush.bf16.msrb.mxu1 %v1498_v18  ;;  %v2150_v12 = vld [vmem:[%s3123_s3 + $0xd8] sm:$0xff]  ;;  %v2149_v18 = vld [vmem:[%s3123_s3 + $0xd0] sm:$0xff] }
  0x82   :  { %999 = vmatpush.bf16.msrb.mxu2 %v1626_v19 }
  0x83   :  { %1012 = vmatpush.bf16.msrb.mxu3 %v1754_v20  ;;  %974 = vmatmul.bf16.vlgmr.msrb.gmra.mxu0 %v2507_v14  ;;  %v2137_v14 = vld [vmem:[%s3123_s3 + $0x70] sm:$0xff] }
  0x84   :  { %1286 = vmatpush.bf16.msra.mxu0 %v2130_v21  ;;  %987 = vmatmul.bf16.vlgmr.msrb.gmra.mxu1 %v2512_v17  ;;  %v2125_v17 = vld [vmem:[%s3123_s3 + $0x10] sm:$0xff] }
  0x85   :  { %1299 = vmatpush.bf16.msra.mxu1 %v2138_v22  ;;  %1000 = vmatmul.bf16.vlgmr.msrb.gmra.mxu2 %v2505_v13  ;;  %v2126_v13 = vld [vmem:[%s3123_s3 + $0x18] sm:$0xff] }
  0x86   :  { %1013 = vmatmul.bf16.vlgmr.msrb.gmra.mxu3 %v2510_v16  ;;  %v2136_v16 = vld [vmem:[%s3123_s3 + $0x68] sm:$0xff]  ;;  %1312 = vmatpush.bf16.msra.mxu2 %v2146_v39 }
  0x87   :  { %1325 = vmatpush.bf16.msra.mxu3 %v2154_v5 }
  0x88   :  { %1287 = vmatpush.bf16.msra.mxu0 %v2129_v23  ;;  %v2148_v23 = vld [vmem:[%s3123_s3 + $0xc8] sm:$0xff] }
  0x89   :  { %1300 = vmatpush.bf16.msra.mxu1 %v2137_v14 }
  0x8a   :  { %1313 = vmatpush.bf16.msra.mxu2 %v2145_v42 }
  0x8b   :  { %1326 = vmatpush.bf16.msra.mxu3 %v2153_v7 }
  0x8c   :  { %1288 = vmatpush.bf16.msra.mxu0 %v2128_v24 }
  0x8d   :  { %1301 = vmatpush.bf16.msra.mxu1 %v2136_v16 }
  0x8e   :  { %1314 = vmatpush.bf16.msra.mxu2 %v2144_v47 }
  0x8f   :  { %1327 = vmatpush.bf16.msra.mxu3 %v2152_v10 }
  0x90   :  { %1289 = vmatpush.bf16.msra.mxu0 %v2127_v25 }
  0x91   :  { %1302 = vmatpush.bf16.msra.mxu1 %v2135_v26 }
  0x92   :  { %1315 = vmatpush.bf16.msra.mxu2 %v2143_v51 }
  0x93   :  { %1328 = vmatpush.bf16.msra.mxu3 %v2151_v11 }
  0x94   :  { %1290 = vmatpush.bf16.msra.mxu0 %v2126_v13 }
  0x95   :  { %1303 = vmatpush.bf16.msra.mxu1 %v2134_v28 }
  0x96   :  { %1316 = vmatpush.bf16.msra.mxu2 %v2142_v53 }
  0x97   :  { %1329 = vmatpush.bf16.msra.mxu3 %v2150_v12 }
  0x98   :  { %1291 = vmatpush.bf16.msra.mxu0 %v2125_v17  ;;  %v2147_v17 = vld [vmem:[%s3123_s3 + $0xc0] sm:$0xff] }
  0x99   :  { %1304 = vmatpush.bf16.msra.mxu1 %v2133_v31 }
  0x9a   :  { %1317 = vmatpush.bf16.msra.mxu2 %v2141_v58 }
  0x9b   :  { %1330 = vmatpush.bf16.msra.mxu3 %v2149_v18 }
  0x9c   :  { %1292 = vmatpush.bf16.msra.mxu0 %v2124_v27 }
  0x9d   :  { %1305 = vmatpush.bf16.msra.mxu1 %v2132_v33 }
  0x9e   :  { %1318 = vmatpush.bf16.msra.mxu2 %v2140_v61 }
  0x9f   :  { %1331 = vmatpush.bf16.msra.mxu3 %v2148_v23 }
  0xa0   :  { %1293 = vmatpush.bf16.msra.mxu0 %v2123_v29 }
  0xa1   :  { %1306 = vmatpush.bf16.msra.mxu1 %v2131_v38 }
  0xa2   :  { %1319 = vmatpush.bf16.msra.mxu2 %v2139_v3 }
  0xa3   :  { %1332 = vmatpush.bf16.msra.mxu3 %v2147_v17 }
  0xa7   :  { %v819_v34 = vpop.f32.mrf.mxu0 }
  0xa8   :  { %v820_v35 = vadd.f32 %v819_v34, %v152_v32  ;;  %v155_v32 = vperm.slane %v3051_v30, 3 }
  0xab   :  { %v832_v36 = vpop.f32.mrf.mxu1 }
  0xac   :  { %v833_v37 = vadd.f32 %v832_v36, %v820_v35 }
  0xae   :  { %v845_v40 = vpop.f32.mrf.mxu2 }
  0xaf   :  { %v846_v41 = vadd.f32 %v845_v40, %v833_v37  ;;  %v858_v43 = vpop.f32.mrf.mxu3  ;;  %v821_v45 = vpop.f32.mrf.mxu0 }
  0xb1   :  { %v859_v44 = vadd.f32 %v858_v43, %v846_v41 }
  0xb3   :  { %v834_v46 = vpop.f32.mrf.mxu1  ;;  %v1018_v48 = vmax.f32 %v859_v44, 0.0 }
  0xb5   :  { %v1022_v49 = vpack.c.bf16 %v1018_v48, %v1018_v48 }
  0xb6   :  { %v847_v50 = vpop.f32.mrf.mxu2 }
  0xb7   :  { %1294 = vmatmul.bf16.vlgmr.msra.gmra.mxu0 %v1022_v49  ;;  %v860_v52 = vpop.f32.mrf.mxu3 }
  0xb8   :  { %v2156_v52 = vld [vmem:[%s3124_s4] ss:$0 sm:$0xff] }
  0xc0   :  { %v871_v55 = vpop.f32.mrf.mxu0 }
  0xc1   :  { %v872_v56 = vadd.f32 %v871_v55, %v153_v54  ;;  %v884_v57 = vpop.f32.mrf.mxu1 }
  0xc3   :  { %v885_v59 = vadd.f32 %v884_v57, %v872_v56 }
  0xc8   :  { %v897_v60 = vpop.f32.mrf.mxu2  ;;  %v873_v1 = vpop.f32.mrf.mxu0 }
  0xc9   :  { %v898_v62 = vadd.f32 %v897_v60, %v885_v59  ;;  %v910_v63 = vpop.f32.mrf.mxu3  ;;  %v886_v2 = vpop.f32.mrf.mxu1 }
  0xcb   :  { %v911_v0 = vadd.f32 %v910_v63, %v898_v62 }
  0xcd   :  { %v1019_v4 = vmax.f32 %v911_v0, 0.0 }
  0xcf   :  { %v1023_v6 = vpack.c.bf16 %v1019_v4, %v1019_v4 }
  0xd0   :  { %v899_v8 = vpop.f32.mrf.mxu2 }
  0xd1   :  { %1307 = vmatmul.bf16.vlgmr.msra.gmra.mxu1 %v1023_v6  ;;  %v912_v9 = vpop.f32.mrf.mxu3 }
  0xe0   :  { %v923_v19 = vpop.f32.mrf.mxu0 }
  0xe1   :  { %v924_v20 = vadd.f32 %v923_v19, %v154_v15  ;;  %v936_v21 = vpop.f32.mrf.mxu1 }
  0xe3   :  { %v937_v22 = vadd.f32 %v936_v21, %v924_v20 }
  0xe8   :  { %v949_v24 = vpop.f32.mrf.mxu2  ;;  %v925_v16 = vpop.f32.mrf.mxu0 }
  0xe9   :  { %v950_v25 = vadd.f32 %v949_v24, %v937_v22  ;;  %v962_v14 = vpop.f32.mrf.mxu3  ;;  %v938_v26 = vpop.f32.mrf.mxu1 }
  0xeb   :  { %v963_v13 = vadd.f32 %v962_v14, %v950_v25 }
  0xed   :  { %v1020_v27 = vmax.f32 %v963_v13, 0.0 }
  0xef   :  { %v1024_v28 = vpack.c.bf16 %v1020_v27, %v1020_v27 }
  0xf0   :  { %v951_v29 = vpop.f32.mrf.mxu2 }
  0xf1   :  { %1320 = vmatmul.bf16.vlgmr.msra.gmra.mxu2 %v1024_v28  ;;  %v964_v31 = vpop.f32.mrf.mxu3 }
 0x100   :  { %v975_v33 = vpop.f32.mrf.mxu0 }
 0x101   :  { %v976_v34 = vadd.f32 %v975_v33, %v155_v32  ;;  %v988_v35 = vpop.f32.mrf.mxu1 }
 0x103   :  { %v989_v36 = vadd.f32 %v988_v35, %v976_v34 }
 0x108   :  { %v1001_v37 = vpop.f32.mrf.mxu2  ;;  %v977_v40 = vpop.f32.mrf.mxu0 }
 0x109   :  { %v1002_v38 = vadd.f32 %v1001_v37, %v989_v36  ;;  %v1014_v39 = vpop.f32.mrf.mxu3  ;;  %v990_v41 = vpop.f32.mrf.mxu1 }
 0x10b   :  { %v1015_v42 = vadd.f32 %v1014_v39, %v1002_v38 }
 0x10d   :  { %v1021_v43 = vmax.f32 %v1015_v42, 0.0 }
 0x10f   :  { %v1025_v44 = vpack.c.bf16 %v1021_v43, %v1021_v43 }
 0x110   :  { %v1003_v45 = vpop.f32.mrf.mxu2 }
 0x111   :  { %v1016_v46 = vpop.f32.mrf.mxu3  ;;  %1333 = vmatmul.bf16.vlgmr.msra.gmra.mxu3 %v1025_v44 }
 0x134   :  { %v1295_v47 = vpop.f32.mrf.mxu0 }
 0x135   :  { %v1296_v53 = vadd.f32 %v2156_v52, %v1295_v47 }
 0x13c   :  { %v1297_v48 = vpop.f32.mrf.mxu0 }
 0x14e   :  { %v1308_v49 = vpop.f32.mrf.mxu1 }
 0x14f   :  { %v1309_v54 = vadd.f32 %v1308_v49, %v1296_v53 }
 0x156   :  { %v1310_v50 = vpop.f32.mrf.mxu1 }
 0x174   :  { %v1321_v30 = vpop.f32.mrf.mxu2 }
 0x175   :  { %v1322_v55 = vadd.f32 %v1321_v30, %v1309_v54 }
 0x17c   :  { %v1323_v51 = vpop.f32.mrf.mxu2 }
 0x194   :  { %v1334_v56 = vpop.f32.mrf.mxu3 }
 0x195   :  { %v1335_v57 = vadd.f32 %v1334_v56, %v1322_v55 }
 0x197   :  { %1338 = vst [vmem:[#allocation2] sm:$0x3] %v1335_v57 }
 0x198   :  { %1349 = dma.vmem_to_hbm [thread:$0]  %s1345_s29, 32, %s1347_s7, [#allocation3]  }
 0x19c   :  { %v1336_v58 = vpop.f32.mrf.mxu3 }
 0x19d   :  { %2181 = dma.done.wait [#allocation3], 32  }
 0x19e   :  { %2182 = vsyncadd [#allocation3], 4294967264 }
 0x19f   :  { %1354 = vsyncpa [#allocation3], 1 }

// kernel: networks_forward.2
= control target key start
LH: loop header
LB: loop body
LE: loop exit
PB: predicated region body
PF: predicated region fallthrough
CT: control target
= control target key end

     0   :  { %s2743_s15 = smov 0   ;;  %s4331_s0 = inlined_call_operand.vmem [shape: bf16[2,18,18,4], index: 0, kind: input, shape index: {}]   ;;  %s4332_s1 = inlined_call_operand.vmem [shape: bf16[36,8], index: 1, kind: input, shape index: {}]   ;;  %s4333_s2 = inlined_call_operand.vmem [shape: f32[1,8], index: 2, kind: input, shape index: {}]   ;;  %s4334_s3 = inlined_call_operand.vmem [shape: f32[1,8], index: 3, kind: input, shape index: {}]   ;;  %s4335_s4 = inlined_call_operand.vmem [shape: bf16[2,8,8,8], index: 4, kind: output, shape index: {}]  }
   0x1 LB: > { %s2539_s16 = sadd.s32 4294967295, %s2708_s15   ;;  %p2543_p0 = scmp.ge.s32.totalorder %s2708_s15, 1  ;;  %s2708_s15 = sphi %s2743_s15, %s14_s15  }
   0x2   : > { %p162_p1 = scmp.lt.s32.totalorder %s2708_s15, 3 }
   0x4   : > { %p163_p2 = pnand %p2543_p0, %p162_p1 }
   0x6   : > { %166 = sbr.rel (%p163_p2) target bundleno = 994 (0x3e2), region = 36 }
   0xb   : > { %p188_p3 = scmp.lt.s32.totalorder %s2539_s16, 1  ;;  %vm286_vm0 = vsmask.f32 3328  ;;  %vm287_vm1 = vsmask.f32 7440  ;;  %v4437_v27 = vmov 0 }
   0xc   : > { %vm2793_vm2 = vmor %vm286_vm0, %vm287_vm1  ;;  %s2710_s21 = smov 4   ;;  %vm850_vm3 = vcmask 1042432   ;;  %vm851_vm4 = vcmask 1046532   ;;  %vm253_vm5 = vcmask 27648   ;;  %s2711_s22 = smov 8   ;;  %vm769_vm7 = vcmask 60448  }
   0xd   : > { %s4587_s16 = smov (!%p188_p3, %s2539_s16), 1  ;;  %v4438_v27 = vsel %vm2793_vm2, 4294967295, %v4437_v27  ;;  %vm3180_vm6 = vmor %vm850_vm3, %vm851_vm4  ;;  %s2712_s23 = smov 12   ;;  %vm1061_vm8 = vcmask 93248   ;;  %vm1192_vm9 = vcmask 126048   ;;  %vm1345_vm10 = vcmask 158848  }
   0xe   : > { %s2683_s17 = smul.u32 216, %s4587_s16  ;;  %4439 = vst [vmem:[#allocation5_spill] sm:$0xff] %v4438_v27  ;;  %s2713_s24 = smov 16   ;;  %vm1482_vm11 = vcmask 191648   ;;  %vm1613_vm12 = vcmask 224448   ;;  %vm2117_vm13 = vcmask 1041408  }
   0xf   : > { %s2714_s25 = smov 20   ;;  %s2715_s26 = smov 24   ;;  %vm1766_vm14 = vcmask 257248   ;;  %vm1903_vm15 = vcmask 290048   ;;  %vm2068_vm0 = vcmask 293888   ;;  %vm2314_vm1 = vcmask 64512  }
  0x10   : > { %s2757_s20 = scalar_lea.vmem %s4331_s0, %s2683_s17  ;;  %s2716_s27 = smov 28  }
  0x11   : > { %v2760_v0 = vld [vmem:[%s2757_s20 + $0xc] sm:$0xf]  ;;  %v2763_v1 = vld [vmem:[%s2757_s20 + $0x10] sm:$0xf]  ;;  %v2766_v2 = vld [vmem:[%s2757_s20] sm:$0xf] }
  0x12   : > { %v314_v3 = vshrl.u32 %v2760_v0, 16  ;;  %v317_v4 = vshll.u32 %v2760_v0, 16  ;;  %v323_v5 = vshll.u32 %v2763_v1, 16  ;;  %v2772_v6 = vld [vmem:[%s2757_s20 + $0x4] sm:$0xf]  ;;  %v290_v7 = vshrl.u32 %v2766_v2, 16 }
  0x13   : > { %v293_v8 = vshll.u32 %v2766_v2, 16  ;;  %v299_v9 = vshll.u32 %v2772_v6, 16  ;;  %v2778_v10 = vld [vmem:[%s2757_s20 + $0x14] sm:$0x1]  ;;  %v327_v11 = vshrl.u32 %v2763_v1, 16  ;;  %v303_v12 = vshrl.u32 %v2772_v6, 16 }
  0x14   : > { %v316_v13 = vrot.slane %v314_v3, 4  ;;  %v319_v14 = vrot.slane %v317_v4, 5  ;;  %v325_v15 = vrot.slane %v323_v5, 5  ;;  %v292_v16 = vrot.slane %v290_v7, 4  ;;  %v2783_v17 = vld [vmem:[%s2757_s20 + $0x8] sm:$0x1] }
  0x15   : > { %v295_v18 = vrot.slane %v293_v8, 5  ;;  %v301_v19 = vrot.slane %v299_v9, 5  ;;  %v329_v20 = vrot.slane %v327_v11, 4  ;;  %v333_v21 = vshll.u32 %v2778_v10, 16  ;;  %v2787_v22 = vld [vmem:[%s2757_s20 + $0x28] sm:$0xf] }
  0x16   : > { %v320_v23 = vor.u32 %v319_v14, %v316_v13  ;;  %v305_v24 = vrot.slane %v303_v12, 4  ;;  %v309_v25 = vshll.u32 %v2783_v17, 16  ;;  %v371_v26 = vshll.u32 %v2787_v22, 16  ;;  %v2799_v31 = vld [vmem:[%s2757_s20 + $0x24] sm:$0xf]  ;;  %s2717_s28 = smov 32  }
  0x17   : > { %v296_v28 = vor.u32 %v295_v18, %v292_v16  ;;  %v330_v29 = vor.u32 %v329_v20, %v325_v15  ;;  %v375_v30 = vshrl.u32 %v2787_v22, 16  ;;  %v335_v35 = vrot.slane %v333_v21, 5  ;;  %v2802_v37 = vld [vmem:[%s2757_s20 + $0x18] sm:$0xf]  ;;  %v2813_v42 = vld [vmem:[%s2757_s20 + $0x1c] sm:$0xf] }
  0x18   : > { %v321_v32 = vrot.slane %v320_v23, 4  ;;  %v306_v33 = vor.u32 %v305_v24, %v301_v19  ;;  %v311_v36 = vrot.slane %v309_v25, 5  ;;  %v2808_v39 = vrot.slane %v371_v26, 5  ;;  %v2820_v46 = vld [vmem:[%s2757_s20 + $0x2c] sm:$0x1]  ;;  %s2655_s13 = sshll.u32 %s4587_s16, 5 }
  0x19   : > { %v297_v34 = vrot.slane %v296_v28, 4  ;;  %v362_v40 = vshrl.u32 %v2799_v31, 16  ;;  %v365_v41 = vshll.u32 %v2799_v31, 16  ;;  %v331_v44 = vrot.slane %v330_v29, 4  ;;  %v2827_v53 = vld [vmem:[%s2757_s20 + $0x3c] sm:$0xf]  ;;  %s4247_s18 = scalar_lea.vmem %s4335_s4, %s2655_s13 }
  0x1a   : > { %v2806_v38 = vsel %vm2793_vm2, %v321_v32, %v325_v15  ;;  %v307_v45 = vrot.slane %v306_v33, 4  ;;  %v377_v47 = vrot.slane %v375_v30, 4  ;;  %v338_v50 = vshrl.u32 %v2802_v37, 16  ;;  %v2831_v56 = vld [vmem:[%s2757_s20 + $0x34] sm:$0xf] }
  0x1b   : > { %4440 = vst [vmem:[#allocation6_spill] sm:$0xff] %v2806_v38  ;;  %677 = vrot.lane.b32.xlu1 %v2806_v38, %s2710_s21  ;;  %v302_v43 = vsel %vm2793_vm2, %v297_v34, %v301_v19  ;;  %v364_v48 = vrot.slane %v362_v40, 4  ;;  %v367_v49 = vrot.slane %v365_v41, 5  ;;  %v341_v51 = vshll.u32 %v2802_v37, 16  ;;  %v2843_v4 = vld [vmem:[%s2757_s20 + $0x20] sm:$0x1] }
  0x1c   : > { %673 = vrot.lane.b32.xlu0 %v302_v43, %s2710_s21  ;;  %v347_v52 = vshll.u32 %v2813_v42, 16  ;;  %v381_v54 = vshll.u32 %v2820_v46, 16  ;;  %v340_v55 = vrot.slane %v338_v50, 4  ;;  %v2835_v57 = vsel %vm2793_vm2, %v331_v44, %v335_v35  ;;  %v2852_v16 = vld [vmem:[%s2757_s20 + $0x4c] sm:$0xf] }
  0x1d   : > { %4441 = vst [vmem:[#allocation7_spill] sm:$0xff] %v2835_v57  ;;  %v312_v58 = vsel %vm2793_vm2, %v307_v45, %v311_v36  ;;  %v378_v59 = vor.u32 %v377_v47, %v2808_v39  ;;  %v343_v60 = vrot.slane %v341_v51, 5  ;;  %v368_v61 = vor.u32 %v367_v49, %v364_v48  ;;  %v2856_v19 = vld [vmem:[%s2757_s20 + $0x40] sm:$0xf]  ;;  %v2863_v24 = vld [vmem:[%s2757_s20 + $0x38] sm:$0x1] }
  0x1e   : > { %v349_v62 = vrot.slane %v347_v52, 5  ;;  %v410_v63 = vshrl.u32 %v2827_v53, 16  ;;  %v413_v3 = vshll.u32 %v2827_v53, 16  ;;  %v395_v7 = vshll.u32 %v2831_v56, 16  ;;  %4442 = vst [vmem:[#allocation8_spill] sm:$0xff] %v2856_v19 }
  0x1f   : > { %v344_v5 = vor.u32 %v343_v60, %v340_v55  ;;  %v399_v8 = vshrl.u32 %v2831_v56, 16  ;;  %v351_v9 = vshrl.u32 %v2813_v42, 16  ;;  %v383_v11 = vrot.slane %v381_v54, 5  ;;  %v2866_v29 = vld [vmem:[%s2757_s20 + $0x30] sm:$0xf] }
  0x20   : > { %v379_v12 = vrot.slane %v378_v59, 4  ;;  %v357_v15 = vshll.u32 %v2843_v4, 16  ;;  %v369_v18 = vrot.slane %v368_v61, 4  ;;  %v412_v20 = vrot.slane %v410_v63, 4  ;;  %v2873_v33 = vld [vmem:[%s2757_s20 + $0x48] sm:$0xf] }
  0x21   : > { %v345_v13 = vrot.slane %v344_v5, 4  ;;  %v353_v14 = vrot.slane %v351_v9, 4  ;;  %v415_v21 = vrot.slane %v413_v3, 5  ;;  %v397_v25 = vrot.slane %v395_v7, 5  ;;  %v2902_v7 = vld [vmem:[%s2757_s20 + $0x60] sm:$0xf] }
  0x22   : > { %v401_v26 = vrot.slane %v399_v8, 4  ;;  %v443_v30 = vshll.u32 %v2852_v16, 16  ;;  %v447_v32 = vshrl.u32 %v2852_v16, 16  ;;  %v2877_v34 = vsel %vm2793_vm2, %v379_v12, %v383_v11  ;;  %4448 = vst [vmem:[#allocation14_spill] sm:$0xff] %v2902_v7  ;;  %v2908_v11 = vld [vmem:[%s2757_s20 + $0x58] sm:$0xf] }
  0x23   : > { %679 = vrot.lane.b32.xlu1 %v2835_v57, %s2710_s21  ;;  %v2860_v23 = vsel %vm2793_vm2, %v345_v13, %v349_v62  ;;  %v354_v28 = vor.u32 %v353_v14, %v349_v62  ;;  %4444 = vst [vmem:[#allocation10_spill] sm:$0xff] %v2877_v34  ;;  %v419_v35 = vshll.u32 %v2856_v19, 16  ;;  %v359_v40 = vrot.slane %v357_v15, 5  ;;  %v2912_v14 = vld [vmem:[%s2757_s20 + $0x44] sm:$0x1] }
  0x24   : > { %675 = vrot.lane.b32.xlu0 %v312_v58, %s2710_s21  ;;  %4443 = vst [vmem:[#allocation9_spill] sm:$0xff] %v2860_v23  ;;  %681 = vrot.lane.b32.xlu2 %v2860_v23, %s2710_s21  ;;  %v416_v41 = vor.u32 %v415_v21, %v412_v20  ;;  %v405_v43 = vshll.u32 %v2863_v24, 16  ;;  %v386_v44 = vshrl.u32 %v2866_v29, 16  ;;  %v389_v45 = vshll.u32 %v2866_v29, 16  ;;  %v3059_v38 = vld [vmem:[%s2757_s20 + $0xa8] sm:$0xf] }
  0x25   : > { %v355_v36 = vrot.slane %v354_v28, 4  ;;  %v2886_v47 = vsel %vm2793_vm2, %v369_v18, %v2808_v39  ;;  %v402_v48 = vor.u32 %v401_v26, %v397_v25  ;;  %v434_v49 = vshrl.u32 %v2873_v33, 16  ;;  %v2897_v39 = vld [vmem:[%s2757_s20 + $0x50] sm:$0x1]  ;;  %4449 = vst [vmem:[#allocation15_spill] sm:$0xff] %v2908_v11 }
  0x26   : > { %4445 = vst [vmem:[#allocation11_spill] sm:$0xff] %v2886_v47  ;;  %v437_v50 = vshll.u32 %v2873_v33, 16  ;;  %v445_v51 = vrot.slane %v443_v30, 5  ;;  %v449_v52 = vrot.slane %v447_v32, 4  ;;  %v388_v54 = vrot.slane %v386_v44, 4 }
  0x27   : > { %v391_v55 = vrot.slane %v389_v45, 5  ;;  %v2894_v58 = vsel %vm2793_vm2, %v355_v36, %v359_v40  ;;  %4447 = vst [vmem:[#allocation13_spill] sm:$0xff] %v2897_v39  ;;  %v417_v59 = vrot.slane %v416_v41, 4  ;;  %v421_v60 = vrot.slane %v419_v35, 5  ;;  %v2921_v26 = vld [vmem:[%s2757_s20 + $0x54] sm:$0xf] }
  0x28   : > { %4446 = vst [vmem:[#allocation12_spill] sm:$0xff] %v2894_v58  ;;  %v403_v62 = vrot.slane %v402_v48, 4  ;;  %v407_v63 = vrot.slane %v405_v43, 5  ;;  %v436_v3 = vrot.slane %v434_v49, 4  ;;  %v439_v5 = vrot.slane %v437_v50, 5 }
  0x29   : > { %v392_v61 = vor.u32 %v391_v55, %v388_v54  ;;  %v450_v8 = vor.u32 %v449_v52, %v445_v51  ;;  %v453_v9 = vshll.u32 %v2897_v39, 16  ;;  %v423_v12 = vshrl.u32 %v2856_v19, 16  ;;  %4451 = vst [vmem:[#allocation17_spill] sm:$0xff] %v2921_v26  ;;  %v2936_v43 = vld [vmem:[%s2757_s20 + $0x64] sm:$0xf] }
  0x2a   : > { %v2916_v15 = vsel %vm2793_vm2, %v417_v59, %v421_v60  ;;  %v482_v18 = vshrl.u32 %v2902_v7, 16  ;;  %v485_v20 = vshll.u32 %v2902_v7, 16  ;;  %v2925_v28 = vsel %vm2793_vm2, %v403_v62, %v407_v63  ;;  %4454 = vst [vmem:[#allocation20_spill] sm:$0xff] %v2936_v43  ;;  %v2943_v52 = vld [vmem:[%s2757_s20 + $0x5c] sm:$0x1] }
  0x2b   : > { %687 = vrot.lane.b32.xlu1 %v2877_v34, %s2710_s21  ;;  %v393_v13 = vrot.slane %v392_v61, 4  ;;  %4450 = vst [vmem:[#allocation16_spill] sm:$0xff] %v2916_v15  ;;  %v425_v21 = vrot.slane %v423_v12, 4  ;;  %v440_v30 = vor.u32 %v439_v5, %v436_v3  ;;  %v467_v32 = vshll.u32 %v2908_v11, 16  ;;  %v2947_v61 = vld [vmem:[%s2757_s20 + $0x70] sm:$0xf] }
  0x2c   : > { %685 = vrot.lane.b32.xlu0 %v2886_v47, %s2710_s21  ;;  %683 = vrot.lane.b32.xlu2 %v2894_v58, %s2710_s21  ;;  %4452 = vst [vmem:[#allocation18_spill] sm:$0xff] %v2925_v28  ;;  %v471_v35 = vshrl.u32 %v2908_v11, 16  ;;  %v451_v36 = vrot.slane %v450_v8, 4  ;;  %v455_v40 = vrot.slane %v453_v9, 5  ;;  %v429_v45 = vshll.u32 %v2912_v14, 16 }
  0x2d   : > { %v2933_v41 = vsel %vm2793_vm2, %v393_v13, %v397_v25  ;;  %v426_v44 = vor.u32 %v425_v21, %v421_v60  ;;  %v458_v48 = vshrl.u32 %v2921_v26, 16  ;;  %v484_v49 = vrot.slane %v482_v18, 4  ;;  %4455 = vst [vmem:[#allocation21_spill] sm:$0xff] %v2943_v52  ;;  %v2957_v63 = vld [vmem:[%s2757_s20 + $0x6c] sm:$0xf] }
  0x2e   : > { %4453 = vst [vmem:[#allocation19_spill] sm:$0xff] %v2933_v41  ;;  %v487_v50 = vrot.slane %v485_v20, 5  ;;  %v461_v54 = vshll.u32 %v2921_v26, 16  ;;  %v441_v55 = vrot.slane %v440_v30, 4  ;;  %v469_v25 = vrot.slane %v467_v32, 5 }
  0x2f   : > { %v473_v59 = vrot.slane %v471_v35, 4  ;;  %4456 = vst [vmem:[#allocation22_spill] sm:$0xff] %v2947_v61  ;;  %v2951_v60 = vsel %vm2793_vm2, %v451_v36, %v455_v40  ;;  %v491_v62 = vshll.u32 %v2936_v43, 16  ;;  %v427_v3 = vrot.slane %v426_v44, 4  ;;  %v3022_v34 = vld [vmem:[%s2757_s20 + $0x88] sm:$0xf] }
  0x30   : > { %4457 = vst [vmem:[#allocation23_spill] sm:$0xff] %v2951_v60  ;;  %v431_v5 = vrot.slane %v429_v45, 5  ;;  %v460_v8 = vrot.slane %v458_v48, 4  ;;  %v463_v9 = vrot.slane %v461_v54, 5  ;;  %v488_v12 = vor.u32 %v487_v50, %v484_v49  ;;  %v2978_v48 = vld [vmem:[%s2757_s20 + $0x74] sm:$0x1] }
  0x31   : > { %4458 = vst [vmem:[#allocation24_spill] sm:$0xff] %v2957_v63  ;;  %v477_v13 = vshll.u32 %v2943_v52, 16  ;;  %v515_v18 = vshll.u32 %v2947_v61, 16  ;;  %v519_v20 = vshrl.u32 %v2947_v61, 16  ;;  %v2964_v21 = vsel %vm2793_vm2, %v441_v55, %v445_v51  ;;  %v3032_v58 = vld [vmem:[%s2757_s20 + $0x90] sm:$0xf] }
  0x32   : > { %4459 = vst [vmem:[#allocation25_spill] sm:$0xff] %v2964_v21  ;;  %v474_v30 = vor.u32 %v473_v59, %v469_v25  ;;  %v506_v32 = vshrl.u32 %v2957_v63, 16  ;;  %v509_v35 = vshll.u32 %v2957_v63, 16  ;;  %v2972_v36 = vsel %vm2793_vm2, %v427_v3, %v431_v5  ;;  %v2981_v3 = vld [vmem:[%s2757_s20 + $0x84] sm:$0xf] }
  0x33   : > { %693 = vrot.lane.b32.xlu1 %v2916_v15, %s2710_s21  ;;  %4460 = vst [vmem:[#allocation26_spill] sm:$0xff] %v2972_v36  ;;  %v464_v40 = vor.u32 %v463_v9, %v460_v8  ;;  %v495_v44 = vshrl.u32 %v2936_v43, 16  ;;  %v489_v51 = vrot.slane %v488_v12, 4  ;;  %v493_v45 = vrot.slane %v491_v62, 5  ;;  %v2986_v5 = vld [vmem:[%s2757_s20 + $0x7c] sm:$0xf] }
  0x34   : > { %691 = vrot.lane.b32.xlu0 %v2925_v28, %s2710_s21  ;;  %689 = vrot.lane.b32.xlu2 %v2933_v41, %s2710_s21  ;;  %4461 = vst [vmem:[#allocation27_spill] sm:$0xff] %v2978_v48  ;;  %v517_v49 = vrot.slane %v515_v18, 5  ;;  %v521_v50 = vrot.slane %v519_v20, 4  ;;  %v475_v54 = vrot.slane %v474_v30, 4  ;;  %v479_v55 = vrot.slane %v477_v13, 5 }
  0x35   : > { %v508_v59 = vrot.slane %v506_v32, 4  ;;  %v525_v8 = vshll.u32 %v2978_v48, 16  ;;  %v465_v9 = vrot.slane %v464_v40, 4  ;;  %v2990_v62 = vld [vmem:[%s2757_s20 + $0x68] sm:$0x1]  ;;  %v497_v12 = vrot.slane %v495_v44, 4 }
  0x36   : > { %4462 = vst [vmem:[#allocation28_spill] sm:$0xff] %v2990_v62  ;;  %v2994_v18 = vsel %vm2793_vm2, %v489_v51, %v493_v45  ;;  %v522_v13 = vor.u32 %v521_v50, %v517_v49  ;;  %v554_v20 = vshrl.u32 %v2981_v3, 16  ;;  %v557_v30 = vshll.u32 %v2981_v3, 16  ;;  %v2999_v32 = vld [vmem:[%s2757_s20 + $0x78] sm:$0xf] }
  0x37   : > { %4463 = vst [vmem:[#allocation29_spill] sm:$0xff] %v2994_v18  ;;  %v539_v15 = vshll.u32 %v2986_v5, 16  ;;  %v543_v44 = vshrl.u32 %v2986_v5, 16  ;;  %v501_v51 = vshll.u32 %v2990_v62, 16  ;;  %v3012_v50 = vsel %vm2793_vm2, %v465_v9, %v469_v25  ;;  %v3025_v25 = vld [vmem:[%s2757_s20 + $0x80] sm:$0x1] }
  0x38   : > { %4465 = vst [vmem:[#allocation31_spill] sm:$0xff] %v3012_v50  ;;  %v559_v41 = vrot.slane %v557_v30, 5  ;;  %v3134_v39 = vld [vmem:[%s2757_s20 + $0xbc] sm:$0x1] }
  0x39   : > { %4467 = vst [vmem:[#allocation33_spill] sm:$0xff] %v3025_v25  ;;  %v545_v9 = vrot.slane %v543_v44, 4  ;;  %v549_v44 = vshll.u32 %v3025_v25, 16  ;;  %v3100_v25 = vld [vmem:[%s2757_s20 + $0xa4] sm:$0x1] }
  0x3a   : > { %4468 = vst [vmem:[#allocation34_spill] sm:$0xff] %v3032_v58 }
  0x3b   : > { %699 = vrot.lane.b32.xlu1 %v2951_v60, %s2710_s21  ;;  %v511_v60 = vrot.slane %v509_v35, 5  ;;  %v3003_v35 = vsel %vm2793_vm2, %v475_v54, %v479_v55  ;;  %v533_v54 = vshll.u32 %v2999_v32, 16  ;;  %v523_v55 = vrot.slane %v522_v13, 4  ;;  %4479 = vst [vmem:[#allocation45_spill] sm:$0xff] %v3100_v25 }
  0x3c   : > { %697 = vrot.lane.b32.xlu0 %v2964_v21, %s2710_s21  ;;  %695 = vrot.lane.b32.xlu2 %v2972_v36, %s2710_s21  ;;  %4464 = vst [vmem:[#allocation30_spill] sm:$0xff] %v3003_v35  ;;  %v498_v36 = vor.u32 %v497_v12, %v493_v45  ;;  %v3015_v21 = vld [vmem:[%s2757_s20 + $0x94] sm:$0xf]  ;;  %v541_v45 = vrot.slane %v539_v15, 5 }
  0x3d   : > { %v512_v40 = vor.u32 %v511_v60, %v508_v59  ;;  %4466 = vst [vmem:[#allocation32_spill] sm:$0xff] %v3015_v21  ;;  %v530_v60 = vshrl.u32 %v2999_v32, 16  ;;  %v527_v59 = vrot.slane %v525_v8, 5  ;;  %v587_v12 = vshll.u32 %v3015_v21, 16 }
  0x3e   : > { %v591_v23 = vshrl.u32 %v3015_v21, 16  ;;  %v499_v13 = vrot.slane %v498_v36, 4  ;;  %v503_v8 = vrot.slane %v501_v51, 5  ;;  %v546_v47 = vor.u32 %v545_v9, %v541_v45  ;;  %258 = vst.msk [vmem:[#allocation2 + $0x10] sm:$0xf] %vm253_vm5, %v2802_v37 }
  0x3f   : > { %v513_v28 = vrot.slane %v512_v40, 4  ;;  %v3036_v30 = vsel %vm2793_vm2, %v523_v55, %v527_v59  ;;  %v563_v40 = vshll.u32 %v3022_v34, 16  ;;  %v578_v36 = vshrl.u32 %v3032_v58, 16  ;;  %254 = vst.msk [vmem:[#allocation2] sm:$0xf] %vm253_vm5, %v2766_v2 }
  0x40   : > { %4469 = vst [vmem:[#allocation35_spill] sm:$0xff] %v3036_v30  ;;  %v581_v51 = vshll.u32 %v3032_v58, 16  ;;  %v551_v9 = vrot.slane %v549_v44, 5  ;;  %v629_v44 = vshll.u32 %v3059_v38, 16 }
  0x41   : > { %v565_v59 = vrot.slane %v563_v40, 5  ;;  %v626_v40 = vshrl.u32 %v3059_v38, 16  ;;  %255 = vst.msk [vmem:[#allocation2 + $0x4] sm:$0xf] %vm253_vm5, %v2772_v6 }
  0x42   : > { %256 = vst.msk [vmem:[#allocation2 + $0x8] sm:$0xf] %vm253_vm5, %v2760_v0 }
  0x43   : > { %705 = vrot.lane.b32.xlu1 %v2994_v18, %s2710_s21  ;;  %v556_v18 = vrot.slane %v554_v20, 4  ;;  %v535_v20 = vrot.slane %v533_v54, 5  ;;  %v593_v54 = vrot.slane %v591_v23, 4  ;;  %v547_v23 = vrot.slane %v546_v47, 4  ;;  %257 = vst.msk [vmem:[#allocation2 + $0xc] sm:$0xf] %vm253_vm5, %v2763_v1 }
  0x44   : > { %703 = vrot.lane.b32.xlu0 %v3003_v35, %s2710_s21  ;;  %701 = vrot.lane.b32.xlu2 %v3012_v50, %s2710_s21  ;;  %v532_v35 = vrot.slane %v530_v60, 4  ;;  %v3042_v50 = vsel %vm2793_vm2, %v513_v28, %v517_v49  ;;  %v589_v60 = vrot.slane %v587_v12, 5  ;;  %v567_v49 = vshrl.u32 %v3022_v34, 16  ;;  %259 = vst.msk [vmem:[#allocation2 + $0x14] sm:$0xf] %vm253_vm5, %v2813_v42 }
  0x45   : > { %v560_v15 = vor.u32 %v559_v41, %v556_v18  ;;  %4470 = vst [vmem:[#allocation36_spill] sm:$0xff] %v3042_v50  ;;  %v3050_v41 = vsel %vm2793_vm2, %v499_v13, %v503_v8  ;;  %v3053_v18 = vld [vmem:[%s2757_s20 + $0x98] sm:$0x1]  ;;  %v580_v12 = vrot.slane %v578_v36, 4  ;;  %v3065_v8 = vld [vmem:[%s2757_s20 + $0xa0] sm:$0xf] }
  0x46   : > { %4471 = vst [vmem:[#allocation37_spill] sm:$0xff] %v3050_v41  ;;  %v536_v28 = vor.u32 %v535_v20, %v532_v35  ;;  %v594_v13 = vor.u32 %v593_v54, %v589_v60  ;;  %v597_v35 = vshll.u32 %v3053_v18, 16  ;;  %v3077_v36 = vld [vmem:[%s2757_s20 + $0x9c] sm:$0xf] }
  0x47   : > { %4472 = vst [vmem:[#allocation38_spill] sm:$0xff] %v3053_v18  ;;  %v561_v55 = vrot.slane %v560_v15, 4  ;;  %v569_v15 = vrot.slane %v567_v49, 4  ;;  %v615_v49 = vshrl.u32 %v3065_v8, 16 }
  0x48   : > { %4473 = vst [vmem:[#allocation39_spill] sm:$0xff] %v3065_v8  ;;  %v537_v20 = vrot.slane %v536_v28, 4  ;;  %v611_v28 = vshll.u32 %v3065_v8, 16 }
  0x49   : > { %v3072_v47 = vsel %vm2793_vm2, %v561_v55, %v565_v59  ;;  %4476 = vst [vmem:[#allocation42_spill] sm:$0xff] %v3077_v36  ;;  %v599_v55 = vrot.slane %v597_v35, 5  ;;  %v631_v35 = vrot.slane %v629_v44, 5  ;;  %v617_v48 = vrot.slane %v615_v49, 4 }
  0x4a   : > { %4475 = vst [vmem:[#allocation41_spill] sm:$0xff] %v3072_v47  ;;  %v3090_v18 = vsel %vm2793_vm2, %v537_v20, %v541_v45  ;;  %v3103_v45 = vld [vmem:[%s2757_s20 + $0xb8] sm:$0xf] }
  0x4b   : > { %711 = vrot.lane.b32.xlu1 %v3036_v30, %s2710_s21  ;;  %v583_v30 = vrot.slane %v581_v51, 5  ;;  %v3081_v51 = vsel %vm2793_vm2, %v547_v23, %v551_v9  ;;  %4478 = vst [vmem:[#allocation44_spill] sm:$0xff] %v3090_v18  ;;  %v3093_v23 = vld [vmem:[%s2757_s20 + $0xac] sm:$0xf]  ;;  %v602_v9 = vshrl.u32 %v3077_v36, 16  ;;  %v659_v49 = vshll.u32 %v3103_v45, 16 }
  0x4c   : > { %709 = vrot.lane.b32.xlu0 %v3042_v50, %s2710_s21  ;;  %707 = vrot.lane.b32.xlu2 %v3050_v41, %s2710_s21  ;;  %v3068_v50 = vld [vmem:[%s2757_s20 + $0x8c] sm:$0x1]  ;;  %4477 = vst [vmem:[#allocation43_spill] sm:$0xff] %v3081_v51  ;;  %v595_v41 = vrot.slane %v594_v13, 4  ;;  %v628_v13 = vrot.slane %v626_v40, 4  ;;  %v663_v62 = vshrl.u32 %v3103_v45, 16 }
  0x4d   : > { %4474 = vst [vmem:[#allocation40_spill] sm:$0xff] %v3068_v50  ;;  %v584_v54 = vor.u32 %v583_v30, %v580_v12  ;;  %v573_v57 = vshll.u32 %v3068_v50, 16  ;;  %v570_v30 = vor.u32 %v569_v15, %v565_v59  ;;  %v605_v12 = vshll.u32 %v3077_v36, 16  ;;  %v3113_v15 = vld [vmem:[%s2757_s20 + $0xb4] sm:$0xf] }
  0x4e   : > { %v613_v50 = vrot.slane %v611_v28, 5  ;;  %4480 = vst [vmem:[#allocation46_spill] sm:$0xff] %v3103_v45  ;;  %v3107_v20 = vsel %vm2793_vm2, %v595_v41, %v599_v55  ;;  %v635_v59 = vshll.u32 %v3093_v23, 16  ;;  %v621_v28 = vshll.u32 %v3100_v25, 16 }
  0x4f   : > { %4481 = vst [vmem:[#allocation47_spill] sm:$0xff] %v3107_v20  ;;  %v571_v40 = vrot.slane %v570_v30, 4  ;;  %v575_v44 = vrot.slane %v573_v57, 5  ;;  %v607_v52 = vrot.slane %v605_v12, 5  ;;  %v653_v30 = vshll.u32 %v3113_v15, 16 }
  0x50   : > { %v618_v55 = vor.u32 %v617_v48, %v613_v50  ;;  %v639_v12 = vshrl.u32 %v3093_v23, 16  ;;  %v637_v48 = vrot.slane %v635_v59, 5  ;;  %v623_v25 = vrot.slane %v621_v28, 5  ;;  %260 = vst.msk [vmem:[#allocation2 + $0x18] sm:$0xf] %vm253_vm5, %v2799_v31 }
  0x51   : > { %v3128_v57 = vsel %vm2793_vm2, %v571_v40, %v575_v44  ;;  %v655_v45 = vrot.slane %v653_v30, 5  ;;  %v669_v59 = vshll.u32 %v3134_v39, 16  ;;  %261 = vst.msk [vmem:[#allocation2 + $0x1c] sm:$0xf] %vm253_vm5, %v2787_v22 }
  0x52   : > { %262 = vst.msk [vmem:[#allocation2 + $0x20] sm:$0xf] %vm253_vm5, %v2866_v29 }
  0x53   : > { %717 = vrot.lane.b32.xlu1 %v3072_v47, %s2710_s21  ;;  %v585_v47 = vrot.slane %v584_v54, 4  ;;  %v632_v54 = vor.u32 %v631_v35, %v628_v13  ;;  %v665_v13 = vrot.slane %v663_v62, 4  ;;  %v619_v35 = vrot.slane %v618_v55, 4  ;;  %263 = vst.msk [vmem:[#allocation2 + $0x24] sm:$0xf] %vm253_vm5, %v2831_v56 }
  0x54   : > { %715 = vrot.lane.b32.xlu0 %v3081_v51, %s2710_s21  ;;  %713 = vrot.lane.b32.xlu2 %v3090_v18, %s2710_s21  ;;  %v604_v51 = vrot.slane %v602_v9, 4  ;;  %v650_v18 = vshrl.u32 %v3113_v15, 16  ;;  %264 = vst.msk [vmem:[#allocation2 + $0x28] sm:$0xf] %vm253_vm5, %v2827_v53 }
  0x55   : > { %v3120_v41 = vsel %vm2793_vm2, %v585_v47, %v589_v60  ;;  %v633_v60 = vrot.slane %v632_v54, 4  ;;  %v661_v47 = vrot.slane %v659_v49, 5  ;;  %v3144_v54 = vld [vmem:[%s2757_s20 + $0xb0] sm:$0x1]  ;;  %v3148_v62 = vsel %vm2793_vm2, %v619_v35, %v623_v25  ;;  %265 = vst.msk [vmem:[#allocation2 + $0x2c] sm:$0xf] %vm253_vm5, %v2856_v19 }
  0x56   : > { %4482 = vst [vmem:[#allocation48_spill] sm:$0xff] %v3120_v41  ;;  %v608_v9 = vor.u32 %v607_v52, %v604_v51  ;;  %v641_v51 = vrot.slane %v639_v12, 4  ;;  %v645_v55 = vshll.u32 %v3144_v54, 16  ;;  %v862_v35 = vrot.slane %v2763_v1, 5 }
  0x57   : > { %v3140_v40 = vsel %vm2793_vm2, %v633_v60, %v637_v48  ;;  %v666_v44 = vor.u32 %v665_v13, %v661_v47  ;;  %4483 = vst [vmem:[#allocation49_spill] sm:$0xff] %v3148_v62  ;;  %v855_v60 = vrot.slane %v2772_v6, 5  ;;  %v2548_v13 = vrot.slane %v2760_v0, 9 }
  0x58   : > { %v609_v52 = vrot.slane %v608_v9, 4  ;;  %v642_v49 = vor.u32 %v641_v51, %v637_v48  ;;  %v671_v9 = vrot.slane %v669_v59, 5  ;;  %v858_v51 = vrot.slane %v2783_v17, 5  ;;  %266 = vst.msk [vmem:[#allocation2 + $0x30] sm:$0xf] %vm253_vm5, %v2873_v33 }
  0x59   : > { %v667_v30 = vrot.slane %v666_v44, 4  ;;  %v2547_v44 = vrot.slane %v2766_v2, 9  ;;  %v3196_v59 = vsel %vm3180_vm6, %v2548_v13, %v862_v35  ;;  %v869_v17 = vrot.slane %v2813_v42, 5  ;;  %267 = vst.msk [vmem:[#allocation2 + $0x34] sm:$0xf] %vm253_vm5, %v2852_v16 }
  0x5a   : > { %v3154_v28 = vsel %vm2793_vm2, %v609_v52, %v613_v50  ;;  %v643_v25 = vrot.slane %v642_v49, 4  ;;  %v857_v52 = vrot.slane %v855_v60, 4  ;;  %v872_v49 = vrot.slane %v2843_v4, 5  ;;  %268 = vst.msk [vmem:[#allocation2 + $0x38] sm:$0xf] %vm253_vm5, %v2921_v26 }
  0x5b   : > { %723 = vrot.lane.b32.xlu1 %v3107_v20, %s2710_s21  ;;  %v652_v20 = vrot.slane %v650_v18, 4  ;;  %4484 = vst [vmem:[#allocation50_spill] sm:$0xff] %v3154_v28  ;;  %v856_v2 = vsel %vm3180_vm6, %v2547_v44, %v855_v60  ;;  %v871_v6 = vrot.slane %v869_v17, 4  ;;  %v883_v60 = vrot.slane %v2831_v56, 5 }
  0x5c   : > { %721 = vrot.lane.b32.xlu0 %v3120_v41, %s2710_s21  ;;  %719 = vrot.lane.b32.xlu2 %v3128_v57, %s2710_s21  ;;  %269 = vst.msk [vmem:[#allocation2 + $0x3c] sm:$0xf] %vm253_vm5, %v2908_v11 }
  0x5d   : > { %v656_v18 = vor.u32 %v655_v45, %v652_v20  ;;  %v647_v45 = vrot.slane %v645_v55, 5  ;;  %v3163_v20 = vsel %vm2793_vm2, %v667_v30, %v671_v9  ;;  %v2549_v55 = vrot.slane %v2802_v37, 9  ;;  %270 = vst.msk [vmem:[#allocation2 + $0x40] sm:$0xf] %vm253_vm5, %v2902_v7 }
  0x5e   : > { %v864_v30 = vrot.slane %v862_v35, 4  ;;  %v865_v9 = vrot.slane %v2778_v10, 5  ;;  %v3228_v4 = vsel %vm3180_vm6, %v871_v6, %v872_v49  ;;  %v879_v35 = vrot.slane %v2820_v46, 5  ;;  %271 = vst.msk [vmem:[#allocation2 + $0x44] sm:$0xf] %vm253_vm5, %v2936_v43 }
  0x5f   : > { %v657_v12 = vrot.slane %v656_v18, 4  ;;  %v3174_v48 = vsel %vm2793_vm2, %v643_v25, %v647_v45  ;;  %v859_v18 = vsel %vm3180_vm6, %v857_v52, %v858_v51  ;;  %v876_v25 = vrot.slane %v2787_v22, 5  ;;  %272 = vst.msk [vmem:[#allocation2 + $0x48] sm:$0xf] %vm253_vm5, %v2957_v63 }
  0x60   : > { %v3245_v10 = vsel %vm3180_vm6, %v864_v30, %v865_v9  ;;  %v2551_v45 = vrot.slane %v2866_v29, 9  ;;  %v2550_v52 = vrot.slane %v2799_v31, 9  ;;  %v890_v46 = vrot.slane %v2856_v19, 5  ;;  %273 = vst.msk [vmem:[#allocation2 + $0x4c] sm:$0xf] %vm253_vm5, %v2947_v61 }
  0x61   : > { %v3167_v50 = vsel %vm2793_vm2, %v657_v12, %v661_v47  ;;  %v3234_v12 = vsel %vm3180_vm6, %v2549_v55, %v869_v17  ;;  %v878_v13 = vrot.slane %v876_v25, 4  ;;  %274 = vst.msk [vmem:[#allocation2 + $0x50] sm:$0xf] %vm253_vm5, %v2999_v32  ;;  %v893_v6 = vrot.slane %v2912_v14, 5 }
  0x62   : > { %v3267_v51 = vsel %vm3180_vm6, %v2551_v45, %v883_v60  ;;  %275 = vst.msk [vmem:[#allocation2 + $0x54] sm:$0xf] %vm253_vm5, %v2986_v5  ;;  %v2552_v49 = vrot.slane %v2827_v53, 9  ;;  %v885_v55 = vrot.slane %v883_v60, 4  ;;  %v886_v14 = vrot.slane %v2863_v24, 5 }
  0x63   : > { %729 = vrot.lane.b32.xlu1 %v3140_v40, %s2710_s21  ;;  %4487 = vst [vmem:[#allocation51_spill] sm:$0xff] %v3267_v51  ;;  %v3274_v17 = vsel %vm3180_vm6, %v878_v13, %v879_v35  ;;  %v897_v45 = vrot.slane %v2852_v16, 5  ;;  %v2554_v60 = vrot.slane %v2921_v26, 9  ;;  %v904_v13 = vrot.slane %v2908_v11, 5  ;;  %v4491_v35 = vld [vmem:[#allocation46_spill] sm:$0xff] }
  0x64   : > { %727 = vrot.lane.b32.xlu0 %v3148_v62, %s2710_s21  ;;  %725 = vrot.lane.b32.xlu2 %v3154_v28, %s2710_s21  ;;  %276 = vst.msk [vmem:[#allocation2 + $0x58] sm:$0xf] %vm253_vm5, %v2981_v3  ;;  %v3323_v24 = vsel %vm3180_vm6, %v885_v55, %v886_v14  ;;  %v911_v14 = vrot.slane %v2936_v43, 5 }
  0x65   : > { %277 = vst.msk [vmem:[#allocation2 + $0x5c] sm:$0xf] %vm253_vm5, %v3022_v34  ;;  %v3341_v55 = vsel %vm3180_vm6, %v2554_v60, %v904_v13  ;;  %v4496_v60 = vld [vmem:[#allocation28_spill] sm:$0xff] }
  0x66   : > { %278 = vst.msk [vmem:[#allocation2 + $0x60] sm:$0xf] %vm253_vm5, %v3032_v58 }
  0x67   : > { %279 = vst.msk [vmem:[#allocation2 + $0x64] sm:$0xf] %vm253_vm5, %v3015_v21 }
  0x68   : > { %280 = vst.msk [vmem:[#allocation2 + $0x68] sm:$0xf] %vm253_vm5, %v3077_v36 }
  0x69   : > { %281 = vst.msk [vmem:[#allocation2 + $0x6c] sm:$0xf] %vm253_vm5, %v3065_v8 }
  0x6a   : > { %282 = vst.msk [vmem:[#allocation2 + $0x70] sm:$0xf] %vm253_vm5, %v3059_v38 }
  0x6b   : > { %735 = vrot.lane.b32.xlu1 %v3163_v20, %s2710_s21  ;;  %283 = vst.msk [vmem:[#allocation2 + $0x74] sm:$0xf] %vm253_vm5, %v3093_v23 }
  0x6c   : > { %733 = vrot.lane.b32.xlu0 %v3167_v50, %s2710_s21  ;;  %731 = vrot.lane.b32.xlu2 %v3174_v48, %s2710_s21  ;;  %4490 = vst [vmem:[#allocation54_spill] sm:$0xff] %v3323_v24 }
  0x6d   : > { %284 = vst.msk [vmem:[#allocation2 + $0x78] sm:$0xf] %vm253_vm5, %v3113_v15 }
  0x6e   : > { %285 = vst.msk [vmem:[#allocation2 + $0x7c] sm:$0xf] %vm253_vm5, %v4491_v35 }
  0x6f   : > { %4493 = vst [vmem:[#allocation46_spill] sm:$0xff] %v3341_v55 }
  0x73   : > { %969 = vrot.lane.b32.xlu1 %v3196_v59, %s2711_s22 }
  0x74   : > { %967 = vrot.lane.b32.xlu0 %v859_v18, %s2711_s22  ;;  %965 = vrot.lane.b32.xlu2 %v856_v2, %s2711_s22  ;;  %v3285_v18 = vsel %vm3180_vm6, %v2550_v52, %v876_v25  ;;  %v892_v2 = vrot.slane %v890_v46, 4  ;;  %v3310_v25 = vsel %vm3180_vm6, %v2552_v49, %v890_v46  ;;  %v899_v46 = vrot.slane %v897_v45, 4 }
  0x75   : > { %4489 = vst [vmem:[#allocation53_spill] sm:$0xff] %v3310_v25  ;;  %v2553_v49 = vrot.slane %v2873_v33, 9 }
  0x76   : > { %v3304_v30 = vsel %vm3180_vm6, %v892_v2, %v893_v6 }
  0x77   : > { %4488 = vst [vmem:[#allocation52_spill] sm:$0xff] %v3304_v30 }
  0x7b   : > { %975 = vrot.lane.b32.xlu1 %v3228_v4, %s2711_s22 }
  0x7c   : > { %973 = vrot.lane.b32.xlu0 %v3234_v12, %s2711_s22  ;;  %971 = vrot.lane.b32.xlu2 %v3245_v10, %s2711_s22 }
  0x7e   : > { %v682_v44 = vpop.permute.xlu2 %681 }
  0x7f   : > { %774 = vst.msk [vmem:[#allocation2 + $0x10] sm:$0xf] %vm769_vm7, %v682_v44  ;;  %v4492_v44 = vld [vmem:[#allocation13_spill] sm:$0xff] }
  0x80   : > { %v900_v2 = vrot.slane %v4492_v44, 5  ;;  %v3354_v44 = vsel %vm3180_vm6, %v2553_v49, %v897_v45  ;;  %v4497_v45 = vld [vmem:[#allocation21_spill] sm:$0xff] }
  0x81   : > { %4495 = vst [vmem:[#allocation55_spill] sm:$0xff] %v3354_v44 }
  0x83   : > { %981 = vrot.lane.b32.xlu1 %v3267_v51, %s2711_s22 }
  0x84   : > { %979 = vrot.lane.b32.xlu0 %v3274_v17, %s2711_s22  ;;  %977 = vrot.lane.b32.xlu2 %v3285_v18, %s2711_s22 }
  0x86   : > { %v684_v9 = vpop.permute.xlu2 %683 }
  0x87   : > { %775 = vst.msk [vmem:[#allocation2 + $0x14] sm:$0xf] %vm769_vm7, %v684_v9  ;;  %v913_v9 = vrot.slane %v911_v14, 4 }
  0x8b   : > { %987 = vrot.lane.b32.xlu1 %v3304_v30, %s2711_s22 }
  0x8c   : > { %985 = vrot.lane.b32.xlu0 %v3310_v25, %s2711_s22  ;;  %983 = vrot.lane.b32.xlu2 %v3323_v24, %s2711_s22  ;;  %v2555_v24 = vrot.slane %v2902_v7, 9 }
  0x8d   : > { %v678_v52 = vpop.permute.xlu1 %677 }
  0x8e   : > { %772 = vst.msk [vmem:[#allocation2 + $0x8] sm:$0xf] %vm769_vm7, %v678_v52  ;;  %v674_v6 = vpop.permute.xlu0 %673  ;;  %v690_v30 = vpop.permute.xlu2 %689  ;;  %v3347_v52 = vsel %vm3180_vm6, %v899_v46, %v900_v2  ;;  %v907_v2 = vrot.slane %v4497_v45, 5 }
  0x8f   : > { %770 = vst.msk [vmem:[#allocation2] sm:$0xf] %vm769_vm7, %v674_v6  ;;  %v914_v6 = vrot.slane %v4496_v60, 5  ;;  %v3371_v60 = vsel %vm3180_vm6, %v2555_v24, %v911_v14 }
  0x90   : > { %4494 = vst [vmem:[#allocation13_spill] sm:$0xff] %v3347_v52 }
  0x91   : > { %778 = vst.msk [vmem:[#allocation2 + $0x20] sm:$0xf] %vm769_vm7, %v690_v30  ;;  %v906_v30 = vrot.slane %v904_v13, 4  ;;  %v3367_v49 = vsel %vm3180_vm6, %v913_v9, %v914_v6  ;;  %v2557_v9 = vrot.slane %v2999_v32, 9  ;;  %v925_v6 = vrot.slane %v2986_v5, 5 }
  0x92   : > { %4498 = vst [vmem:[#allocation28_spill] sm:$0xff] %v3367_v49 }
  0x93   : > { %993 = vrot.lane.b32.xlu1 %v3341_v55, %s2711_s22  ;;  %4499 = vst [vmem:[#allocation21_spill] sm:$0xff] %v3371_v60  ;;  %v3379_v13 = vsel %vm3180_vm6, %v906_v30, %v907_v2  ;;  %v2556_v30 = vrot.slane %v2957_v63, 9  ;;  %v3393_v2 = vsel %vm3180_vm6, %v2557_v9, %v925_v6 }
  0x94   : > { %991 = vrot.lane.b32.xlu0 %v3347_v52, %s2711_s22  ;;  %989 = vrot.lane.b32.xlu2 %v3354_v44, %s2711_s22  ;;  %4500 = vst [vmem:[#allocation56_spill] sm:$0xff] %v3379_v13  ;;  %v2558_v52 = vrot.slane %v2981_v3, 9 }
  0x95   : > { %v680_v51 = vpop.permute.xlu1 %679 }
  0x96   : > { %773 = vst.msk [vmem:[#allocation2 + $0xc] sm:$0xf] %vm769_vm7, %v680_v51  ;;  %v676_v46 = vpop.permute.xlu0 %675  ;;  %v696_v55 = vpop.permute.xlu2 %695  ;;  %v918_v51 = vrot.slane %v2947_v61, 5 }
  0x97   : > { %771 = vst.msk [vmem:[#allocation2 + $0x4] sm:$0xf] %vm769_vm7, %v676_v46  ;;  %v4501_v46 = vld [vmem:[#allocation27_spill] sm:$0xff] }
  0x98   : > { %781 = vst.msk [vmem:[#allocation2 + $0x2c] sm:$0xf] %vm769_vm7, %v696_v55  ;;  %v920_v14 = vrot.slane %v918_v51, 4  ;;  %v921_v45 = vrot.slane %v4501_v46, 5 }
  0x99   : > { %4502 = vst [vmem:[#allocation27_spill] sm:$0xff] %v3393_v2 }
  0x9a   : > { %v3398_v46 = vsel %vm3180_vm6, %v920_v14, %v921_v45 }
  0x9b   : > { %999 = vrot.lane.b32.xlu1 %v3367_v49, %s2711_s22  ;;  %v932_v49 = vrot.slane %v3022_v34, 5  ;;  %4503 = vst [vmem:[#allocation57_spill] sm:$0xff] %v3398_v46 }
  0x9c   : > { %997 = vrot.lane.b32.xlu0 %v3371_v60, %s2711_s22  ;;  %995 = vrot.lane.b32.xlu2 %v3379_v13, %s2711_s22 }
  0x9d   : > { %v688_v24 = vpop.permute.xlu1 %687  ;;  %v934_v9 = vrot.slane %v932_v49, 4 }
  0x9e   : > { %777 = vst.msk [vmem:[#allocation2 + $0x1c] sm:$0xf] %vm769_vm7, %v688_v24  ;;  %v686_v55 = vpop.permute.xlu0 %685  ;;  %v702_v60 = vpop.permute.xlu2 %701  ;;  %v3405_v24 = vsel %vm3180_vm6, %v2556_v30, %v918_v51  ;;  %v4506_v51 = vld [vmem:[#allocation33_spill] sm:$0xff] }
  0x9f   : > { %776 = vst.msk [vmem:[#allocation2 + $0x18] sm:$0xf] %vm769_vm7, %v686_v55  ;;  %v4505_v55 = vld [vmem:[#allocation40_spill] sm:$0xff]  ;;  %v928_v45 = vrot.slane %v4506_v51, 5 }
  0xa0   : > { %784 = vst.msk [vmem:[#allocation2 + $0x38] sm:$0xf] %vm769_vm7, %v702_v60  ;;  %v935_v13 = vrot.slane %v4505_v55, 5  ;;  %v927_v60 = vrot.slane %v925_v6, 4  ;;  %v3422_v55 = vsel %vm3180_vm6, %v2558_v52, %v932_v49 }
  0xa1   : > { %4504 = vst [vmem:[#allocation58_spill] sm:$0xff] %v3405_v24 }
  0xa2   : > { %v3418_v30 = vsel %vm3180_vm6, %v934_v9, %v935_v13  ;;  %4508 = vst [vmem:[#allocation33_spill] sm:$0xff] %v3422_v55  ;;  %v3430_v6 = vsel %vm3180_vm6, %v927_v60, %v928_v45  ;;  %v2560_v13 = vrot.slane %v3077_v36, 9  ;;  %v946_v9 = vrot.slane %v3065_v8, 5 }
  0xa3   : > { %1005 = vrot.lane.b32.xlu1 %v3393_v2, %s2711_s22  ;;  %4507 = vst [vmem:[#allocation40_spill] sm:$0xff] %v3418_v30  ;;  %v2559_v60 = vrot.slane %v3032_v58, 9 }
  0xa4   : > { %1003 = vrot.lane.b32.xlu0 %v3398_v46, %s2711_s22  ;;  %1001 = vrot.lane.b32.xlu2 %v3405_v24, %s2711_s22  ;;  %4509 = vst [vmem:[#allocation59_spill] sm:$0xff] %v3430_v6  ;;  %v3444_v45 = vsel %vm3180_vm6, %v2560_v13, %v946_v9  ;;  %v2561_v24 = vrot.slane %v3059_v38, 9 }
  0xa5   : > { %v694_v44 = vpop.permute.xlu1 %693 }
  0xa6   : > { %780 = vst.msk [vmem:[#allocation2 + $0x28] sm:$0xf] %vm769_vm7, %v694_v44  ;;  %v692_v14 = vpop.permute.xlu0 %691  ;;  %v708_v2 = vpop.permute.xlu2 %707  ;;  %v939_v44 = vrot.slane %v3015_v21, 5 }
  0xa7   : > { %779 = vst.msk [vmem:[#allocation2 + $0x24] sm:$0xf] %vm769_vm7, %v692_v14  ;;  %v4510_v14 = vld [vmem:[#allocation38_spill] sm:$0xff] }
  0xa8   : > { %787 = vst.msk [vmem:[#allocation2 + $0x44] sm:$0xf] %vm769_vm7, %v708_v2  ;;  %v941_v49 = vrot.slane %v939_v44, 4  ;;  %v942_v51 = vrot.slane %v4510_v14, 5 }
  0xa9   : > { %4511 = vst [vmem:[#allocation38_spill] sm:$0xff] %v3444_v45 }
  0xaa   : > { %v3449_v14 = vsel %vm3180_vm6, %v941_v49, %v942_v51 }
  0xab   : > { %1011 = vrot.lane.b32.xlu1 %v3418_v30, %s2711_s22  ;;  %v953_v30 = vrot.slane %v3093_v23, 5 }
  0xac   : > { %1009 = vrot.lane.b32.xlu0 %v3422_v55, %s2711_s22  ;;  %1007 = vrot.lane.b32.xlu2 %v3430_v6, %s2711_s22 }
  0xad   : > { %v700_v52 = vpop.permute.xlu1 %699  ;;  %v955_v13 = vrot.slane %v953_v30, 4 }
  0xae   : > { %783 = vst.msk [vmem:[#allocation2 + $0x34] sm:$0xf] %vm769_vm7, %v700_v52  ;;  %v698_v2 = vpop.permute.xlu0 %697  ;;  %v714_v55 = vpop.permute.xlu2 %713  ;;  %v3456_v52 = vsel %vm3180_vm6, %v2559_v60, %v939_v44  ;;  %v4512_v44 = vld [vmem:[#allocation45_spill] sm:$0xff] }
  0xaf   : > { %782 = vst.msk [vmem:[#allocation2 + $0x30] sm:$0xf] %vm769_vm7, %v698_v2  ;;  %v956_v2 = vrot.slane %v3144_v54, 5  ;;  %v949_v51 = vrot.slane %v4512_v44, 5  ;;  %v3473_v54 = vsel %vm3180_vm6, %v2561_v24, %v953_v30  ;;  %v2562_v30 = vrot.slane %v3113_v15, 9 }
  0xb0   : > { %790 = vst.msk [vmem:[#allocation2 + $0x50] sm:$0xf] %vm769_vm7, %v714_v55  ;;  %v948_v55 = vrot.slane %v946_v9, 4 }
  0xb1   : > { %v3469_v60 = vsel %vm3180_vm6, %v955_v13, %v956_v2 }
  0xb2   : > { %v3481_v9 = vsel %vm3180_vm6, %v948_v55, %v949_v51 }
  0xb3   : > { %1017 = vrot.lane.b32.xlu1 %v3444_v45, %s2711_s22  ;;  %4513 = vst [vmem:[#allocation45_spill] sm:$0xff] %v3481_v9 }
  0xb4   : > { %1015 = vrot.lane.b32.xlu0 %v3449_v14, %s2711_s22  ;;  %1013 = vrot.lane.b32.xlu2 %v3456_v52, %s2711_s22 }
  0xb5   : > { %v706_v6 = vpop.permute.xlu1 %705 }
  0xb6   : > { %786 = vst.msk [vmem:[#allocation2 + $0x40] sm:$0xf] %vm769_vm7, %v706_v6  ;;  %v704_v49 = vpop.permute.xlu0 %703  ;;  %v720_v45 = vpop.permute.xlu2 %719  ;;  %v960_v6 = vrot.slane %v4491_v35, 5 }
  0xb7   : > { %785 = vst.msk [vmem:[#allocation2 + $0x3c] sm:$0xf] %vm769_vm7, %v704_v49  ;;  %v963_v49 = vrot.slane %v3134_v39, 5 }
  0xb8   : > { %793 = vst.msk [vmem:[#allocation2 + $0x5c] sm:$0xf] %vm769_vm7, %v720_v45  ;;  %v962_v2 = vrot.slane %v960_v6, 4  ;;  %v3500_v39 = vsel %vm3180_vm6, %v2562_v30, %v960_v6 }
  0xba   : > { %v3493_v55 = vsel %vm3180_vm6, %v962_v2, %v963_v49 }
  0xbb   : > { %1023 = vrot.lane.b32.xlu1 %v3469_v60, %s2711_s22 }
  0xbc   : > { %1021 = vrot.lane.b32.xlu0 %v3473_v54, %s2711_s22  ;;  %1019 = vrot.lane.b32.xlu2 %v3481_v9, %s2711_s22 }
  0xbd   : > { %v712_v13 = vpop.permute.xlu1 %711 }
  0xbe   : > { %789 = vst.msk [vmem:[#allocation2 + $0x4c] sm:$0xf] %vm769_vm7, %v712_v13  ;;  %v710_v24 = vpop.permute.xlu0 %709  ;;  %v726_v45 = vpop.permute.xlu2 %725 }
  0xbf   : > { %788 = vst.msk [vmem:[#allocation2 + $0x48] sm:$0xf] %vm769_vm7, %v710_v24 }
  0xc0   : > { %796 = vst.msk [vmem:[#allocation2 + $0x68] sm:$0xf] %vm769_vm7, %v726_v45 }
  0xc3   : > { %1096 = vrot.lane.b32.xlu1 %v2760_v0, %s2712_s23 }
  0xc4   : > { %1027 = vrot.lane.b32.xlu0 %v3493_v55, %s2711_s22  ;;  %1025 = vrot.lane.b32.xlu2 %v3500_v39, %s2711_s22 }
  0xc5   : > { %v718_v44 = vpop.permute.xlu1 %717 }
  0xc6   : > { %792 = vst.msk [vmem:[#allocation2 + $0x58] sm:$0xf] %vm769_vm7, %v718_v44  ;;  %v716_v51 = vpop.permute.xlu0 %715  ;;  %v732_v13 = vpop.permute.xlu2 %731 }
  0xc7   : > { %791 = vst.msk [vmem:[#allocation2 + $0x54] sm:$0xf] %vm769_vm7, %v716_v51 }
  0xc8   : > { %799 = vst.msk [vmem:[#allocation2 + $0x74] sm:$0xf] %vm769_vm7, %v732_v13 }
  0xcb   : > { %1102 = vrot.lane.b32.xlu1 %v2813_v42, %s2712_s23 }
  0xcc   : > { %1100 = vrot.lane.b32.xlu0 %v2802_v37, %s2712_s23  ;;  %1098 = vrot.lane.b32.xlu2 %v2763_v1, %s2712_s23 }
  0xcd   : > { %v724_v0 = vpop.permute.xlu1 %723 }
  0xce   : > { %795 = vst.msk [vmem:[#allocation2 + $0x64] sm:$0xf] %vm769_vm7, %v724_v0  ;;  %v722_v6 = vpop.permute.xlu0 %721  ;;  %v966_v2 = vpop.permute.xlu2 %965 }
  0xcf   : > { %794 = vst.msk [vmem:[#allocation2 + $0x60] sm:$0xf] %vm769_vm7, %v722_v6 }
  0xd0   : > { %1062 = vst.msk [vmem:[#allocation2] sm:$0xf] %vm1061_vm8, %v966_v2 }
  0xd3   : > { %1108 = vrot.lane.b32.xlu1 %v2866_v29, %s2712_s23 }
  0xd4   : > { %1106 = vrot.lane.b32.xlu0 %v2787_v22, %s2712_s23  ;;  %1104 = vrot.lane.b32.xlu2 %v2799_v31, %s2712_s23 }
  0xd5   : > { %v730_v49 = vpop.permute.xlu1 %729 }
  0xd6   : > { %798 = vst.msk [vmem:[#allocation2 + $0x70] sm:$0xf] %vm769_vm7, %v730_v49  ;;  %v728_v24 = vpop.permute.xlu0 %727  ;;  %v972_v1 = vpop.permute.xlu2 %971 }
  0xd7   : > { %797 = vst.msk [vmem:[#allocation2 + $0x6c] sm:$0xf] %vm769_vm7, %v728_v24 }
  0xd8   : > { %1065 = vst.msk [vmem:[#allocation2 + $0xc] sm:$0xf] %vm1061_vm8, %v972_v1 }
  0xdb   : > { %1114 = vrot.lane.b32.xlu1 %v2856_v19, %s2712_s23  ;;  %v4521_v19 = vld [vmem:[#allocation10_spill] sm:$0xff] }
  0xdc   : > { %1112 = vrot.lane.b32.xlu0 %v2827_v53, %s2712_s23  ;;  %1110 = vrot.lane.b32.xlu2 %v2831_v56, %s2712_s23 }
  0xdd   : > { %v736_v30 = vpop.permute.xlu1 %735 }
  0xde   : > { %801 = vst.msk [vmem:[#allocation2 + $0x7c] sm:$0xf] %vm769_vm7, %v736_v30  ;;  %v734_v45 = vpop.permute.xlu0 %733  ;;  %v978_v44 = vpop.permute.xlu2 %977 }
  0xdf   : > { %800 = vst.msk [vmem:[#allocation2 + $0x78] sm:$0xf] %vm769_vm7, %v734_v45 }
  0xe0   : > { %1068 = vst.msk [vmem:[#allocation2 + $0x18] sm:$0xf] %vm1061_vm8, %v978_v44 }
  0xe3   : > { %1120 = vrot.lane.b32.xlu1 %v2921_v26, %s2712_s23 }
  0xe4   : > { %1118 = vrot.lane.b32.xlu0 %v2852_v16, %s2712_s23  ;;  %1116 = vrot.lane.b32.xlu2 %v2873_v33, %s2712_s23 }
  0xe5   : > { %v970_v51 = vpop.permute.xlu1 %969 }
  0xe6   : > { %1064 = vst.msk [vmem:[#allocation2 + $0x8] sm:$0xf] %vm1061_vm8, %v970_v51  ;;  %v968_v13 = vpop.permute.xlu0 %967  ;;  %v984_v0 = vpop.permute.xlu2 %983 }
  0xe7   : > { %1063 = vst.msk [vmem:[#allocation2 + $0x4] sm:$0xf] %vm1061_vm8, %v968_v13 }
  0xe8   : > { %1071 = vst.msk [vmem:[#allocation2 + $0x24] sm:$0xf] %vm1061_vm8, %v984_v0 }
  0xeb   : > { %1126 = vrot.lane.b32.xlu1 %v2936_v43, %s2712_s23 }
  0xec   : > { %1124 = vrot.lane.b32.xlu0 %v2902_v7, %s2712_s23  ;;  %1122 = vrot.lane.b32.xlu2 %v2908_v11, %s2712_s23 }
  0xed   : > { %v976_v6 = vpop.permute.xlu1 %975 }
  0xee   : > { %1067 = vst.msk [vmem:[#allocation2 + $0x14] sm:$0xf] %vm1061_vm8, %v976_v6  ;;  %v974_v2 = vpop.permute.xlu0 %973  ;;  %v990_v49 = vpop.permute.xlu2 %989 }
  0xef   : > { %1066 = vst.msk [vmem:[#allocation2 + $0x10] sm:$0xf] %vm1061_vm8, %v974_v2 }
  0xf0   : > { %1074 = vst.msk [vmem:[#allocation2 + $0x30] sm:$0xf] %vm1061_vm8, %v990_v49 }
  0xf3   : > { %1132 = vrot.lane.b32.xlu1 %v2999_v32, %s2712_s23 }
  0xf4   : > { %1130 = vrot.lane.b32.xlu0 %v2947_v61, %s2712_s23  ;;  %1128 = vrot.lane.b32.xlu2 %v2957_v63, %s2712_s23 }
  0xf5   : > { %v982_v24 = vpop.permute.xlu1 %981 }
  0xf6   : > { %1070 = vst.msk [vmem:[#allocation2 + $0x20] sm:$0xf] %vm1061_vm8, %v982_v24  ;;  %v980_v1 = vpop.permute.xlu0 %979  ;;  %v996_v30 = vpop.permute.xlu2 %995  ;;  %v3590_v24 = vld [vmem:[%s2757_s20 + $0xc0] sm:$0xf] }
  0xf7   : > { %1069 = vst.msk [vmem:[#allocation2 + $0x1c] sm:$0xf] %vm1061_vm8, %v980_v1 }
  0xf8   : > { %1077 = vst.msk [vmem:[#allocation2 + $0x3c] sm:$0xf] %vm1061_vm8, %v996_v30 }
  0xfb   : > { %1138 = vrot.lane.b32.xlu1 %v3022_v34, %s2712_s23 }
  0xfc   : > { %1136 = vrot.lane.b32.xlu0 %v2981_v3, %s2712_s23  ;;  %1134 = vrot.lane.b32.xlu2 %v2986_v5, %s2712_s23 }
  0xfd   : > { %v988_v45 = vpop.permute.xlu1 %987 }
  0xfe   : > { %1073 = vst.msk [vmem:[#allocation2 + $0x2c] sm:$0xf] %vm1061_vm8, %v988_v45  ;;  %v986_v44 = vpop.permute.xlu0 %985  ;;  %v1002_v51 = vpop.permute.xlu2 %1001 }
  0xff   : > { %1072 = vst.msk [vmem:[#allocation2 + $0x28] sm:$0xf] %vm1061_vm8, %v986_v44 }
 0x100   : > { %1080 = vst.msk [vmem:[#allocation2 + $0x48] sm:$0xf] %vm1061_vm8, %v1002_v51  ;;  %v4514_v51 = vld [vmem:[#allocation7_spill] sm:$0xff] }
 0x103   : > { %1144 = vrot.lane.b32.xlu1 %v3077_v36, %s2712_s23 }
 0x104   : > { %1142 = vrot.lane.b32.xlu0 %v3015_v21, %s2712_s23  ;;  %1140 = vrot.lane.b32.xlu2 %v3032_v58, %s2712_s23  ;;  %v1229_v21 = vshll.u32 %v3590_v24, 16 }
 0x105   : > { %v994_v13 = vpop.permute.xlu1 %993 }
 0x106   : > { %1076 = vst.msk [vmem:[#allocation2 + $0x38] sm:$0xf] %vm1061_vm8, %v994_v13  ;;  %v992_v0 = vpop.permute.xlu0 %991  ;;  %v1008_v6 = vpop.permute.xlu2 %1007  ;;  %v3605_v13 = vld [vmem:[%s2757_s20 + $0xc4] sm:$0xf] }
 0x107   : > { %1075 = vst.msk [vmem:[#allocation2 + $0x34] sm:$0xf] %vm1061_vm8, %v992_v0  ;;  %v4515_v0 = vld [vmem:[#allocation6_spill] sm:$0xff] }
 0x108   : > { %1083 = vst.msk [vmem:[#allocation2 + $0x54] sm:$0xf] %vm1061_vm8, %v1008_v6 }
 0x10b   : > { %1150 = vrot.lane.b32.xlu1 %v3093_v23, %s2712_s23 }
 0x10c   : > { %1148 = vrot.lane.b32.xlu0 %v3059_v38, %s2712_s23  ;;  %1146 = vrot.lane.b32.xlu2 %v3065_v8, %s2712_s23 }
 0x10d   : > { %v1000_v2 = vpop.permute.xlu1 %999 }
 0x10e   : > { %1079 = vst.msk [vmem:[#allocation2 + $0x44] sm:$0xf] %vm1061_vm8, %v1000_v2  ;;  %v998_v49 = vpop.permute.xlu0 %997  ;;  %v1014_v1 = vpop.permute.xlu2 %1013 }
 0x10f   : > { %1078 = vst.msk [vmem:[#allocation2 + $0x40] sm:$0xf] %vm1061_vm8, %v998_v49 }
 0x110   : > { %1086 = vst.msk [vmem:[#allocation2 + $0x60] sm:$0xf] %vm1061_vm8, %v1014_v1  ;;  %v4516_v1 = vld [vmem:[#allocation11_spill] sm:$0xff] }
 0x113   : > { %1156 = vrot.lane.b32.xlu1 %v3590_v24, %s2712_s23 }
 0x114   : > { %1154 = vrot.lane.b32.xlu0 %v4491_v35, %s2712_s23  ;;  %1152 = vrot.lane.b32.xlu2 %v3113_v15, %s2712_s23 }
 0x115   : > { %v1006_v30 = vpop.permute.xlu1 %1005 }
 0x116   : > { %1082 = vst.msk [vmem:[#allocation2 + $0x50] sm:$0xf] %vm1061_vm8, %v1006_v30  ;;  %v1004_v45 = vpop.permute.xlu0 %1003  ;;  %v1020_v44 = vpop.permute.xlu2 %1019  ;;  %v4517_v30 = vld [vmem:[#allocation12_spill] sm:$0xff] }
 0x117   : > { %1081 = vst.msk [vmem:[#allocation2 + $0x4c] sm:$0xf] %vm1061_vm8, %v1004_v45 }
 0x118   : > { %1089 = vst.msk [vmem:[#allocation2 + $0x6c] sm:$0xf] %vm1061_vm8, %v1020_v44 }
 0x11b   : > { %1251 = vrot.lane.b32.xlu1 %v4514_v51, %s2713_s24  ;;  %v4518_v51 = vld [vmem:[#allocation9_spill] sm:$0xff] }
 0x11c   : > { %1249 = vrot.lane.b32.xlu0 %v4515_v0, %s2713_s24  ;;  %1158 = vrot.lane.b32.xlu2 %v3605_v13, %s2712_s23 }
 0x11d   : > { %v1012_v6 = vpop.permute.xlu1 %1011 }
 0x11e   : > { %1085 = vst.msk [vmem:[#allocation2 + $0x5c] sm:$0xf] %vm1061_vm8, %v1012_v6  ;;  %v1010_v2 = vpop.permute.xlu0 %1009  ;;  %v1026_v49 = vpop.permute.xlu2 %1025  ;;  %v4519_v6 = vld [vmem:[#allocation18_spill] sm:$0xff] }
 0x11f   : > { %1084 = vst.msk [vmem:[#allocation2 + $0x58] sm:$0xf] %vm1061_vm8, %v1010_v2  ;;  %v4520_v2 = vld [vmem:[#allocation19_spill] sm:$0xff] }
 0x120   : > { %1092 = vst.msk [vmem:[#allocation2 + $0x78] sm:$0xf] %vm1061_vm8, %v1026_v49 }
 0x123   : > { %1257 = vrot.lane.b32.xlu1 %v4516_v1, %s2713_s24 }
 0x124   : > { %1255 = vrot.lane.b32.xlu0 %v4517_v30, %s2713_s24  ;;  %1253 = vrot.lane.b32.xlu2 %v4518_v51, %s2713_s24 }
 0x125   : > { %v1018_v45 = vpop.permute.xlu1 %1017 }
 0x126   : > { %1088 = vst.msk [vmem:[#allocation2 + $0x68] sm:$0xf] %vm1061_vm8, %v1018_v45  ;;  %v1016_v44 = vpop.permute.xlu0 %1015  ;;  %v1099_v0 = vpop.permute.xlu2 %1098 }
 0x127   : > { %1087 = vst.msk [vmem:[#allocation2 + $0x64] sm:$0xf] %vm1061_vm8, %v1016_v44  ;;  %v4522_v44 = vld [vmem:[#allocation25_spill] sm:$0xff] }
 0x128   : > { %1194 = vst.msk [vmem:[#allocation2 + $0x4] sm:$0xf] %vm1192_vm9, %v1099_v0  ;;  %v4523_v0 = vld [vmem:[#allocation26_spill] sm:$0xff] }
 0x12b   : > { %1263 = vrot.lane.b32.xlu1 %v4519_v6, %s2713_s24 }
 0x12c   : > { %1261 = vrot.lane.b32.xlu0 %v4520_v2, %s2713_s24  ;;  %1259 = vrot.lane.b32.xlu2 %v4521_v19, %s2713_s24  ;;  %v1231_v19 = vrot.slane %v1229_v21, 5 }
 0x12d   : > { %v1024_v49 = vpop.permute.xlu1 %1023 }
 0x12e   : > { %1091 = vst.msk [vmem:[#allocation2 + $0x74] sm:$0xf] %vm1061_vm8, %v1024_v49  ;;  %v1022_v45 = vpop.permute.xlu0 %1021  ;;  %v1105_v63 = vpop.permute.xlu2 %1104  ;;  %v4524_v49 = vld [vmem:[#allocation16_spill] sm:$0xff] }
 0x12f   : > { %1090 = vst.msk [vmem:[#allocation2 + $0x70] sm:$0xf] %vm1061_vm8, %v1022_v45  ;;  %v4526_v45 = vld [vmem:[#allocation31_spill] sm:$0xff] }
 0x130   : > { %1197 = vst.msk [vmem:[#allocation2 + $0x10] sm:$0xf] %vm1192_vm9, %v1105_v63  ;;  %v4525_v63 = vld [vmem:[#allocation30_spill] sm:$0xff] }
 0x133   : > { %1269 = vrot.lane.b32.xlu1 %v4522_v44, %s2713_s24 }
 0x134   : > { %1267 = vrot.lane.b32.xlu0 %v4523_v0, %s2713_s24  ;;  %1265 = vrot.lane.b32.xlu2 %v4524_v49, %s2713_s24 }
 0x135   : > { %v1097_v61 = vpop.permute.xlu1 %1096 }
 0x136   : > { %1193 = vst.msk [vmem:[#allocation2] sm:$0xf] %vm1192_vm9, %v1097_v61  ;;  %v1028_v36 = vpop.permute.xlu0 %1027  ;;  %v1111_v8 = vpop.permute.xlu2 %1110  ;;  %v4527_v61 = vld [vmem:[#allocation23_spill] sm:$0xff] }
 0x137   : > { %1093 = vst.msk [vmem:[#allocation2 + $0x7c] sm:$0xf] %vm1061_vm8, %v1028_v36  ;;  %v4529_v36 = vld [vmem:[#allocation37_spill] sm:$0xff] }
 0x138   : > { %1200 = vst.msk [vmem:[#allocation2 + $0x1c] sm:$0xf] %vm1192_vm9, %v1111_v8  ;;  %v4528_v8 = vld [vmem:[#allocation36_spill] sm:$0xff] }
 0x13b   : > { %1275 = vrot.lane.b32.xlu1 %v4525_v63, %s2713_s24  ;;  %v3686_v63 = vld [vmem:[%s2757_s20 + $0xc8] sm:$0x1] }
 0x13c   : > { %1273 = vrot.lane.b32.xlu0 %v4526_v45, %s2713_s24  ;;  %1271 = vrot.lane.b32.xlu2 %v4527_v61, %s2713_s24  ;;  %v4535_v45 = vld [vmem:[#allocation47_spill] sm:$0xff] }
 0x13d   : > { %v1103_v43 = vpop.permute.xlu1 %1102 }
 0x13e   : > { %1196 = vst.msk [vmem:[#allocation2 + $0xc] sm:$0xf] %vm1192_vm9, %v1103_v43  ;;  %v1101_v0 = vpop.permute.xlu0 %1100  ;;  %v1117_v49 = vpop.permute.xlu2 %1116  ;;  %v4530_v43 = vld [vmem:[#allocation29_spill] sm:$0xff] }
 0x13f   : > { %1195 = vst.msk [vmem:[#allocation2 + $0x8] sm:$0xf] %vm1192_vm9, %v1101_v0  ;;  %v4531_v0 = vld [vmem:[#allocation43_spill] sm:$0xff] }
 0x140   : > { %1203 = vst.msk [vmem:[#allocation2 + $0x28] sm:$0xf] %vm1192_vm9, %v1117_v49  ;;  %v4532_v49 = vld [vmem:[#allocation44_spill] sm:$0xff] }
 0x143   : > { %1281 = vrot.lane.b32.xlu1 %v4528_v8, %s2713_s24 }
 0x144   : > { %1279 = vrot.lane.b32.xlu0 %v4529_v36, %s2713_s24  ;;  %1277 = vrot.lane.b32.xlu2 %v4530_v43, %s2713_s24 }
 0x145   : > { %v1109_v2 = vpop.permute.xlu1 %1108 }
 0x146   : > { %1199 = vst.msk [vmem:[#allocation2 + $0x18] sm:$0xf] %vm1192_vm9, %v1109_v2  ;;  %v1107_v6 = vpop.permute.xlu0 %1106  ;;  %v1123_v7 = vpop.permute.xlu2 %1122  ;;  %v4533_v2 = vld [vmem:[#allocation35_spill] sm:$0xff] }
 0x147   : > { %1198 = vst.msk [vmem:[#allocation2 + $0x14] sm:$0xf] %vm1192_vm9, %v1107_v6 }
 0x148   : > { %1206 = vst.msk [vmem:[#allocation2 + $0x34] sm:$0xf] %vm1192_vm9, %v1123_v7 }
 0x14b   : > { %1287 = vrot.lane.b32.xlu1 %v4531_v0, %s2713_s24 }
 0x14c   : > { %1285 = vrot.lane.b32.xlu0 %v4532_v49, %s2713_s24  ;;  %1283 = vrot.lane.b32.xlu2 %v4533_v2, %s2713_s24  ;;  %v1235_v2 = vshll.u32 %v3605_v13, 16 }
 0x14d   : > { %v1115_v8 = vpop.permute.xlu1 %1114 }
 0x14e   : > { %1202 = vst.msk [vmem:[#allocation2 + $0x24] sm:$0xf] %vm1192_vm9, %v1115_v8  ;;  %v1113_v36 = vpop.permute.xlu0 %1112  ;;  %v1129_v43 = vpop.permute.xlu2 %1128  ;;  %v4534_v8 = vld [vmem:[#allocation41_spill] sm:$0xff] }
 0x14f   : > { %1201 = vst.msk [vmem:[#allocation2 + $0x20] sm:$0xf] %vm1192_vm9, %v1113_v36 }
 0x150   : > { %1209 = vst.msk [vmem:[#allocation2 + $0x40] sm:$0xf] %vm1192_vm9, %v1129_v43  ;;  %v1239_v43 = vshrl.u32 %v3605_v13, 16 }
 0x152   : > { %v1241_v58 = vrot.slane %v1239_v43, 4 }
 0x153   : > { %1293 = vrot.lane.b32.xlu1 %v3120_v41, %s2713_s24  ;;  %v1226_v41 = vshrl.u32 %v3590_v24, 16 }
 0x154   : > { %1291 = vrot.lane.b32.xlu0 %v3128_v57, %s2713_s24  ;;  %1289 = vrot.lane.b32.xlu2 %v4534_v8, %s2713_s24 }
 0x155   : > { %v1121_v7 = vpop.permute.xlu1 %1120  ;;  %v1228_v1 = vrot.slane %v1226_v41, 4 }
 0x156   : > { %1205 = vst.msk [vmem:[#allocation2 + $0x30] sm:$0xf] %vm1192_vm9, %v1121_v7  ;;  %v1119_v6 = vpop.permute.xlu0 %1118  ;;  %v1135_v36 = vpop.permute.xlu2 %1134  ;;  %v1237_v7 = vrot.slane %v1235_v2, 5 }
 0x157   : > { %1204 = vst.msk [vmem:[#allocation2 + $0x2c] sm:$0xf] %vm1192_vm9, %v1119_v6 }
 0x158   : > { %1212 = vst.msk [vmem:[#allocation2 + $0x4c] sm:$0xf] %vm1192_vm9, %v1135_v36  ;;  %v1242_v26 = vor.u32 %v1241_v58, %v1237_v7 }
 0x15a   : > { %v1243_v21 = vrot.slane %v1242_v26, 4 }
 0x15b   : > { %1299 = vrot.lane.b32.xlu1 %v3148_v62, %s2713_s24  ;;  %v1245_v62 = vshll.u32 %v3686_v63, 16 }
 0x15c   : > { %1297 = vrot.lane.b32.xlu0 %v3154_v28, %s2713_s24  ;;  %1295 = vrot.lane.b32.xlu2 %v4535_v45, %s2713_s24  ;;  %v1232_v28 = vor.u32 %v1231_v19, %v1228_v1 }
 0x15d   : > { %v1127_v6 = vpop.permute.xlu1 %1126  ;;  %v1247_v41 = vrot.slane %v1245_v62, 5 }
 0x15e   : > { %1208 = vst.msk [vmem:[#allocation2 + $0x3c] sm:$0xf] %vm1192_vm9, %v1127_v6  ;;  %v1125_v36 = vpop.permute.xlu0 %1124  ;;  %v1141_v11 = vpop.permute.xlu2 %1140  ;;  %v1233_v43 = vrot.slane %v1232_v28, 4 }
 0x15f   : > { %1207 = vst.msk [vmem:[#allocation2 + $0x38] sm:$0xf] %vm1192_vm9, %v1125_v36  ;;  %v3704_v19 = vsel %vm2793_vm2, %v1243_v21, %v1247_v41  ;;  %v4536_v41 = vld [vmem:[#allocation54_spill] sm:$0xff] }
 0x160   : > { %1215 = vst.msk [vmem:[#allocation2 + $0x58] sm:$0xf] %vm1192_vm9, %v1141_v11  ;;  %v3708_v11 = vsel %vm2793_vm2, %v1233_v43, %v1237_v7 }
 0x163   : > { %1305 = vrot.lane.b32.xlu1 %v3167_v50, %s2713_s24 }
 0x164   : > { %1303 = vrot.lane.b32.xlu0 %v3174_v48, %s2713_s24  ;;  %1301 = vrot.lane.b32.xlu2 %v3140_v40, %s2713_s24 }
 0x165   : > { %v1133_v2 = vpop.permute.xlu1 %1132 }
 0x166   : > { %1211 = vst.msk [vmem:[#allocation2 + $0x48] sm:$0xf] %vm1192_vm9, %v1133_v2  ;;  %v1131_v6 = vpop.permute.xlu0 %1130  ;;  %v1147_v58 = vpop.permute.xlu2 %1146 }
 0x167   : > { %1210 = vst.msk [vmem:[#allocation2 + $0x44] sm:$0xf] %vm1192_vm9, %v1131_v6  ;;  %v4537_v6 = vld [vmem:[#allocation51_spill] sm:$0xff] }
 0x168   : > { %1218 = vst.msk [vmem:[#allocation2 + $0x64] sm:$0xf] %vm1192_vm9, %v1147_v58 }
 0x16b   : > { %1311 = vrot.lane.b32.xlu1 %v3704_v19, %s2713_s24 }
 0x16c   : > { %1309 = vrot.lane.b32.xlu0 %v3708_v11, %s2713_s24  ;;  %1307 = vrot.lane.b32.xlu2 %v3163_v20, %s2713_s24 }
 0x16d   : > { %v1139_v26 = vpop.permute.xlu1 %1138 }
 0x16e   : > { %1214 = vst.msk [vmem:[#allocation2 + $0x54] sm:$0xf] %vm1192_vm9, %v1139_v26  ;;  %v1137_v62 = vpop.permute.xlu0 %1136  ;;  %v1153_v28 = vpop.permute.xlu2 %1152  ;;  %v4538_v26 = vld [vmem:[#allocation13_spill] sm:$0xff] }
 0x16f   : > { %1213 = vst.msk [vmem:[#allocation2 + $0x50] sm:$0xf] %vm1192_vm9, %v1137_v62  ;;  %v4539_v62 = vld [vmem:[#allocation55_spill] sm:$0xff] }
 0x170   : > { %1221 = vst.msk [vmem:[#allocation2 + $0x70] sm:$0xf] %vm1192_vm9, %v1153_v28 }
 0x173   : > { %1390 = vrot.lane.b32.xlu1 %v3234_v12, %s2714_s25 }
 0x174   : > { %1388 = vrot.lane.b32.xlu0 %v3245_v10, %s2714_s25  ;;  %1386 = vrot.lane.b32.xlu2 %v3196_v59, %s2714_s25 }
 0x175   : > { %v1145_v1 = vpop.permute.xlu1 %1144 }
 0x176   : > { %1217 = vst.msk [vmem:[#allocation2 + $0x60] sm:$0xf] %vm1192_vm9, %v1145_v1  ;;  %v1143_v7 = vpop.permute.xlu0 %1142  ;;  %v1159_v36 = vpop.permute.xlu2 %1158 }
 0x177   : > { %1216 = vst.msk [vmem:[#allocation2 + $0x5c] sm:$0xf] %vm1192_vm9, %v1143_v7  ;;  %v4540_v7 = vld [vmem:[#allocation52_spill] sm:$0xff] }
 0x178   : > { %1224 = vst.msk [vmem:[#allocation2 + $0x7c] sm:$0xf] %vm1192_vm9, %v1159_v36 }
 0x17b   : > { %1396 = vrot.lane.b32.xlu1 %v3274_v17, %s2714_s25 }
 0x17c   : > { %1394 = vrot.lane.b32.xlu0 %v3285_v18, %s2714_s25  ;;  %1392 = vrot.lane.b32.xlu2 %v3228_v4, %s2714_s25 }
 0x17d   : > { %v1151_v21 = vpop.permute.xlu1 %1150 }
 0x17e   : > { %1220 = vst.msk [vmem:[#allocation2 + $0x6c] sm:$0xf] %vm1192_vm9, %v1151_v21  ;;  %v1149_v10 = vpop.permute.xlu0 %1148  ;;  %v1254_v59 = vpop.permute.xlu2 %1253  ;;  %v4541_v21 = vld [vmem:[#allocation21_spill] sm:$0xff] }
 0x17f   : > { %1219 = vst.msk [vmem:[#allocation2 + $0x68] sm:$0xf] %vm1192_vm9, %v1149_v10  ;;  %v4542_v10 = vld [vmem:[#allocation56_spill] sm:$0xff] }
 0x180   : > { %1348 = vst.msk [vmem:[#allocation2 + $0x8] sm:$0xf] %vm1345_vm10, %v1254_v59 }
 0x183   : > { %1402 = vrot.lane.b32.xlu1 %v3310_v25, %s2714_s25 }
 0x184   : > { %1400 = vrot.lane.b32.xlu0 %v4536_v41, %s2714_s25  ;;  %1398 = vrot.lane.b32.xlu2 %v4537_v6, %s2714_s25 }
 0x185   : > { %v1157_v2 = vpop.permute.xlu1 %1156 }
 0x186   : > { %1223 = vst.msk [vmem:[#allocation2 + $0x78] sm:$0xf] %vm1192_vm9, %v1157_v2  ;;  %v1155_v43 = vpop.permute.xlu0 %1154  ;;  %v1260_v58 = vpop.permute.xlu2 %1259 }
 0x187   : > { %1222 = vst.msk [vmem:[#allocation2 + $0x74] sm:$0xf] %vm1192_vm9, %v1155_v43  ;;  %v4543_v43 = vld [vmem:[#allocation46_spill] sm:$0xff] }
 0x188   : > { %1351 = vst.msk [vmem:[#allocation2 + $0x14] sm:$0xf] %vm1345_vm10, %v1260_v58 }
 0x18b   : > { %1408 = vrot.lane.b32.xlu1 %v4538_v26, %s2714_s25 }
 0x18c   : > { %1406 = vrot.lane.b32.xlu0 %v4539_v62, %s2714_s25  ;;  %1404 = vrot.lane.b32.xlu2 %v4540_v7, %s2714_s25 }
 0x18d   : > { %v1252_v28 = vpop.permute.xlu1 %1251 }
 0x18e   : > { %1347 = vst.msk [vmem:[#allocation2 + $0x4] sm:$0xf] %vm1345_vm10, %v1252_v28  ;;  %v1250_v1 = vpop.permute.xlu0 %1249  ;;  %v1266_v36 = vpop.permute.xlu2 %1265  ;;  %v4544_v28 = vld [vmem:[#allocation58_spill] sm:$0xff] }
 0x18f   : > { %1346 = vst.msk [vmem:[#allocation2] sm:$0xf] %vm1345_vm10, %v1250_v1 }
 0x190   : > { %1354 = vst.msk [vmem:[#allocation2 + $0x20] sm:$0xf] %vm1345_vm10, %v1266_v36 }
 0x193   : > { %1414 = vrot.lane.b32.xlu1 %v4541_v21, %s2714_s25 }
 0x194   : > { %1412 = vrot.lane.b32.xlu0 %v4542_v10, %s2714_s25  ;;  %1410 = vrot.lane.b32.xlu2 %v4543_v43, %s2714_s25 }
 0x195   : > { %v1258_v59 = vpop.permute.xlu1 %1257 }
 0x196   : > { %1350 = vst.msk [vmem:[#allocation2 + $0x10] sm:$0xf] %vm1345_vm10, %v1258_v59  ;;  %v1256_v2 = vpop.permute.xlu0 %1255  ;;  %v1272_v58 = vpop.permute.xlu2 %1271  ;;  %v4545_v59 = vld [vmem:[#allocation28_spill] sm:$0xff] }
 0x197   : > { %1349 = vst.msk [vmem:[#allocation2 + $0xc] sm:$0xf] %vm1345_vm10, %v1256_v2  ;;  %v4546_v2 = vld [vmem:[#allocation33_spill] sm:$0xff] }
 0x198   : > { %1357 = vst.msk [vmem:[#allocation2 + $0x2c] sm:$0xf] %vm1345_vm10, %v1272_v58  ;;  %v4547_v58 = vld [vmem:[#allocation59_spill] sm:$0xff] }
 0x19b   : > { %1420 = vrot.lane.b32.xlu1 %v3398_v46, %s2714_s25 }
 0x19c   : > { %1418 = vrot.lane.b32.xlu0 %v4544_v28, %s2714_s25  ;;  %1416 = vrot.lane.b32.xlu2 %v4545_v59, %s2714_s25 }
 0x19d   : > { %v1264_v1 = vpop.permute.xlu1 %1263 }
 0x19e   : > { %1353 = vst.msk [vmem:[#allocation2 + $0x1c] sm:$0xf] %vm1345_vm10, %v1264_v1  ;;  %v1262_v36 = vpop.permute.xlu0 %1261  ;;  %v1278_v25 = vpop.permute.xlu2 %1277  ;;  %v4548_v1 = vld [vmem:[#allocation27_spill] sm:$0xff] }
 0x19f   : > { %1352 = vst.msk [vmem:[#allocation2 + $0x18] sm:$0xf] %vm1345_vm10, %v1262_v36 }
 0x1a0   : > { %1360 = vst.msk [vmem:[#allocation2 + $0x38] sm:$0xf] %vm1345_vm10, %v1278_v25 }
 0x1a3   : > { %1426 = vrot.lane.b32.xlu1 %v4546_v2, %s2714_s25 }
 0x1a4   : > { %1424 = vrot.lane.b32.xlu0 %v4547_v58, %s2714_s25  ;;  %1422 = vrot.lane.b32.xlu2 %v4548_v1, %s2714_s25 }
 0x1a5   : > { %v1270_v46 = vpop.permute.xlu1 %1269 }
 0x1a6   : > { %1356 = vst.msk [vmem:[#allocation2 + $0x28] sm:$0xf] %vm1345_vm10, %v1270_v46  ;;  %v1268_v28 = vpop.permute.xlu0 %1267  ;;  %v1284_v7 = vpop.permute.xlu2 %1283  ;;  %v4549_v46 = vld [vmem:[#allocation40_spill] sm:$0xff] }
 0x1a7   : > { %1355 = vst.msk [vmem:[#allocation2 + $0x24] sm:$0xf] %vm1345_vm10, %v1268_v28 }
 0x1a8   : > { %1363 = vst.msk [vmem:[#allocation2 + $0x44] sm:$0xf] %vm1345_vm10, %v1284_v7 }
 0x1ab   : > { %1432 = vrot.lane.b32.xlu1 %v3449_v14, %s2714_s25 }
 0x1ac   : > { %1430 = vrot.lane.b32.xlu0 %v3456_v52, %s2714_s25  ;;  %1428 = vrot.lane.b32.xlu2 %v4549_v46, %s2714_s25 }
 0x1ad   : > { %v1276_v25 = vpop.permute.xlu1 %1275 }
 0x1ae   : > { %1359 = vst.msk [vmem:[#allocation2 + $0x34] sm:$0xf] %vm1345_vm10, %v1276_v25  ;;  %v1274_v36 = vpop.permute.xlu0 %1273  ;;  %v1290_v27 = vpop.permute.xlu2 %1289  ;;  %v4550_v25 = vld [vmem:[#allocation38_spill] sm:$0xff] }
 0x1af   : > { %1358 = vst.msk [vmem:[#allocation2 + $0x30] sm:$0xf] %vm1345_vm10, %v1274_v36  ;;  %v1381_v36 = vrot.slane %v3605_v13, 5 }
 0x1b0   : > { %1366 = vst.msk [vmem:[#allocation2 + $0x50] sm:$0xf] %vm1345_vm10, %v1290_v27 }
 0x1b3   : > { %1438 = vrot.lane.b32.xlu1 %v3473_v54, %s2714_s25 }
 0x1b4   : > { %1436 = vrot.lane.b32.xlu0 %v3481_v9, %s2714_s25  ;;  %1434 = vrot.lane.b32.xlu2 %v4550_v25, %s2714_s25  ;;  %v1383_v9 = vrot.slane %v1381_v36, 4 }
 0x1b5   : > { %v1282_v7 = vpop.permute.xlu1 %1281 }
 0x1b6   : > { %1362 = vst.msk [vmem:[#allocation2 + $0x40] sm:$0xf] %vm1345_vm10, %v1282_v7  ;;  %v1280_v28 = vpop.permute.xlu0 %1279  ;;  %v1296_v41 = vpop.permute.xlu2 %1295  ;;  %v1384_v7 = vrot.slane %v3686_v63, 5 }
 0x1b7   : > { %1361 = vst.msk [vmem:[#allocation2 + $0x3c] sm:$0xf] %vm1345_vm10, %v1280_v28 }
 0x1b8   : > { %1369 = vst.msk [vmem:[#allocation2 + $0x5c] sm:$0xf] %vm1345_vm10, %v1296_v41  ;;  %v2563_v41 = vrot.slane %v3590_v24, 9  ;;  %v3814_v21 = vsel %vm3180_vm6, %v1383_v9, %v1384_v7 }
 0x1ba   : > { %v3821_v63 = vsel %vm3180_vm6, %v2563_v41, %v1381_v36  ;;  %v4551_v41 = vld [vmem:[#allocation15_spill] sm:$0xff] }
 0x1bb   : > { %1444 = vrot.lane.b32.xlu1 %v3493_v55, %s2714_s25 }
 0x1bc   : > { %1442 = vrot.lane.b32.xlu0 %v3500_v39, %s2714_s25  ;;  %1440 = vrot.lane.b32.xlu2 %v3469_v60, %s2714_s25 }
 0x1bd   : > { %v1288_v27 = vpop.permute.xlu1 %1287 }
 0x1be   : > { %1365 = vst.msk [vmem:[#allocation2 + $0x4c] sm:$0xf] %vm1345_vm10, %v1288_v27  ;;  %v1286_v25 = vpop.permute.xlu0 %1285  ;;  %v1302_v28 = vpop.permute.xlu2 %1301 }
 0x1bf   : > { %1364 = vst.msk [vmem:[#allocation2 + $0x48] sm:$0xf] %vm1345_vm10, %v1286_v25 }
 0x1c0   : > { %1372 = vst.msk [vmem:[#allocation2 + $0x68] sm:$0xf] %vm1345_vm10, %v1302_v28 }
 0x1c3   : > { %1517 = vrot.lane.b32.xlu1 %v2802_v37, %s2715_s26 }
 0x1c4   : > { %1448 = vrot.lane.b32.xlu0 %v3814_v21, %s2714_s25  ;;  %1446 = vrot.lane.b32.xlu2 %v3821_v63, %s2714_s25 }
 0x1c5   : > { %v1294_v25 = vpop.permute.xlu1 %1293 }
 0x1c6   : > { %1368 = vst.msk [vmem:[#allocation2 + $0x58] sm:$0xf] %vm1345_vm10, %v1294_v25  ;;  %v1292_v27 = vpop.permute.xlu0 %1291  ;;  %v1308_v9 = vpop.permute.xlu2 %1307 }
 0x1c7   : > { %1367 = vst.msk [vmem:[#allocation2 + $0x54] sm:$0xf] %vm1345_vm10, %v1292_v27 }
 0x1c8   : > { %1375 = vst.msk [vmem:[#allocation2 + $0x74] sm:$0xf] %vm1345_vm10, %v1308_v9 }
 0x1cb   : > { %1523 = vrot.lane.b32.xlu1 %v2787_v22, %s2715_s26 }
 0x1cc   : > { %1521 = vrot.lane.b32.xlu0 %v2799_v31, %s2715_s26  ;;  %1519 = vrot.lane.b32.xlu2 %v2813_v42, %s2715_s26 }
 0x1cd   : > { %v1300_v37 = vpop.permute.xlu1 %1299 }
 0x1ce   : > { %1371 = vst.msk [vmem:[#allocation2 + $0x64] sm:$0xf] %vm1345_vm10, %v1300_v37  ;;  %v1298_v36 = vpop.permute.xlu0 %1297  ;;  %v1387_v7 = vpop.permute.xlu2 %1386  ;;  %v4553_v37 = vld [vmem:[#allocation31_spill] sm:$0xff] }
 0x1cf   : > { %1370 = vst.msk [vmem:[#allocation2 + $0x60] sm:$0xf] %vm1345_vm10, %v1298_v36  ;;  %v4554_v36 = vld [vmem:[#allocation10_spill] sm:$0xff] }
 0x1d0   : > { %1483 = vst.msk [vmem:[#allocation2] sm:$0xf] %vm1482_vm11, %v1387_v7 }
 0x1d3   : > { %1529 = vrot.lane.b32.xlu1 %v2827_v53, %s2715_s26 }
 0x1d4   : > { %1527 = vrot.lane.b32.xlu0 %v2831_v56, %s2715_s26  ;;  %1525 = vrot.lane.b32.xlu2 %v2866_v29, %s2715_s26 }
 0x1d5   : > { %v1306_v22 = vpop.permute.xlu1 %1305 }
 0x1d6   : > { %1374 = vst.msk [vmem:[#allocation2 + $0x70] sm:$0xf] %vm1345_vm10, %v1306_v22  ;;  %v1304_v31 = vpop.permute.xlu0 %1303  ;;  %v1393_v42 = vpop.permute.xlu2 %1392 }
 0x1d7   : > { %1373 = vst.msk [vmem:[#allocation2 + $0x6c] sm:$0xf] %vm1345_vm10, %v1304_v31  ;;  %v4555_v31 = vld [vmem:[#allocation11_spill] sm:$0xff] }
 0x1d8   : > { %1486 = vst.msk [vmem:[#allocation2 + $0xc] sm:$0xf] %vm1482_vm11, %v1393_v42  ;;  %v2673_v42 = vld [vmem:[%s4332_s1 + $0x8] sm:$0xff] }
 0x1db   : > { %1565 = vrot.lane.b32.xlu1 %v3059_v38, %s2715_s26 }
 0x1dc   : > { %1551 = vrot.lane.b32.xlu0 %v2986_v5, %s2715_s26  ;;  %1549 = vrot.lane.b32.xlu2 %v2999_v32, %s2715_s26 }
 0x1dd   : > { %v1312_v53 = vpop.permute.xlu1 %1311 }
 0x1de   : > { %1377 = vst.msk [vmem:[#allocation2 + $0x7c] sm:$0xf] %vm1345_vm10, %v1312_v53  ;;  %v1310_v56 = vpop.permute.xlu0 %1309  ;;  %v1399_v29 = vpop.permute.xlu2 %1398 }
 0x1df   : > { %1376 = vst.msk [vmem:[#allocation2 + $0x78] sm:$0xf] %vm1345_vm10, %v1310_v56  ;;  %v2672_v56 = vld [vmem:[%s4332_s1] sm:$0xff] }
 0x1e0   : > { %1489 = vst.msk [vmem:[#allocation2 + $0x18] sm:$0xf] %vm1482_vm11, %v1399_v29 }
 0x1e3   : > { %1704 = vrot.lane.b32.xlu1 %v4531_v0, %s2716_s27 }
 0x1e4   : > { %1702 = vrot.lane.b32.xlu0 %v4532_v49, %s2716_s27  ;;  %1567 = vrot.lane.b32.xlu2 %v3093_v23, %s2715_s26 }
 0x1e5   : > { %v1391_v38 = vpop.permute.xlu1 %1390 }
 0x1e6   : > { %1485 = vst.msk [vmem:[#allocation2 + $0x8] sm:$0xf] %vm1482_vm11, %v1391_v38  ;;  %v1389_v5 = vpop.permute.xlu0 %1388  ;;  %v1405_v32 = vpop.permute.xlu2 %1404 }
 0x1e7   : > { %1484 = vst.msk [vmem:[#allocation2 + $0x4] sm:$0xf] %vm1482_vm11, %v1389_v5  ;;  %v4556_v5 = vld [vmem:[#allocation30_spill] sm:$0xff] }
 0x1e8   : > { %1492 = vst.msk [vmem:[#allocation2 + $0x24] sm:$0xf] %vm1482_vm11, %v1405_v32  ;;  %v4557_v32 = vld [vmem:[#allocation34_spill] sm:$0xff] }
 0x1eb   : > { %1839 = vrot.lane.b32.xlu1 %v4548_v1, %s2717_s28 }
 0x1ec   : > { %1720 = vrot.lane.b32.xlu0 %v3174_v48, %s2716_s27  ;;  %1718 = vrot.lane.b32.xlu2 %v3140_v40, %s2716_s27 }
 0x1ed   : > { %v1397_v0 = vpop.permute.xlu1 %1396 }
 0x1ee   : > { %1488 = vst.msk [vmem:[#allocation2 + $0x14] sm:$0xf] %vm1482_vm11, %v1397_v0  ;;  %v1395_v49 = vpop.permute.xlu0 %1394  ;;  %v1411_v23 = vpop.permute.xlu2 %1410 }
 0x1ef   : > { %1487 = vst.msk [vmem:[#allocation2 + $0x10] sm:$0xf] %vm1482_vm11, %v1395_v49 }
 0x1f0   : > { %1495 = vst.msk [vmem:[#allocation2 + $0x30] sm:$0xf] %vm1482_vm11, %v1411_v23 }
 0x1f3   : > { %1857 = vrot.lane.b32.xlu1 %v3469_v60, %s2717_s28 }
 0x1f4   : > { %1855 = vrot.lane.b32.xlu0 %v3473_v54, %s2717_s28  ;;  %1841 = vrot.lane.b32.xlu2 %v4547_v58, %s2717_s28 }
 0x1f5   : > { %v1403_v1 = vpop.permute.xlu1 %1402 }
 0x1f6   : > { %1491 = vst.msk [vmem:[#allocation2 + $0x20] sm:$0xf] %vm1482_vm11, %v1403_v1  ;;  %v1401_v48 = vpop.permute.xlu0 %1400  ;;  %v1417_v40 = vpop.permute.xlu2 %1416  ;;  %v4558_v1 = vld [vmem:[#allocation32_spill] sm:$0xff] }
 0x1f7   : > { %1490 = vst.msk [vmem:[#allocation2 + $0x1c] sm:$0xf] %vm1482_vm11, %v1401_v48  ;;  %v4559_v48 = vld [vmem:[#allocation48_spill] sm:$0xff] }
 0x1f8   : > { %1498 = vst.msk [vmem:[#allocation2 + $0x3c] sm:$0xf] %vm1482_vm11, %v1417_v40 }
 0x1fb   : > { %1670 = vrot.lane.b32.xlu1 %v4518_v51, %s2716_s27 }
 0x1fc   : > { %1535 = vrot.lane.b32.xlu0 %v2852_v16, %s2715_s26  ;;  %1533 = vrot.lane.b32.xlu2 %v2873_v33, %s2715_s26 }
 0x1fd   : > { %v1409_v60 = vpop.permute.xlu1 %1408 }
 0x1fe   : > { %1494 = vst.msk [vmem:[#allocation2 + $0x2c] sm:$0xf] %vm1482_vm11, %v1409_v60  ;;  %v1407_v54 = vpop.permute.xlu0 %1406  ;;  %v1423_v58 = vpop.permute.xlu2 %1422 }
 0x1ff   : > { %1493 = vst.msk [vmem:[#allocation2 + $0x28] sm:$0xf] %vm1482_vm11, %v1407_v54 }
 0x200   : > { %1501 = vst.msk [vmem:[#allocation2 + $0x48] sm:$0xf] %vm1482_vm11, %v1423_v58  ;;  %v4560_v58 = vld [vmem:[#allocation14_spill] sm:$0xff] }
 0x203   : > { %1688 = vrot.lane.b32.xlu1 %v4527_v61, %s2716_s27 }
 0x204   : > { %1686 = vrot.lane.b32.xlu0 %v4522_v44, %s2716_s27  ;;  %1672 = vrot.lane.b32.xlu2 %v4517_v30, %s2716_s27 }
 0x205   : > { %v1415_v51 = vpop.permute.xlu1 %1414 }
 0x206   : > { %1497 = vst.msk [vmem:[#allocation2 + $0x38] sm:$0xf] %vm1482_vm11, %v1415_v51  ;;  %v1413_v16 = vpop.permute.xlu0 %1412  ;;  %v1429_v33 = vpop.permute.xlu2 %1428 }
 0x207   : > { %1496 = vst.msk [vmem:[#allocation2 + $0x34] sm:$0xf] %vm1482_vm11, %v1413_v16  ;;  %v4561_v16 = vld [vmem:[#allocation18_spill] sm:$0xff] }
 0x208   : > { %1504 = vst.msk [vmem:[#allocation2 + $0x54] sm:$0xf] %vm1482_vm11, %v1429_v33 }
 0x20b   : > { %1823 = vrot.lane.b32.xlu1 %v4539_v62, %s2717_s28 }
 0x20c   : > { %1809 = vrot.lane.b32.xlu0 %v3228_v4, %s2717_s28  ;;  %1807 = vrot.lane.b32.xlu2 %v3234_v12, %s2717_s28 }
 0x20d   : > { %v1421_v61 = vpop.permute.xlu1 %1420 }
 0x20e   : > { %1500 = vst.msk [vmem:[#allocation2 + $0x44] sm:$0xf] %vm1482_vm11, %v1421_v61  ;;  %v1419_v44 = vpop.permute.xlu0 %1418  ;;  %v1435_v30 = vpop.permute.xlu2 %1434 }
 0x20f   : > { %1499 = vst.msk [vmem:[#allocation2 + $0x40] sm:$0xf] %vm1482_vm11, %v1419_v44  ;;  %v4563_v44 = vld [vmem:[#allocation20_spill] sm:$0xff] }
 0x210   : > { %1507 = vst.msk [vmem:[#allocation2 + $0x60] sm:$0xf] %vm1482_vm11, %v1435_v30  ;;  %v4564_v30 = vld [vmem:[#allocation37_spill] sm:$0xff] }
 0x213   : > { %1555 = vrot.lane.b32.xlu1 %v3022_v34, %s2715_s26 }
 0x214   : > { %1553 = vrot.lane.b32.xlu0 %v2981_v3, %s2715_s26  ;;  %1825 = vrot.lane.b32.xlu2 %v4538_v26, %s2717_s28 }
 0x215   : > { %v1427_v62 = vpop.permute.xlu1 %1426 }
 0x216   : > { %1503 = vst.msk [vmem:[#allocation2 + $0x50] sm:$0xf] %vm1482_vm11, %v1427_v62  ;;  %v1425_v4 = vpop.permute.xlu0 %1424  ;;  %v1441_v12 = vpop.permute.xlu2 %1440 }
 0x217   : > { %1502 = vst.msk [vmem:[#allocation2 + $0x4c] sm:$0xf] %vm1482_vm11, %v1425_v4 }
 0x218   : > { %1510 = vst.msk [vmem:[#allocation2 + $0x6c] sm:$0xf] %vm1482_vm11, %v1441_v12  ;;  %v4565_v12 = vld [vmem:[#allocation29_spill] sm:$0xff] }
 0x21b   : > { %1706 = vrot.lane.b32.xlu1 %v4534_v8, %s2716_s27 }
 0x21c   : > { %1571 = vrot.lane.b32.xlu0 %v4491_v35, %s2715_s26  ;;  %1569 = vrot.lane.b32.xlu2 %v3113_v15, %s2715_s26 }
 0x21d   : > { %v1433_v34 = vpop.permute.xlu1 %1432 }
 0x21e   : > { %1506 = vst.msk [vmem:[#allocation2 + $0x5c] sm:$0xf] %vm1482_vm11, %v1433_v34  ;;  %v1431_v3 = vpop.permute.xlu0 %1430  ;;  %v1447_v26 = vpop.permute.xlu2 %1446 }
 0x21f   : > { %1505 = vst.msk [vmem:[#allocation2 + $0x58] sm:$0xf] %vm1482_vm11, %v1431_v3 }
 0x220   : > { %1513 = vst.msk [vmem:[#allocation2 + $0x78] sm:$0xf] %vm1482_vm11, %v1447_v26 }
 0x223   : > { %1724 = vrot.lane.b32.xlu1 %v3163_v20, %s2716_s27 }
 0x224   : > { %1722 = vrot.lane.b32.xlu0 %v3167_v50, %s2716_s27  ;;  %1708 = vrot.lane.b32.xlu2 %v3128_v57, %s2716_s27 }
 0x225   : > { %v1439_v8 = vpop.permute.xlu1 %1438 }
 0x226   : > { %1509 = vst.msk [vmem:[#allocation2 + $0x68] sm:$0xf] %vm1482_vm11, %v1439_v8  ;;  %v1437_v35 = vpop.permute.xlu0 %1436  ;;  %v1520_v15 = vpop.permute.xlu2 %1519 }
 0x227   : > { %1508 = vst.msk [vmem:[#allocation2 + $0x64] sm:$0xf] %vm1482_vm11, %v1437_v35 }
 0x228   : > { %1615 = vst.msk [vmem:[#allocation2 + $0x4] sm:$0xf] %vm1613_vm12, %v1520_v15  ;;  %v4567_v15 = vld [vmem:[#allocation54_spill] sm:$0xff] }
 0x22b   : > { %1859 = vrot.lane.b32.xlu1 %v3500_v39, %s2717_s28  ;;  %v4552_v39 = vld [vmem:[#allocation17_spill] sm:$0xff] }
 0x22c   : > { %1845 = vrot.lane.b32.xlu0 %v4549_v46, %s2717_s28  ;;  %1843 = vrot.lane.b32.xlu2 %v4546_v2, %s2717_s28  ;;  %v1972_v2 = vld [vmem:[%s4332_s1 + $0x10] sm:$0x3] }
 0x22d   : > { %v1445_v20 = vpop.permute.xlu1 %1444  ;;  %v2062_v27 = vunpack.c.l.b16 %v1972_v2 }
 0x22e   : > { %1512 = vst.msk [vmem:[#allocation2 + $0x74] sm:$0xf] %vm1482_vm11, %v1445_v20  ;;  %v1443_v50 = vpop.permute.xlu0 %1442  ;;  %v1526_v57 = vpop.permute.xlu2 %1525  ;;  %v251_v20 = vld [vmem:[%s2757_s20 + $0xd0] sm:$0xf] }
 0x22f   : > { %1511 = vst.msk [vmem:[#allocation2 + $0x70] sm:$0xf] %vm1482_vm11, %v1443_v50  ;;  %v2065_v9 = vpack.c.b16 %v2062_v27, %v2062_v27 }
 0x230   : > { %1618 = vst.msk [vmem:[#allocation2 + $0x10] sm:$0xf] %vm1613_vm12, %v1526_v57  ;;  %v1656_v57 = vshll.u32 %v251_v20, 16 }
 0x231   : > { %v2119_v7 = vsel %vm2117_vm13, %v2065_v9, 0 }
 0x232   : > { %2675 = vmatpush.bf16.msra.mxu2 %v2119_v7  ;;  %2676 = vmatpush.bf16.msra.mxu3 %v2119_v7 }
 0x233   : > { %1539 = vrot.lane.b32.xlu1 %v4551_v41, %s2715_s26  ;;  %2126 = vmatpush.bf16.msra.mxu0 %v2119_v7  ;;  %v1660_v41 = vshrl.u32 %v251_v20, 16 }
 0x234   : > { %1537 = vrot.lane.b32.xlu0 %v4552_v39, %s2715_s26  ;;  %1861 = vrot.lane.b32.xlu2 %v3493_v55, %s2717_s28 }
 0x235   : > { %v1518_v28 = vpop.permute.xlu1 %1517  ;;  %2674 = vmatpush.bf16.msra.mxu1 %v2119_v7  ;;  %v1662_v27 = vrot.slane %v1660_v41, 4 }
 0x236   : > { %1614 = vst.msk [vmem:[#allocation2] sm:$0xf] %vm1613_vm12, %v1518_v28  ;;  %v1449_v46 = vpop.permute.xlu0 %1448  ;;  %v1550_v25 = vpop.permute.xlu2 %1549  ;;  %2678 = vmatpush.bf16.msra.mxu2 %v2673_v42  ;;  %2679 = vmatpush.bf16.msra.mxu3 %v2673_v42 }
 0x237   : > { %1514 = vst.msk [vmem:[#allocation2 + $0x7c] sm:$0xf] %vm1482_vm11, %v1449_v46  ;;  %2127 = vmatpush.bf16.msra.mxu0 %v2673_v42  ;;  %v4568_v46 = vld [vmem:[#allocation39_spill] sm:$0xff] }
 0x238   : > { %1630 = vst.msk [vmem:[#allocation2 + $0x40] sm:$0xf] %vm1613_vm12, %v1550_v25  ;;  %v1658_v25 = vrot.slane %v1656_v57, 5 }
 0x239   : > { %2677 = vmatpush.bf16.msra.mxu1 %v2673_v42 }
 0x23a   : > { %2681 = vmatpush.bf16.msra.mxu2 %v2672_v56  ;;  %2682 = vmatpush.bf16.msra.mxu3 %v2672_v56 }
 0x23b   : > { %1690 = vrot.lane.b32.xlu1 %v4553_v37, %s2716_s27  ;;  %2128 = vmatpush.bf16.msra.mxu0 %v2672_v56  ;;  %v4569_v37 = vld [vmem:[#allocation42_spill] sm:$0xff] }
 0x23c   : > { %1676 = vrot.lane.b32.xlu0 %v4554_v36, %s2716_s27  ;;  %1674 = vrot.lane.b32.xlu2 %v4555_v31, %s2716_s27  ;;  %v252_v36 = vld [vmem:[%s2757_s20 + $0xd4] sm:$0x1]  ;;  %v1663_v31 = vor.u32 %v1662_v27, %v1658_v25 }
 0x23d   : > { %v1524_v55 = vpop.permute.xlu1 %1523  ;;  %2680 = vmatpush.bf16.msra.mxu1 %v2672_v56  ;;  %v1666_v42 = vshll.u32 %v252_v36, 16 }
 0x23e   : > { %1617 = vst.msk [vmem:[#allocation2 + $0xc] sm:$0xf] %vm1613_vm12, %v1524_v55  ;;  %v1522_v22 = vpop.permute.xlu0 %1521  ;;  %v1568_v53 = vpop.permute.xlu2 %1567 }
 0x23f   : > { %1616 = vst.msk [vmem:[#allocation2 + $0x8] sm:$0xf] %vm1613_vm12, %v1522_v22 }
 0x240   : > { %1639 = vst.msk [vmem:[#allocation2 + $0x64] sm:$0xf] %vm1613_vm12, %v1568_v53  ;;  %v4570_v53 = vld [vmem:[#allocation49_spill] sm:$0xff] }
 0x243   : > { %1813 = vrot.lane.b32.xlu1 %v3274_v17, %s2717_s28 }
 0x244   : > { %1811 = vrot.lane.b32.xlu0 %v3285_v18, %s2717_s28  ;;  %1692 = vrot.lane.b32.xlu2 %v4556_v5, %s2716_s27  ;;  %v1664_v5 = vrot.slane %v1663_v31, 4 }
 0x245   : > { %v1530_v29 = vpop.permute.xlu1 %1529 }
 0x246   : > { %1620 = vst.msk [vmem:[#allocation2 + $0x18] sm:$0xf] %vm1613_vm12, %v1530_v29  ;;  %v1528_v38 = vpop.permute.xlu0 %1527  ;;  %v1719_v17 = vpop.permute.xlu2 %1718  ;;  %v4571_v29 = vld [vmem:[#allocation50_spill] sm:$0xff] }
 0x247   : > { %1619 = vst.msk [vmem:[#allocation2 + $0x14] sm:$0xf] %vm1613_vm12, %v1528_v38 }
 0x24b   : > { %1557 = vrot.lane.b32.xlu1 %v4557_v32, %s2715_s26 }
 0x24c   : > { %1829 = vrot.lane.b32.xlu0 %v4542_v10, %s2717_s28  ;;  %1827 = vrot.lane.b32.xlu2 %v4543_v43, %s2717_s28 }
 0x24d   : > { %v1566_v18 = vpop.permute.xlu1 %1565 }
 0x24e   : > { %1638 = vst.msk [vmem:[#allocation2 + $0x60] sm:$0xf] %vm1613_vm12, %v1566_v18  ;;  %v1552_v0 = vpop.permute.xlu0 %1551  ;;  %v1842_v49 = vpop.permute.xlu2 %1841 }
 0x24f   : > { %1631 = vst.msk [vmem:[#allocation2 + $0x44] sm:$0xf] %vm1613_vm12, %v1552_v0  ;;  %v1802_v0 = vrot.slane %v251_v20, 5 }
 0x250   : > { %1791 = vst.msk [vmem:[#allocation2 + $0x60] sm:$0xf] %vm1766_vm14, %v1719_v17  ;;  %v1668_v17 = vrot.slane %v1666_v42, 5 }
 0x253   : > { %1575 = vrot.lane.b32.xlu1 %v3605_v13, %s2715_s26 }
 0x254   : > { %1573 = vrot.lane.b32.xlu0 %v3590_v24, %s2715_s26  ;;  %1559 = vrot.lane.b32.xlu2 %v4558_v1, %s2715_s26  ;;  %v4573_v1 = vld [vmem:[#allocation38_spill] sm:$0xff] }
 0x255   : > { %v1705_v10 = vpop.permute.xlu1 %1704 }
 0x256   : > { %1784 = vst.msk [vmem:[#allocation2 + $0x44] sm:$0xf] %vm1766_vm14, %v1705_v10  ;;  %v1703_v23 = vpop.permute.xlu0 %1702  ;;  %v1534_v43 = vpop.permute.xlu2 %1533 }
 0x257   : > { %1783 = vst.msk [vmem:[#allocation2 + $0x40] sm:$0xf] %vm1766_vm14, %v1703_v23  ;;  %v1669_v23 = vsel %vm2793_vm2, %v1664_v5, %v1668_v17  ;;  %v4159_v5 = vld [vmem:[%s4334_s3] ss:$0 sm:$0xff] }
 0x258   : > { %1921 = vst.msk [vmem:[#allocation2 + $0x44] sm:$0xf] %vm1903_vm15, %v1842_v49 }
 0x259   : > { %1622 = vst.msk [vmem:[#allocation2 + $0x20] sm:$0xf] %vm1613_vm12, %v1534_v43 }
 0x25b   : > { %1726 = vrot.lane.b32.xlu1 %v3708_v11, %s2716_s27 }
 0x25c   : > { %1712 = vrot.lane.b32.xlu0 %v4535_v45, %s2716_s27  ;;  %1710 = vrot.lane.b32.xlu2 %v4559_v48, %s2716_s27 }
 0x25d   : > { %v1840_v24 = vpop.permute.xlu1 %1839 }
 0x25e   : > { %1920 = vst.msk [vmem:[#allocation2 + $0x40] sm:$0xf] %vm1903_vm15, %v1840_v24  ;;  %v1721_v13 = vpop.permute.xlu0 %1720  ;;  %v1673_v40 = vpop.permute.xlu2 %1672  ;;  %v1804_v24 = vrot.slane %v1802_v0, 4 }
 0x25f   : > { %1792 = vst.msk [vmem:[#allocation2 + $0x64] sm:$0xf] %vm1766_vm14, %v1721_v13  ;;  %v1805_v13 = vrot.slane %v252_v36, 5 }
 0x260   : > { %1768 = vst.msk [vmem:[#allocation2 + $0x4] sm:$0xf] %vm1766_vm14, %v1673_v40 }
 0x263   : > { %1849 = vrot.lane.b32.xlu1 %v3449_v14, %s2717_s28 }
 0x264   : > { %1847 = vrot.lane.b32.xlu0 %v3456_v52, %s2717_s28  ;;  %1728 = vrot.lane.b32.xlu2 %v3704_v19, %s2716_s27 }
 0x265   : > { %v1858_v45 = vpop.permute.xlu1 %1857  ;;  %v2664_v11 = vld [vmem:[#allocation2 + $0x40] sm:$0xff] }
 0x266   : > { %1929 = vst.msk [vmem:[#allocation2 + $0x64] sm:$0xf] %vm1903_vm15, %v1858_v45  ;;  %v1856_v60 = vpop.permute.xlu0 %1855  ;;  %2645 = vmatmul.msk.bf16.vlgmr.msra.gmra.mxu2 %vm2068_vm0, %v2664_v11  ;;  %v1808_v54 = vpop.permute.xlu2 %1807  ;;  %v1806_v11 = vsel %vm3180_vm6, %v1804_v24, %v1805_v13 }
 0x267   : > { %1928 = vst.msk [vmem:[#allocation2 + $0x60] sm:$0xf] %vm1903_vm15, %v1856_v60 }
 0x26b   : > { %1541 = vrot.lane.b32.xlu1 %v4560_v58, %s2715_s26 }
 0x26c   : > { %1865 = vrot.lane.b32.xlu0 %v3814_v21, %s2717_s28  ;;  %1863 = vrot.lane.b32.xlu2 %v3821_v63, %s2717_s28  ;;  %v4562_v21 = vld [vmem:[#allocation19_spill] sm:$0xff] }
 0x26d   : > { %v1671_v14 = vpop.permute.xlu1 %1670 }
 0x26e   : > { %1767 = vst.msk [vmem:[#allocation2] sm:$0xf] %vm1766_vm14, %v1671_v14  ;;  %v1536_v52 = vpop.permute.xlu0 %1535  ;;  %v2668_v51 = vld [vmem:[#allocation2 + $0x60] sm:$0xff]  ;;  %v1826_v19 = vpop.permute.xlu2 %1825 }
 0x26f   : > { %1623 = vst.msk [vmem:[#allocation2 + $0x24] sm:$0xf] %vm1613_vm12, %v1536_v52  ;;  %2649 = vmatmul.msk.bf16.vlgmr.msra.gmra.mxu3 %vm2068_vm0, %v2668_v51 }
 0x270   : > { %1904 = vst.msk [vmem:[#allocation2] sm:$0xf] %vm1903_vm15, %v1808_v54 }
 0x273   : > { %1680 = vrot.lane.b32.xlu1 %v4561_v16, %s2716_s27  ;;  %v4575_v16 = vld [vmem:[#allocation22_spill] sm:$0xff] }
 0x274   : > { %1678 = vrot.lane.b32.xlu0 %v4562_v21, %s2716_s27  ;;  %1543 = vrot.lane.b32.xlu2 %v4563_v44, %s2715_s26  ;;  %v4576_v21 = vld [vmem:[#allocation24_spill] sm:$0xff] }
 0x275   : > { %v1689_v33 = vpop.permute.xlu1 %1688  ;;  %v4577_v44 = vld [vmem:[#allocation8_spill] sm:$0xff] }
 0x276   : > { %1776 = vst.msk [vmem:[#allocation2 + $0x24] sm:$0xf] %vm1766_vm14, %v1689_v33  ;;  %v1687_v61 = vpop.permute.xlu0 %1686  ;;  %v1570_v63 = vpop.permute.xlu2 %1569 }
 0x277   : > { %1775 = vst.msk [vmem:[#allocation2 + $0x20] sm:$0xf] %vm1766_vm14, %v1687_v61 }
 0x278   : > { %1913 = vst.msk [vmem:[#allocation2 + $0x24] sm:$0xf] %vm1903_vm15, %v1826_v19  ;;  %v4574_v19 = vld [vmem:[#allocation45_spill] sm:$0xff] }
 0x279   : > { %1640 = vst.msk [vmem:[#allocation2 + $0x68] sm:$0xf] %vm1613_vm12, %v1570_v63 }
 0x27b   : > { %1815 = vrot.lane.b32.xlu1 %v4537_v6, %s2717_s28  ;;  %v4566_v6 = vld [vmem:[#allocation21_spill] sm:$0xff] }
 0x27c   : > { %1696 = vrot.lane.b32.xlu0 %v4564_v30, %s2716_s27  ;;  %1694 = vrot.lane.b32.xlu2 %v4565_v12, %s2716_s27  ;;  %v4578_v30 = vld [vmem:[#allocation36_spill] sm:$0xff] }
 0x27d   : > { %v1824_v62 = vpop.permute.xlu1 %1823 }
 0x27e   : > { %1912 = vst.msk [vmem:[#allocation2 + $0x20] sm:$0xf] %vm1903_vm15, %v1824_v62  ;;  %v1810_v4 = vpop.permute.xlu0 %1809  ;;  %v1709_v34 = vpop.permute.xlu2 %1708  ;;  %v4579_v62 = vld [vmem:[#allocation26_spill] sm:$0xff] }
 0x27f   : > { %1905 = vst.msk [vmem:[#allocation2 + $0x4] sm:$0xf] %vm1903_vm15, %v1810_v4 }
 0x283   : > { %1833 = vrot.lane.b32.xlu1 %v4545_v59, %s2717_s28  ;;  %v250_v59 = vld [vmem:[%s2757_s20 + $0xcc] sm:$0xf] }
 0x284   : > { %1831 = vrot.lane.b32.xlu0 %v4566_v6, %s2717_s28  ;;  %1817 = vrot.lane.b32.xlu2 %v4567_v15, %s2717_s28  ;;  %v1647_v39 = vshrl.u32 %v250_v59, 16  ;;  %v1650_v28 = vshll.u32 %v250_v59, 16  ;;  %v2564_v48 = vrot.slane %v250_v59, 9 }
 0x285   : > { %v1556_v3 = vpop.permute.xlu1 %1555  ;;  %v2660_v26 = vld [vmem:[#allocation2 + $0x20] sm:$0xff] }
 0x286   : > { %1633 = vst.msk [vmem:[#allocation2 + $0x4c] sm:$0xf] %vm1613_vm12, %v1556_v3  ;;  %v1554_v8 = vpop.permute.xlu0 %1553  ;;  %v2656_v35 = vld [vmem:[#allocation2] sm:$0xff]  ;;  %2641 = vmatmul.msk.bf16.vlgmr.msra.gmra.mxu1 %vm2068_vm0, %v2660_v26  ;;  %v1844_v50 = vpop.permute.xlu2 %1843  ;;  %v1649_v7 = vrot.slane %v1647_v39, 4  ;;  %v1652_v55 = vrot.slane %v1650_v28, 5  ;;  %v1803_v54 = vsel %vm3180_vm6, %v2564_v48, %v1802_v0  ;;  %v4581_v3 = vld [vmem:[#allocation52_spill] sm:$0xff] }
 0x287   : > { %1632 = vst.msk [vmem:[#allocation2 + $0x48] sm:$0xf] %vm1613_vm12, %v1554_v8  ;;  %2637 = vmatmul.msk.bf16.vlgmr.msra.gmra.mxu0 %vm2068_vm0, %v2656_v35  ;;  %v4582_v26 = vld [vmem:[#allocation53_spill] sm:$0xff]  ;;  %v4585_v28 = vld [vmem:[#allocation58_spill] sm:$0xff] }
 0x288   : > { %1786 = vst.msk [vmem:[#allocation2 + $0x4c] sm:$0xf] %vm1766_vm14, %v1709_v34  ;;  %v1653_v56 = vor.u32 %v1652_v55, %v1649_v7  ;;  %v4580_v34 = vld [vmem:[#allocation16_spill] sm:$0xff] }
 0x28a   : > { %v1654_v18 = vrot.slane %v1653_v56, 4 }
 0x28b   : > { %1577 = vrot.lane.b32.xlu1 %v250_v59, %s2715_s26 }
 0x28c   : > { %1563 = vrot.lane.b32.xlu0 %v4568_v46, %s2715_s26  ;;  %1561 = vrot.lane.b32.xlu2 %v4569_v37, %s2715_s26  ;;  %v1659_v43 = vsel %vm2793_vm2, %v1654_v18, %v1658_v25  ;;  %vm2475_vm2 = vcmask 60416  }
 0x28d   : > { %v1707_v2 = vpop.permute.xlu1 %1706 }
 0x28e   : > { %1785 = vst.msk [vmem:[#allocation2 + $0x48] sm:$0xf] %vm1766_vm14, %v1707_v2  ;;  %v1572_v9 = vpop.permute.xlu0 %1571  ;;  %v1862_v22 = vpop.permute.xlu2 %1861 }
 0x28f   : > { %1641 = vst.msk [vmem:[#allocation2 + $0x6c] sm:$0xf] %vm1613_vm12, %v1572_v9 }
 0x290   : > { %1922 = vst.msk [vmem:[#allocation2 + $0x48] sm:$0xf] %vm1903_vm15, %v1844_v50  ;;  %v4584_v50 = vld [vmem:[#allocation57_spill] sm:$0xff] }
 0x293   : > { %1716 = vrot.lane.b32.xlu1 %v4570_v53, %s2716_s27 }
 0x294   : > { %1714 = vrot.lane.b32.xlu0 %v4571_v29, %s2716_s27  ;;  %1579 = vrot.lane.b32.xlu2 %v251_v20, %s2715_s26  ;;  %v4583_v20 = vld [vmem:[#allocation35_spill] sm:$0xff]  ;;  %v4152_v29 = vld [vmem:[%s4333_s2] ss:$0 sm:$0xff] }
 0x295   : > { %v1725_v38 = vpop.permute.xlu1 %1724 }
 0x296   : > { %1794 = vst.msk [vmem:[#allocation2 + $0x6c] sm:$0xf] %vm1766_vm14, %v1725_v38  ;;  %v1723_v32 = vpop.permute.xlu0 %1722  ;;  %v1675_v49 = vpop.permute.xlu2 %1674 }
 0x297   : > { %1793 = vst.msk [vmem:[#allocation2 + $0x68] sm:$0xf] %vm1766_vm14, %v1723_v32 }
 0x298   : > { %1931 = vst.msk [vmem:[#allocation2 + $0x6c] sm:$0xf] %vm1903_vm15, %v1862_v22 }
 0x299   : > { %1769 = vst.msk [vmem:[#allocation2 + $0x8] sm:$0xf] %vm1766_vm14, %v1675_v49 }
 0x29b   : > { %1851 = vrot.lane.b32.xlu1 %v4573_v1, %s2717_s28 }
 0x29c   : > { %1732 = vrot.lane.b32.xlu0 %v1669_v23, %s2716_s27  ;;  %1730 = vrot.lane.b32.xlu2 %v1659_v43, %s2716_s27 }
 0x29d   : > { %v1860_v40 = vpop.permute.xlu1 %1859 }
 0x29e   : > { %1930 = vst.msk [vmem:[#allocation2 + $0x68] sm:$0xf] %vm1903_vm15, %v1860_v40  ;;  %v1846_v45 = vpop.permute.xlu0 %1845  ;;  %v1693_v60 = vpop.permute.xlu2 %1692 }
 0x29f   : > { %1923 = vst.msk [vmem:[#allocation2 + $0x4c] sm:$0xf] %vm1903_vm15, %v1846_v45 }
 0x2a3   : > { %1869 = vrot.lane.b32.xlu1 %v1806_v11, %s2717_s28 }
 0x2a4   : > { %1867 = vrot.lane.b32.xlu0 %v1803_v54, %s2717_s28  ;;  %1853 = vrot.lane.b32.xlu2 %v4574_v19, %s2717_s28 }
 0x2a5   : > { %v1540_v58 = vpop.permute.xlu1 %1539  ;;  %v2669_v14 = vld [vmem:[#allocation2 + $0x68] sm:$0xff] }
 0x2a6   : > { %1625 = vst.msk [vmem:[#allocation2 + $0x2c] sm:$0xf] %vm1613_vm12, %v1540_v58  ;;  %v1538_v52 = vpop.permute.xlu0 %1537  ;;  %v2665_v51 = vld [vmem:[#allocation2 + $0x48] sm:$0xff]  ;;  %2650 = vmatmul.msk.bf16.gmra.mxu3 %vm2068_vm0, %v2669_v14  ;;  %v1828_v47 = vpop.permute.xlu2 %1827 }
 0x2a7   : > { %1624 = vst.msk [vmem:[#allocation2 + $0x28] sm:$0xf] %vm1613_vm12, %v1538_v52  ;;  %2646 = vmatmul.msk.bf16.gmra.mxu2 %vm2068_vm0, %v2665_v51 }
 0x2a8   : > { %1778 = vst.msk [vmem:[#allocation2 + $0x2c] sm:$0xf] %vm1766_vm14, %v1693_v60 }
 0x2ab   : > { %1547 = vrot.lane.b32.xlu1 %v4575_v16, %s2715_s26 }
 0x2ac   : > { %1545 = vrot.lane.b32.xlu0 %v4576_v21, %s2715_s26  ;;  %1531 = vrot.lane.b32.xlu2 %v4577_v44, %s2715_s26 }
 0x2ad   : > { %v1691_v33 = vpop.permute.xlu1 %1690 }
 0x2ae   : > { %1777 = vst.msk [vmem:[#allocation2 + $0x28] sm:$0xf] %vm1766_vm14, %v1691_v33  ;;  %v1677_v61 = vpop.permute.xlu0 %1676  ;;  %v1560_v63 = vpop.permute.xlu2 %1559 }
 0x2af   : > { %1770 = vst.msk [vmem:[#allocation2 + $0xc] sm:$0xf] %vm1766_vm14, %v1677_v61 }
 0x2b0   : > { %1914 = vst.msk [vmem:[#allocation2 + $0x28] sm:$0xf] %vm1903_vm15, %v1828_v47 }
 0x2b1   : > { %1635 = vst.msk [vmem:[#allocation2 + $0x54] sm:$0xf] %vm1613_vm12, %v1560_v63 }
 0x2b3   : > { %1698 = vrot.lane.b32.xlu1 %v4578_v30, %s2716_s27 }
 0x2b4   : > { %1684 = vrot.lane.b32.xlu0 %v4579_v62, %s2716_s27  ;;  %1682 = vrot.lane.b32.xlu2 %v4580_v34, %s2716_s27 }
 0x2b5   : > { %v1814_v4 = vpop.permute.xlu1 %1813 }
 0x2b6   : > { %1907 = vst.msk [vmem:[#allocation2 + $0xc] sm:$0xf] %vm1903_vm15, %v1814_v4  ;;  %v1812_v12 = vpop.permute.xlu0 %1811  ;;  %v1711_v6 = vpop.permute.xlu2 %1710 }
 0x2b7   : > { %1906 = vst.msk [vmem:[#allocation2 + $0x8] sm:$0xf] %vm1903_vm15, %v1812_v12 }
 0x2bb   : > { %1821 = vrot.lane.b32.xlu1 %v4581_v3, %s2717_s28 }
 0x2bc   : > { %1819 = vrot.lane.b32.xlu0 %v4582_v26, %s2717_s28  ;;  %1700 = vrot.lane.b32.xlu2 %v4583_v20, %s2716_s27 }
 0x2bd   : > { %v1558_v8 = vpop.permute.xlu1 %1557 }
 0x2be   : > { %1634 = vst.msk [vmem:[#allocation2 + $0x50] sm:$0xf] %vm1613_vm12, %v1558_v8  ;;  %v1830_v35 = vpop.permute.xlu0 %1829  ;;  %v2657_v15 = vld [vmem:[#allocation2 + $0x8] sm:$0xff]  ;;  %v1729_v59 = vpop.permute.xlu2 %1728 }
 0x2bf   : > { %1915 = vst.msk [vmem:[#allocation2 + $0x2c] sm:$0xf] %vm1903_vm15, %v1830_v35  ;;  %2638 = vmatmul.msk.bf16.gmra.mxu0 %vm2068_vm0, %v2657_v15 }
 0x2c0   : > { %1787 = vst.msk [vmem:[#allocation2 + $0x50] sm:$0xf] %vm1766_vm14, %v1711_v6 }
 0x2c4   : > { %1837 = vrot.lane.b32.xlu0 %v4584_v50, %s2717_s28  ;;  %1835 = vrot.lane.b32.xlu2 %v4585_v28, %s2717_s28 }
 0x2c5   : > { %v1576_v57 = vpop.permute.xlu1 %1575 }
 0x2c6   : > { %1643 = vst.msk [vmem:[#allocation2 + $0x74] sm:$0xf] %vm1613_vm12, %v1576_v57  ;;  %v1574_v41 = vpop.permute.xlu0 %1573  ;;  %v2661_v39 = vld [vmem:[#allocation2 + $0x28] sm:$0xff]  ;;  %v1864_v46 = vpop.permute.xlu2 %1863 }
 0x2c7   : > { %1642 = vst.msk [vmem:[#allocation2 + $0x70] sm:$0xf] %vm1613_vm12, %v1574_v41  ;;  %2642 = vmatmul.msk.bf16.gmra.mxu1 %vm2068_vm0, %v2661_v39 }
 0x2c8   : > { %1796 = vst.msk [vmem:[#allocation2 + $0x74] sm:$0xf] %vm1766_vm14, %v1729_v59 }
 0x2cd   : > { %v1727_v2 = vpop.permute.xlu1 %1726 }
 0x2ce   : > { %1795 = vst.msk [vmem:[#allocation2 + $0x70] sm:$0xf] %vm1766_vm14, %v1727_v2  ;;  %v1713_v25 = vpop.permute.xlu0 %1712  ;;  %v1544_v27 = vpop.permute.xlu2 %1543 }
 0x2cf   : > { %1788 = vst.msk [vmem:[#allocation2 + $0x54] sm:$0xf] %vm1766_vm14, %v1713_v25 }
 0x2d0   : > { %1932 = vst.msk [vmem:[#allocation2 + $0x70] sm:$0xf] %vm1903_vm15, %v1864_v46 }
 0x2d1   : > { %1627 = vst.msk [vmem:[#allocation2 + $0x34] sm:$0xf] %vm1613_vm12, %v1544_v27 }
 0x2d5   : > { %v1850_v9 = vpop.permute.xlu1 %1849 }
 0x2d6   : > { %1925 = vst.msk [vmem:[#allocation2 + $0x54] sm:$0xf] %vm1903_vm15, %v1850_v9  ;;  %v1848_v37 = vpop.permute.xlu0 %1847  ;;  %v1695_v36 = vpop.permute.xlu2 %1694 }
 0x2d7   : > { %1924 = vst.msk [vmem:[#allocation2 + $0x50] sm:$0xf] %vm1903_vm15, %v1848_v37 }
 0x2dd   : > { %v1542_v7 = vpop.permute.xlu1 %1541 }
 0x2de   : > { %1626 = vst.msk [vmem:[#allocation2 + $0x30] sm:$0xf] %vm1613_vm12, %v1542_v7  ;;  %v1866_v55 = vpop.permute.xlu0 %1865  ;;  %v2666_v22 = vld [vmem:[#allocation2 + $0x50] sm:$0xff]  ;;  %v1818_v31 = vpop.permute.xlu2 %1817 }
 0x2df   : > { %1933 = vst.msk [vmem:[#allocation2 + $0x74] sm:$0xf] %vm1903_vm15, %v1866_v55  ;;  %2647 = vmatmul.msk.bf16.gmra.mxu2 %vm2068_vm0, %v2666_v22 }
 0x2e0   : > { %1779 = vst.msk [vmem:[#allocation2 + $0x30] sm:$0xf] %vm1766_vm14, %v1695_v36 }
 0x2e5   : > { %v1681_v42 = vpop.permute.xlu1 %1680 }
 0x2e6   : > { %1772 = vst.msk [vmem:[#allocation2 + $0x14] sm:$0xf] %vm1766_vm14, %v1681_v42  ;;  %v1679_v53 = vpop.permute.xlu0 %1678  ;;  %v2670_v56 = vld [vmem:[#allocation2 + $0x70] sm:$0xff]  ;;  %v1562_v38 = vpop.permute.xlu2 %1561 }
 0x2e7   : > { %1771 = vst.msk [vmem:[#allocation2 + $0x10] sm:$0xf] %vm1766_vm14, %v1679_v53  ;;  %2651 = vmatmul.msk.bf16.gmra.mxu3 %vm2068_vm0, %v2670_v56 }
 0x2e8   : > { %1909 = vst.msk [vmem:[#allocation2 + $0x14] sm:$0xf] %vm1903_vm15, %v1818_v31 }
 0x2e9   : > { %1636 = vst.msk [vmem:[#allocation2 + $0x58] sm:$0xf] %vm1613_vm12, %v1562_v38  ;;  %v2170_v17 = vpop.f32.mrf.mxu2 }
 0x2ea   : > { %v2230_v32 = vmul.f32 %v4152_v29, %v2170_v17 }
 0x2ec   : > { %v2266_v18 = vadd.f32 %v4159_v5, %v2230_v32 }
 0x2ed   : > { %v1816_v0 = vpop.permute.xlu1 %1815 }
 0x2ee   : > { %1908 = vst.msk [vmem:[#allocation2 + $0x10] sm:$0xf] %vm1903_vm15, %v1816_v0  ;;  %v1697_v49 = vpop.permute.xlu0 %1696  ;;  %v2298_v10 = vmax.f32 %v2266_v18, 0.0  ;;  %v1580_v23 = vpop.permute.xlu2 %1579 }
 0x2ef   : > { %1780 = vst.msk [vmem:[#allocation2 + $0x34] sm:$0xf] %vm1766_vm14, %v1697_v49 }
 0x2f0   : > { %2331 = vst.msk [vmem:[#allocation3 + $0x80] sm:$0xff] %vm2314_vm1, %v2298_v10 }
 0x2f1   : > { %v2172_v1 = vpop.f32.mrf.mxu2  ;;  %1645 = vst.msk [vmem:[#allocation2 + $0x7c] sm:$0xf] %vm1613_vm12, %v1580_v23 }
 0x2f2   : > { %v2231_v43 = vmul.f32 %v4152_v29, %v2172_v1  ;;  %v2190_v24 = vpop.f32.mrf.mxu3 }
 0x2f3   : > { %v2238_v13 = vmul.f32 %v4152_v29, %v2190_v24 }
 0x2f4   : > { %v2267_v48 = vadd.f32 %v4159_v5, %v2231_v43 }
 0x2f5   : > { %v1834_v40 = vpop.permute.xlu1 %1833  ;;  %v2658_v45 = vld [vmem:[#allocation2 + $0x10] sm:$0xff]  ;;  %v2274_v11 = vadd.f32 %v4159_v5, %v2238_v13 }
 0x2f6   : > { %1917 = vst.msk [vmem:[#allocation2 + $0x34] sm:$0xf] %vm1903_vm15, %v1834_v40  ;;  %v1832_v60 = vpop.permute.xlu0 %1831  ;;  %v2299_v54 = vmax.f32 %v2267_v48, 0.0  ;;  %2639 = vmatmul.msk.bf16.gmra.mxu0 %vm2068_vm0, %v2658_v45  ;;  %v1731_v14 = vpop.permute.xlu2 %1730 }
 0x2f7   : > { %1916 = vst.msk [vmem:[#allocation2 + $0x30] sm:$0xf] %vm1903_vm15, %v1832_v60  ;;  %v2306_v58 = vmax.f32 %v2274_v11, 0.0 }
 0x2f8   : > { %2332 = vst.msk [vmem:[#allocation3 + $0x88] sm:$0xff] %vm2314_vm1, %v2299_v54 }
 0x2f9   : > { %2339 = vst.msk [vmem:[#allocation3 + $0xc0] sm:$0xff] %vm2314_vm1, %v2306_v58 }
 0x2fa   : > { %v2192_v52 = vpop.f32.mrf.mxu3 }
 0x2fb   : > { %v2239_v51 = vmul.f32 %v4152_v29, %v2192_v52 }
 0x2fd   : > { %v1578_v19 = vpop.permute.xlu1 %1577  ;;  %v2275_v47 = vadd.f32 %v4159_v5, %v2239_v51 }
 0x2fe   : > { %1644 = vst.msk [vmem:[#allocation2 + $0x78] sm:$0xf] %vm1613_vm12, %v1578_v19  ;;  %v1564_v16 = vpop.permute.xlu0 %1563  ;;  %v2662_v21 = vld [vmem:[#allocation2 + $0x30] sm:$0xff]  ;;  %v1854_v63 = vpop.permute.xlu2 %1853 }
 0x2ff   : > { %1637 = vst.msk [vmem:[#allocation2 + $0x5c] sm:$0xf] %vm1613_vm12, %v1564_v16  ;;  %v2363_v33 = vld [vmem:[#allocation3 + $0x80] ss:$2 sm:$0xff]  ;;  %v2395_v61 = vld [vmem:[#allocation3 + $0x81] ss:$2 sm:$0xff]  ;;  %2643 = vmatmul.msk.bf16.gmra.mxu1 %vm2068_vm0, %v2662_v21 }
 0x300   : > { %v2307_v44 = vmax.f32 %v2275_v47, 0.0  ;;  %v2418_v30 = vmax.f32 %v2363_v33, %v2395_v61  ;;  %1797 = vst.msk [vmem:[#allocation2 + $0x78] sm:$0xf] %vm1766_vm14, %v1731_v14 }
 0x302   : > { %2340 = vst.msk [vmem:[#allocation3 + $0xc8] sm:$0xff] %vm2314_vm1, %v2307_v44 }
 0x303   : > { %2434 = vst.msk [vmem:[#allocation4 + $0x40] sm:$0xff] %vm2314_vm1, %v2418_v30  ;;  %v2150_v62 = vpop.f32.mrf.mxu1 }
 0x304   : > { %v2222_v12 = vmul.f32 %v4152_v29, %v2150_v62  ;;  %v2130_v34 = vpop.f32.mrf.mxu0 }
 0x305   : > { %v1717_v4 = vpop.permute.xlu1 %1716  ;;  %v2214_v3 = vmul.f32 %v4152_v29, %v2130_v34 }
 0x306   : > { %1790 = vst.msk [vmem:[#allocation2 + $0x5c] sm:$0xf] %vm1766_vm14, %v1717_v4  ;;  %v1715_v6 = vpop.permute.xlu0 %1714  ;;  %v2258_v26 = vadd.f32 %v4159_v5, %v2222_v12  ;;  %v1532_v35 = vpop.permute.xlu2 %1531 }
 0x307   : > { %1789 = vst.msk [vmem:[#allocation2 + $0x58] sm:$0xf] %vm1766_vm14, %v1715_v6  ;;  %v2250_v8 = vadd.f32 %v4159_v5, %v2214_v3 }
 0x308   : > { %1927 = vst.msk [vmem:[#allocation2 + $0x5c] sm:$0xf] %vm1903_vm15, %v1854_v63  ;;  %v2290_v59 = vmax.f32 %v2258_v26, 0.0 }
 0x309   : > { %v2371_v15 = vld [vmem:[#allocation3 + $0xc0] ss:$2 sm:$0xff]  ;;  %v2403_v20 = vld [vmem:[#allocation3 + $0xc1] ss:$2 sm:$0xff]  ;;  %v2282_v57 = vmax.f32 %v2250_v8, 0.0 }
 0x30a   : > { %v2422_v50 = vmax.f32 %v2371_v15, %v2403_v20  ;;  %1621 = vst.msk [vmem:[#allocation2 + $0x1c] sm:$0xf] %vm1613_vm12, %v1532_v35 }
 0x30b   : > { %2323 = vst.msk [vmem:[#allocation3 + $0x40] sm:$0xff] %vm2314_vm1, %v2290_v59  ;;  %v2152_v41 = vpop.f32.mrf.mxu1 }
 0x30c   : > { %2438 = vst.msk [vmem:[#allocation4 + $0x60] sm:$0xff] %vm2314_vm1, %v2422_v50  ;;  %v2223_v28 = vmul.f32 %v4152_v29, %v2152_v41  ;;  %v2132_v46 = vpop.f32.mrf.mxu0 }
 0x30d   : > { %2315 = vst.msk [vmem:[#allocation3] sm:$0xff] %vm2314_vm1, %v2282_v57  ;;  %v1852_v39 = vpop.permute.xlu1 %1851  ;;  %v2215_v25 = vmul.f32 %v4152_v29, %v2132_v46 }
 0x30e   : > { %1926 = vst.msk [vmem:[#allocation2 + $0x58] sm:$0xf] %vm1903_vm15, %v1852_v39  ;;  %v1733_v2 = vpop.permute.xlu0 %1732  ;;  %v2259_v27 = vadd.f32 %v4159_v5, %v2223_v28  ;;  %v1683_v37 = vpop.permute.xlu2 %1682 }
 0x30f   : > { %1798 = vst.msk [vmem:[#allocation2 + $0x7c] sm:$0xf] %vm1766_vm14, %v1733_v2  ;;  %v2251_v9 = vadd.f32 %v4159_v5, %v2215_v25 }
 0x310   : > { %v2291_v36 = vmax.f32 %v2259_v27, 0.0  ;;  %1773 = vst.msk [vmem:[#allocation2 + $0x18] sm:$0xf] %vm1766_vm14, %v1683_v37  ;;  %v2446_v27 = vld [vmem:[#allocation4 + $0x40] sm:$0xff] }
 0x311   : > { %v2283_v7 = vmax.f32 %v2251_v9, 0.0 }
 0x312   : > { %2324 = vst.msk [vmem:[#allocation3 + $0x48] sm:$0xff] %vm2314_vm1, %v2291_v36 }
 0x313   : > { %2316 = vst.msk [vmem:[#allocation3 + $0x8] sm:$0xff] %vm2314_vm1, %v2283_v7  ;;  %v2448_v28 = vld [vmem:[#allocation4 + $0x60] sm:$0xff] }
 0x315   : > { %v1870_v55 = vpop.permute.xlu1 %1869  ;;  %v2667_v22 = vld [vmem:[#allocation2 + $0x58] sm:$0xff] }
 0x316   : > { %1935 = vst.msk [vmem:[#allocation2 + $0x7c] sm:$0xf] %vm1903_vm15, %v1870_v55  ;;  %v1868_v31 = vpop.permute.xlu0 %1867  ;;  %2648 = vmatmul.msk.bf16.gmra.mxu2 %vm2068_vm0, %v2667_v22  ;;  %v1701_v32 = vpop.permute.xlu2 %1700 }
 0x317   : > { %1934 = vst.msk [vmem:[#allocation2 + $0x78] sm:$0xf] %vm1903_vm15, %v1868_v31 }
 0x319   : > { %v2355_v42 = vld [vmem:[#allocation3 + $0x40] ss:$2 sm:$0xff]  ;;  %v2387_v53 = vld [vmem:[#allocation3 + $0x41] ss:$2 sm:$0xff] }
 0x31a   : > { %v2414_v56 = vmax.f32 %v2355_v42, %v2387_v53  ;;  %v2347_v38 = vld [vmem:[#allocation3] ss:$2 sm:$0xff]  ;;  %v2379_v17 = vld [vmem:[#allocation3 + $0x1] ss:$2 sm:$0xff] }
 0x31b   : > { %v2410_v18 = vmax.f32 %v2347_v38, %v2379_v17 }
 0x31c   : > { %2430 = vst.msk [vmem:[#allocation4 + $0x20] sm:$0xff] %vm2314_vm1, %v2414_v56 }
 0x31d   : > { %v1548_v0 = vpop.permute.xlu1 %1547  ;;  %2426 = vst.msk [vmem:[#allocation4] sm:$0xff] %vm2314_vm1, %v2410_v18 }
 0x31e   : > { %v1546_v49 = vpop.permute.xlu0 %1545  ;;  %v2671_v10 = vld [vmem:[#allocation2 + $0x78] sm:$0xff]  ;;  %1629 = vst.msk [vmem:[#allocation2 + $0x3c] sm:$0xf] %vm1613_vm12, %v1548_v0  ;;  %v1836_v1 = vpop.permute.xlu2 %1835 }
 0x31f   : > { %1628 = vst.msk [vmem:[#allocation2 + $0x38] sm:$0xf] %vm1613_vm12, %v1546_v49  ;;  %2652 = vmatmul.msk.bf16.gmra.mxu3 %vm2068_vm0, %v2671_v10 }
 0x320   : > { %1782 = vst.msk [vmem:[#allocation2 + $0x3c] sm:$0xf] %vm1766_vm14, %v1701_v32 }
 0x324   : > { %v2442_v49 = vld [vmem:[#allocation4] sm:$0xff] }
 0x325   : > { %v1699_v23 = vpop.permute.xlu1 %1698 }
 0x326   : > { %1781 = vst.msk [vmem:[#allocation2 + $0x38] sm:$0xf] %vm1766_vm14, %v1699_v23  ;;  %v1685_v43 = vpop.permute.xlu0 %1684 }
 0x327   : > { %1774 = vst.msk [vmem:[#allocation2 + $0x1c] sm:$0xf] %vm1766_vm14, %v1685_v43 }
 0x328   : > { %1918 = vst.msk [vmem:[#allocation2 + $0x38] sm:$0xf] %vm1903_vm15, %v1836_v1 }
 0x329   : > { %v2195_v24 = vpop.f32.mrf.mxu3 }
 0x32a   : > { %v2175_v13 = vpop.f32.mrf.mxu2  ;;  %v2240_v48 = vmul.f32 %v4152_v29, %v2195_v24 }
 0x32b   : > { %v2232_v40 = vmul.f32 %v4152_v29, %v2175_v13  ;;  %v2444_v13 = vld [vmem:[#allocation4 + $0x20] sm:$0xff] }
 0x32c   : > { %v2276_v45 = vadd.f32 %v4159_v5, %v2240_v48 }
 0x32d   : > { %v1822_v11 = vpop.permute.xlu1 %1821  ;;  %v2268_v60 = vadd.f32 %v4159_v5, %v2232_v40 }
 0x32e   : > { %1911 = vst.msk [vmem:[#allocation2 + $0x1c] sm:$0xf] %vm1903_vm15, %v1822_v11  ;;  %v1820_v54 = vpop.permute.xlu0 %1819  ;;  %v2308_v58 = vmax.f32 %v2276_v45, 0.0 }
 0x32f   : > { %1910 = vst.msk [vmem:[#allocation2 + $0x18] sm:$0xf] %vm1903_vm15, %v1820_v54  ;;  %v2300_v14 = vmax.f32 %v2268_v60, 0.0 }
 0x330   : > { %2341 = vst.msk [vmem:[#allocation3 + $0xd0] sm:$0xff] %vm2314_vm1, %v2308_v58 }
 0x331   : > { %2333 = vst.msk [vmem:[#allocation3 + $0x90] sm:$0xff] %vm2314_vm1, %v2300_v14  ;;  %v2197_v52 = vpop.f32.mrf.mxu3 }
 0x332   : > { %v2177_v51 = vpop.f32.mrf.mxu2  ;;  %v2241_v19 = vmul.f32 %v4152_v29, %v2197_v52 }
 0x333   : > { %v2233_v47 = vmul.f32 %v4152_v29, %v2177_v51 }
 0x334   : > { %v2277_v16 = vadd.f32 %v4159_v5, %v2241_v19 }
 0x335   : > { %v2269_v21 = vadd.f32 %v4159_v5, %v2233_v47 }
 0x336   : > { %v1838_v33 = vpop.permute.xlu0 %1837  ;;  %v2659_v61 = vld [vmem:[#allocation2 + $0x18] sm:$0xff]  ;;  %v2309_v44 = vmax.f32 %v2277_v16, 0.0 }
 0x337   : > { %1919 = vst.msk [vmem:[#allocation2 + $0x3c] sm:$0xf] %vm1903_vm15, %v1838_v33  ;;  %v2301_v63 = vmax.f32 %v2269_v21, 0.0  ;;  %2640 = vmatmul.msk.bf16.gmra.mxu0 %vm2068_vm0, %v2659_v61 }
 0x338   : > { %2342 = vst.msk [vmem:[#allocation3 + $0xd8] sm:$0xff] %vm2314_vm1, %v2309_v44 }
 0x339   : > { %2334 = vst.msk [vmem:[#allocation3 + $0x98] sm:$0xff] %vm2314_vm1, %v2301_v63 }
 0x33c   : > { %v2135_v30 = vpop.f32.mrf.mxu0 }
 0x33d   : > { %v2216_v62 = vmul.f32 %v4152_v29, %v2135_v30 }
 0x33e   : > { %v2663_v4 = vld [vmem:[#allocation2 + $0x38] sm:$0xff] }
 0x33f   : > { %v2373_v12 = vld [vmem:[#allocation3 + $0xd0] ss:$2 sm:$0xff]  ;;  %v2405_v34 = vld [vmem:[#allocation3 + $0xd1] ss:$2 sm:$0xff]  ;;  %v2252_v6 = vadd.f32 %v4159_v5, %v2216_v62  ;;  %2644 = vmatmul.msk.bf16.gmra.mxu1 %vm2068_vm0, %v2663_v4 }
 0x340   : > { %v2365_v3 = vld [vmem:[#allocation3 + $0x90] ss:$2 sm:$0xff]  ;;  %v2397_v26 = vld [vmem:[#allocation3 + $0x91] ss:$2 sm:$0xff]  ;;  %v2423_v8 = vmax.f32 %v2373_v12, %v2405_v34 }
 0x341   : > { %v2419_v35 = vmax.f32 %v2365_v3, %v2397_v26  ;;  %v2284_v15 = vmax.f32 %v2252_v6, 0.0 }
 0x342   : > { %2439 = vst.msk [vmem:[#allocation4 + $0x68] sm:$0xff] %vm2314_vm1, %v2423_v8 }
 0x343   : > { %2435 = vst.msk [vmem:[#allocation4 + $0x48] sm:$0xff] %vm2314_vm1, %v2419_v35 }
 0x344   : > { %2317 = vst.msk [vmem:[#allocation3 + $0x10] sm:$0xff] %vm2314_vm1, %v2284_v15  ;;  %v2137_v20 = vpop.f32.mrf.mxu0  ;;  %v2155_v59 = vpop.f32.mrf.mxu1 }
 0x345   : > { %v2217_v50 = vmul.f32 %v4152_v29, %v2137_v20  ;;  %v2224_v57 = vmul.f32 %v4152_v29, %v2155_v59 }
 0x347   : > { %v2253_v41 = vadd.f32 %v4159_v5, %v2217_v50  ;;  %v2260_v39 = vadd.f32 %v4159_v5, %v2224_v57 }
 0x349   : > { %v2457_v46 = vld [vmem:[#allocation4 + $0x68] sm:$0xff]  ;;  %v2285_v2 = vmax.f32 %v2253_v41, 0.0  ;;  %v2292_v25 = vmax.f32 %v2260_v39, 0.0 }
 0x34a   : > { %v2455_v9 = vld [vmem:[#allocation4 + $0x48] sm:$0xff]  ;;  %v2465_v37 = vmax.f32 %v2448_v28, %v2457_v46 }
 0x34b   : > { %v2463_v36 = vmax.f32 %v2446_v27, %v2455_v9  ;;  %2318 = vst.msk [vmem:[#allocation3 + $0x18] sm:$0xff] %vm2314_vm1, %v2285_v2 }
 0x34c   : > { %v2473_v7 = vpack.c.bf16 %v2465_v37, %v2465_v37  ;;  %2325 = vst.msk [vmem:[#allocation3 + $0x50] sm:$0xff] %vm2314_vm1, %v2292_v25  ;;  %v2157_v55 = vpop.f32.mrf.mxu1 }
 0x34d   : > { %v2471_v22 = vpack.c.bf16 %v2463_v36, %v2463_v36  ;;  %v2225_v31 = vmul.f32 %v4152_v29, %v2157_v55 }
 0x34e   : > { %2482 = vst.msk [vmem:[%s4247_s18 + $0x18] sm:$0xf] %vm2475_vm2, %v2473_v7 }
 0x34f   : > { %2480 = vst.msk [vmem:[%s4247_s18 + $0x10] sm:$0xf] %vm2475_vm2, %v2471_v22  ;;  %v2261_v42 = vadd.f32 %v4159_v5, %v2225_v31 }
 0x351   : > { %v2293_v53 = vmax.f32 %v2261_v42, 0.0 }
 0x352   : > { %v2349_v56 = vld [vmem:[#allocation3 + $0x10] ss:$2 sm:$0xff]  ;;  %v2381_v38 = vld [vmem:[#allocation3 + $0x11] ss:$2 sm:$0xff] }
 0x353   : > { %v2411_v17 = vmax.f32 %v2349_v56, %v2381_v38  ;;  %2326 = vst.msk [vmem:[#allocation3 + $0x58] sm:$0xff] %vm2314_vm1, %v2293_v53 }
 0x355   : > { %2427 = vst.msk [vmem:[#allocation4 + $0x8] sm:$0xff] %vm2314_vm1, %v2411_v17 }
 0x35a   : > { %v2357_v32 = vld [vmem:[#allocation3 + $0x50] ss:$2 sm:$0xff]  ;;  %v2389_v18 = vld [vmem:[#allocation3 + $0x51] ss:$2 sm:$0xff] }
 0x35b   : > { %v2415_v0 = vmax.f32 %v2357_v32, %v2389_v18 }
 0x35c   : > { %v2451_v10 = vld [vmem:[#allocation4 + $0x8] sm:$0xff] }
 0x35d   : > { %v2459_v23 = vmax.f32 %v2442_v49, %v2451_v10  ;;  %2431 = vst.msk [vmem:[#allocation4 + $0x28] sm:$0xff] %vm2314_vm1, %v2415_v0 }
 0x35f   : > { %v2467_v1 = vpack.c.bf16 %v2459_v23, %v2459_v23 }
 0x361   : > { %2476 = vst.msk [vmem:[%s4247_s18] sm:$0xf] %vm2475_vm2, %v2467_v1 }
 0x362   : > { %v2180_v43 = vpop.f32.mrf.mxu2 }
 0x363   : > { %v2234_v24 = vmul.f32 %v4152_v29, %v2180_v43 }
 0x364   : > { %v2453_v48 = vld [vmem:[#allocation4 + $0x28] sm:$0xff] }
 0x365   : > { %v2461_v40 = vmax.f32 %v2444_v13, %v2453_v48  ;;  %v2270_v45 = vadd.f32 %v4159_v5, %v2234_v24 }
 0x367   : > { %v2469_v11 = vpack.c.bf16 %v2461_v40, %v2461_v40  ;;  %v2302_v60 = vmax.f32 %v2270_v45, 0.0 }
 0x369   : > { %2478 = vst.msk [vmem:[%s4247_s18 + $0x8] sm:$0xf] %vm2475_vm2, %v2469_v11 }
 0x36a   : > { %2335 = vst.msk [vmem:[#allocation3 + $0xa0] sm:$0xff] %vm2314_vm1, %v2302_v60  ;;  %v2182_v54 = vpop.f32.mrf.mxu2  ;;  %v2200_v58 = vpop.f32.mrf.mxu3 }
 0x36b   : > { %v2235_v14 = vmul.f32 %v4152_v29, %v2182_v54  ;;  %v2242_v52 = vmul.f32 %v4152_v29, %v2200_v58 }
 0x36d   : > { %v2271_v51 = vadd.f32 %v4159_v5, %v2235_v14  ;;  %v2278_v19 = vadd.f32 %v4159_v5, %v2242_v52 }
 0x36f   : > { %v2303_v47 = vmax.f32 %v2271_v51, 0.0  ;;  %v2310_v16 = vmax.f32 %v2278_v19, 0.0 }
 0x371   : > { %2336 = vst.msk [vmem:[#allocation3 + $0xa8] sm:$0xff] %vm2314_vm1, %v2303_v47 }
 0x372   : > { %2343 = vst.msk [vmem:[#allocation3 + $0xe0] sm:$0xff] %vm2314_vm1, %v2310_v16  ;;  %v2202_v21 = vpop.f32.mrf.mxu3 }
 0x373   : > { %v2243_v33 = vmul.f32 %v4152_v29, %v2202_v21  ;;  %v2140_v61 = vpop.f32.mrf.mxu0 }
 0x374   : > { %v2218_v44 = vmul.f32 %v4152_v29, %v2140_v61 }
 0x375   : > { %v2279_v63 = vadd.f32 %v4159_v5, %v2243_v33 }
 0x376   : > { %v2254_v30 = vadd.f32 %v4159_v5, %v2218_v44 }
 0x377   : > { %v2311_v62 = vmax.f32 %v2279_v63, 0.0 }
 0x378   : > { %v2367_v4 = vld [vmem:[#allocation3 + $0xa0] ss:$2 sm:$0xff]  ;;  %v2399_v12 = vld [vmem:[#allocation3 + $0xa1] ss:$2 sm:$0xff]  ;;  %v2286_v34 = vmax.f32 %v2254_v30, 0.0 }
 0x379   : > { %v2420_v6 = vmax.f32 %v2367_v4, %v2399_v12  ;;  %2344 = vst.msk [vmem:[#allocation3 + $0xe8] sm:$0xff] %vm2314_vm1, %v2311_v62 }
 0x37a   : > { %2319 = vst.msk [vmem:[#allocation3 + $0x20] sm:$0xff] %vm2314_vm1, %v2286_v34 }
 0x37b   : > { %2436 = vst.msk [vmem:[#allocation4 + $0x50] sm:$0xff] %vm2314_vm1, %v2420_v6  ;;  %v2142_v3 = vpop.f32.mrf.mxu0 }
 0x37c   : > { %v2219_v26 = vmul.f32 %v4152_v29, %v2142_v3  ;;  %v2160_v8 = vpop.f32.mrf.mxu1 }
 0x37d   : > { %v2226_v35 = vmul.f32 %v4152_v29, %v2160_v8 }
 0x37e   : > { %v2255_v15 = vadd.f32 %v4159_v5, %v2219_v26 }
 0x37f   : > { %v2262_v20 = vadd.f32 %v4159_v5, %v2226_v35 }
 0x380   : > { %v2375_v59 = vld [vmem:[#allocation3 + $0xe0] ss:$2 sm:$0xff]  ;;  %v2407_v50 = vld [vmem:[#allocation3 + $0xe1] ss:$2 sm:$0xff]  ;;  %v2287_v57 = vmax.f32 %v2255_v15, 0.0 }
 0x381   : > { %v2424_v41 = vmax.f32 %v2375_v59, %v2407_v50  ;;  %v2294_v39 = vmax.f32 %v2262_v20, 0.0 }
 0x382   : > { %2320 = vst.msk [vmem:[#allocation3 + $0x28] sm:$0xff] %vm2314_vm1, %v2287_v57  ;;  %v2447_v14 = vld [vmem:[#allocation4 + $0x50] sm:$0xff] }
 0x383   : > { %2440 = vst.msk [vmem:[#allocation4 + $0x70] sm:$0xff] %vm2314_vm1, %v2424_v41 }
 0x384   : > { %2327 = vst.msk [vmem:[#allocation3 + $0x60] sm:$0xff] %vm2314_vm1, %v2294_v39  ;;  %v2162_v28 = vpop.f32.mrf.mxu1 }
 0x385   : > { %v2227_v46 = vmul.f32 %v4152_v29, %v2162_v28 }
 0x387   : > { %v2263_v2 = vadd.f32 %v4159_v5, %v2227_v46 }
 0x389   : > { %v2351_v25 = vld [vmem:[#allocation3 + $0x20] ss:$2 sm:$0xff]  ;;  %v2383_v27 = vld [vmem:[#allocation3 + $0x21] ss:$2 sm:$0xff]  ;;  %v2295_v9 = vmax.f32 %v2263_v2, 0.0 }
 0x38a   : > { %v2412_v37 = vmax.f32 %v2351_v25, %v2383_v27  ;;  %v2449_v12 = vld [vmem:[#allocation4 + $0x70] sm:$0xff] }
 0x38b   : > { %2328 = vst.msk [vmem:[#allocation3 + $0x68] sm:$0xff] %vm2314_vm1, %v2295_v9 }
 0x38c   : > { %2428 = vst.msk [vmem:[#allocation4 + $0x10] sm:$0xff] %vm2314_vm1, %v2412_v37 }
 0x392   : > { %v2359_v36 = vld [vmem:[#allocation3 + $0x60] ss:$2 sm:$0xff]  ;;  %v2391_v7 = vld [vmem:[#allocation3 + $0x61] ss:$2 sm:$0xff] }
 0x393   : > { %v2416_v55 = vmax.f32 %v2359_v36, %v2391_v7  ;;  %v2443_v28 = vld [vmem:[#allocation4 + $0x10] sm:$0xff] }
 0x395   : > { %2432 = vst.msk [vmem:[#allocation4 + $0x30] sm:$0xff] %vm2314_vm1, %v2416_v55 }
 0x399   : > { %v2185_v22 = vpop.f32.mrf.mxu2 }
 0x39a   : > { %v2236_v31 = vmul.f32 %v4152_v29, %v2185_v22 }
 0x39c   : > { %v2272_v42 = vadd.f32 %v4159_v5, %v2236_v31 }
 0x39e   : > { %v2304_v53 = vmax.f32 %v2272_v42, 0.0 }
 0x3a0   : > { %2337 = vst.msk [vmem:[#allocation3 + $0xb0] sm:$0xff] %vm2314_vm1, %v2304_v53 }
 0x3a1   : > { %v2187_v56 = vpop.f32.mrf.mxu2 }
 0x3a2   : > { %v2237_v38 = vmul.f32 %v4152_v29, %v2187_v56  ;;  %v2205_v17 = vpop.f32.mrf.mxu3 }
 0x3a3   : > { %v2244_v32 = vmul.f32 %v4152_v29, %v2205_v17 }
 0x3a4   : > { %v2273_v18 = vadd.f32 %v4159_v5, %v2237_v38 }
 0x3a5   : > { %v2280_v0 = vadd.f32 %v4159_v5, %v2244_v32 }
 0x3a6   : > { %v2305_v49 = vmax.f32 %v2273_v18, 0.0 }
 0x3a7   : > { %v2312_v10 = vmax.f32 %v2280_v0, 0.0 }
 0x3a8   : > { %2338 = vst.msk [vmem:[#allocation3 + $0xb8] sm:$0xff] %vm2314_vm1, %v2305_v49 }
 0x3a9   : > { %2345 = vst.msk [vmem:[#allocation3 + $0xf0] sm:$0xff] %vm2314_vm1, %v2312_v10 }
 0x3aa   : > { %v2207_v23 = vpop.f32.mrf.mxu3 }
 0x3ab   : > { %v2245_v1 = vmul.f32 %v4152_v29, %v2207_v23 }
 0x3ad   : > { %v2281_v43 = vadd.f32 %v4159_v5, %v2245_v1 }
 0x3af   : > { %v2369_v24 = vld [vmem:[#allocation3 + $0xb0] ss:$2 sm:$0xff]  ;;  %v2401_v13 = vld [vmem:[#allocation3 + $0xb1] ss:$2 sm:$0xff]  ;;  %v2313_v48 = vmax.f32 %v2281_v43, 0.0 }
 0x3b0   : > { %v2421_v40 = vmax.f32 %v2369_v24, %v2401_v13 }
 0x3b1   : > { %2346 = vst.msk [vmem:[#allocation3 + $0xf8] sm:$0xff] %vm2314_vm1, %v2313_v48 }
 0x3b2   : > { %2437 = vst.msk [vmem:[#allocation4 + $0x58] sm:$0xff] %vm2314_vm1, %v2421_v40 }
 0x3b4   : > { %v2145_v45 = vpop.f32.mrf.mxu0 }
 0x3b5   : > { %v2220_v11 = vmul.f32 %v4152_v29, %v2145_v45 }
 0x3b7   : > { %v2256_v60 = vadd.f32 %v4159_v5, %v2220_v11 }
 0x3b8   : > { %v2377_v54 = vld [vmem:[#allocation3 + $0xf0] ss:$2 sm:$0xff]  ;;  %v2409_v58 = vld [vmem:[#allocation3 + $0xf1] ss:$2 sm:$0xff] }
 0x3b9   : > { %v2456_v52 = vld [vmem:[#allocation4 + $0x58] sm:$0xff]  ;;  %v2425_v51 = vmax.f32 %v2377_v54, %v2409_v58  ;;  %v2288_v19 = vmax.f32 %v2256_v60, 0.0 }
 0x3ba   : > { %v2464_v47 = vmax.f32 %v2447_v14, %v2456_v52 }
 0x3bb   : > { %2441 = vst.msk [vmem:[#allocation4 + $0x78] sm:$0xff] %vm2314_vm1, %v2425_v51 }
 0x3bc   : > { %v2472_v16 = vpack.c.bf16 %v2464_v47, %v2464_v47  ;;  %2321 = vst.msk [vmem:[#allocation3 + $0x30] sm:$0xff] %vm2314_vm1, %v2288_v19  ;;  %v2147_v21 = vpop.f32.mrf.mxu0  ;;  %v2165_v33 = vpop.f32.mrf.mxu1 }
 0x3bd   : > { %v2221_v61 = vmul.f32 %v4152_v29, %v2147_v21  ;;  %v2228_v44 = vmul.f32 %v4152_v29, %v2165_v33 }
 0x3be   : > { %2481 = vst.msk [vmem:[%s4247_s18 + $0x14] sm:$0xf] %vm2475_vm2, %v2472_v16 }
 0x3bf   : > { %v2257_v63 = vadd.f32 %v4159_v5, %v2221_v61  ;;  %v2264_v30 = vadd.f32 %v4159_v5, %v2228_v44 }
 0x3c1   : > { %v2289_v62 = vmax.f32 %v2257_v63, 0.0  ;;  %v2296_v4 = vmax.f32 %v2264_v30, 0.0 }
 0x3c2   : > { %v2458_v34 = vld [vmem:[#allocation4 + $0x78] sm:$0xff] }
 0x3c3   : > { %v2466_v6 = vmax.f32 %v2449_v12, %v2458_v34  ;;  %2322 = vst.msk [vmem:[#allocation3 + $0x38] sm:$0xff] %vm2314_vm1, %v2289_v62 }
 0x3c4   : > { %2329 = vst.msk [vmem:[#allocation3 + $0x70] sm:$0xff] %vm2314_vm1, %v2296_v4  ;;  %v2167_v3 = vpop.f32.mrf.mxu1 }
 0x3c5   : > { %v2474_v26 = vpack.c.bf16 %v2466_v6, %v2466_v6  ;;  %v2229_v8 = vmul.f32 %v4152_v29, %v2167_v3 }
 0x3c7   : > { %2483 = vst.msk [vmem:[%s4247_s18 + $0x1c] sm:$0xf] %vm2475_vm2, %v2474_v26  ;;  %v2265_v35 = vadd.f32 %v4159_v5, %v2229_v8  ;;  %v2445_v5 = vld [vmem:[#allocation4 + $0x30] sm:$0xff] }
 0x3c9   : > { %v2297_v15 = vmax.f32 %v2265_v35, 0.0 }
 0x3ca   : > { %v2353_v20 = vld [vmem:[#allocation3 + $0x30] ss:$2 sm:$0xff]  ;;  %v2385_v59 = vld [vmem:[#allocation3 + $0x31] ss:$2 sm:$0xff] }
 0x3cb   : > { %v2413_v50 = vmax.f32 %v2353_v20, %v2385_v59  ;;  %2330 = vst.msk [vmem:[#allocation3 + $0x78] sm:$0xff] %vm2314_vm1, %v2297_v15 }
 0x3cd   : > { %2429 = vst.msk [vmem:[#allocation4 + $0x18] sm:$0xff] %vm2314_vm1, %v2413_v50 }
 0x3d2   : > { %v2361_v57 = vld [vmem:[#allocation3 + $0x70] ss:$2 sm:$0xff]  ;;  %v2393_v41 = vld [vmem:[#allocation3 + $0x71] ss:$2 sm:$0xff] }
 0x3d3   : > { %v2417_v39 = vmax.f32 %v2361_v57, %v2393_v41 }
 0x3d4   : > { %v2452_v46 = vld [vmem:[#allocation4 + $0x18] sm:$0xff] }
 0x3d5   : > { %v2460_v29 = vmax.f32 %v2443_v28, %v2452_v46  ;;  %2433 = vst.msk [vmem:[#allocation4 + $0x38] sm:$0xff] %vm2314_vm1, %v2417_v39 }
 0x3d7   : > { %v2468_v2 = vpack.c.bf16 %v2460_v29, %v2460_v29 }
 0x3d9   : > { %2477 = vst.msk [vmem:[%s4247_s18 + $0x4] sm:$0xf] %vm2475_vm2, %v2468_v2 }
 0x3dc   : > { %v2454_v25 = vld [vmem:[#allocation4 + $0x38] sm:$0xff] }
 0x3dd   : > { %v2462_v27 = vmax.f32 %v2445_v5, %v2454_v25 }
 0x3df   : > { %v2470_v9 = vpack.c.bf16 %v2462_v27, %v2462_v27 }
 0x3e1   : > { %2479 = vst.msk [vmem:[%s4247_s18 + $0xc] sm:$0xf] %vm2475_vm2, %v2470_v9 }
 0x3e2 PF: > { %s14_s15 = sadd.s32 1, %s2708_s15  }
 0x3e3   : > { %p11_p4 = scmp.ge.s32.totalorder %s14_s15, 4  }
 0x3e5   :  { %13 = sbr.rel (!%p11_p4) target bundleno = 1 (0x1), region = 98 }

</bundles_post_ra>
